<compile_context>
chip_gen: v5e
topology: v5e:2x2
jax: 0.10.0
libtpu: 0.0.40
codegen_flags: <defaults>
</compile_context>

<pallas_src>
import jax
import jax.numpy as jnp
from jax.experimental import pallas as pl
from jax.experimental.pallas import tpu as pltpu

VMEM_LIMIT = 32 * 1024 * 1024  # == v7x default scoped limit; safe on v5e/v6e too


# ---------------------------------------------------------------------------
# small helpers
# ---------------------------------------------------------------------------

def _round_up(x, m):
    return ((x + m - 1) // m) * m


def _pick_tile(extent, target, multiple=8):
    """Largest divisor of `extent` <= target that is a multiple of `multiple`.

    Falls back to the full extent (a full dim is always a legal block dim).
    TODO(synk): switch the fallback to cdiv + masked tail so an awkward extent
    can never produce one giant block.
    """
    if extent <= target:
        return extent
    for d in range(min(extent, target), multiple - 1, -1):
        if extent % d == 0 and d % multiple == 0:
            return d
    return extent


def _bn_scale_shift(s, ss, count, gamma, beta, eps=1e-5):
    # s, ss: (1, C) channel sum / sum of squares over the batch (biased var).
    mean = s / count
    var = jnp.maximum(ss / count - mean * mean, 0.0)
    rstd = jax.lax.rsqrt(var + eps)
    scale = gamma.reshape(1, -1) * rstd
    shift = beta.reshape(1, -1) - mean * scale
    return scale, shift


def _cp(*sem):
    return pltpu.CompilerParams(dimension_semantics=tuple(sem),
                                vmem_limit_bytes=VMEM_LIMIT)


# ---------------------------------------------------------------------------
# Pallas kernels
# ---------------------------------------------------------------------------

def conv_mm_kernel(a_ref, w_ref, b_ref, o_ref, s_ref, ss_ref):
    # conv1 im2col matmul: (tm, K) bf16 @ (K, C) bf16 -> f32 on the MXU, + bias.
    # bn1 pass-1 fused into the epilogue: per-tile channel sum / sum-of-squares.
    y = jnp.dot(a_ref[...], w_ref[...],
                preferred_element_type=jnp.float32) + b_ref[...]
    o_ref[...] = y
    s_ref[0] = jnp.sum(y, axis=0, keepdims=True)
    ss_ref[0] = jnp.sum(y * y, axis=0, keepdims=True)


def bn_relu_capool_kernel(y_ref, sc_ref, sh_ref, x3_ref, s_ref, m_ref, sq_ref):
    # bn1 normalize (precomputed scale/shift) + relu, plus per-(n, tile)
    # channel-attention sum/max pooling and sumsq partials (sumsq feeds the
    # algebraic bn2 statistics).
    x = jnp.maximum(y_ref[...] * sc_ref[...] + sh_ref[...], 0.0)   # (1, thw, C)
    x3_ref[...] = x
    s_ref[0] = jnp.sum(x, axis=1, keepdims=True)                   # (1, 1, C)
    m_ref[0] = jnp.max(x, axis=1, keepdims=True)
    sq_ref[0] = jnp.sum(x * x, axis=1, keepdims=True)


def ca_gate_kernel(avg_ref, max_ref, w1_ref, w2_ref, o_ref):
    # ChannelAttention shared 2-layer MLP on the pooled (N, C) vectors; tiny.
    def mlp(v):
        h = jnp.maximum(
            jnp.dot(v, w1_ref[...], preferred_element_type=jnp.float32), 0.0)
        return jnp.dot(h, w2_ref[...], preferred_element_type=jnp.float32)

    o_ref[...] = jax.nn.sigmoid(mlp(avg_ref[...]) + mlp(max_ref[...]))


def gate_bn2_samap_kernel(x_ref, g_ref, sc_ref, sh_ref, yb_ref, sam_ref):
    # bn2 normalize of gate*x3; also emit the per-pixel channel mean/max map
    # for SpatialAttention as a single (1, thw, 2) output.
    yb = (x_ref[...] * g_ref[...]) * sc_ref[...] + sh_ref[...]
    yb_ref[...] = yb
    avg = jnp.mean(yb, axis=2, keepdims=True)                       # (1, thw, 1)
    mx = jnp.max(yb, axis=2, keepdims=True)
    sam_ref[...] = jnp.concatenate([avg, mx], axis=2)               # (1, thw, 2)


def sa_conv_kernel(xp_ref, w_ref, o_ref):
    # SpatialAttention 7x7 conv + sigmoid, one image per grid step, pure VPU.
    # xp_ref: (1, 2, 7, Ho+6, Wo) -- per input channel, 7 W-shifted copies of
    # the H/W-padded map, so Wo sits on lanes. w_ref: (98,) scalars in SMEM.
    Ho, Wo = o_ref.shape[1], o_ref.shape[2]
    acc = jnp.zeros((Ho, Wo), jnp.float32)
    for c in range(2):
        for kh in range(7):
            for kw in range(7):
                acc = acc + xp_ref[0, c, kw, kh:kh + Ho, :] * w_ref[c * 49 + kh * 7 + kw]
    o_ref[0] = jax.nn.sigmoid(acc)


def smul_stats_kernel(yb_ref, s_ref, sum_ref, sq_ref):
    # bn3 pass 1: per-tile stats of sigmoid(sa)*yb.
    z = yb_ref[...] * s_ref[...]
    sum_ref[0] = jnp.sum(z, axis=0, keepdims=True)
    sq_ref[0] = jnp.sum(z * z, axis=0, keepdims=True)


def bn3_maxpool_kernel(yb_ref, s_ref, sc_ref, sh_ref, o_ref, scr_ref):
    # Fused: z = sigmoid(sa)*yb normalized with bn3 scale/shift, then the
    # 3x3 / stride-2 / pad-1 maxpool, all in VMEM (no z materialization).
    Ho, Wo = yb_ref.shape[1], yb_ref.shape[2]
    Hp, Wp = o_ref.shape[1], o_ref.shape[2]
    C = yb_ref.shape[3]
    z = (yb_ref[...] * s_ref[...]) * sc_ref[...] + sh_ref[...]      # (1,Ho,Wo,C)

    # H-direction pool (kernel 3, stride 2, pad 1) via static row selection.
    for i in range(Hp):
        row = None
        for kh in range(3):
            r = 2 * i - 1 + kh
            if 0 <= r < Ho:
                v = z[0, r]                                          # (Wo, C)
                row = v if row is None else jnp.maximum(row, v)
        scr_ref[i] = row

    # W-direction 3-neighborhood max (pad 1 with -inf) via shifted concats.
    rh = scr_ref[...]                                                # (Hp, Wo, C)
    ninf = jnp.full((Hp, 1, C), -jnp.inf, jnp.float32)
    left = jnp.concatenate([ninf, rh[:, :Wo - 1, :]], axis=1)        # col w-1
    right = jnp.concatenate([rh[:, 1:, :], ninf], axis=1)            # col w+1
    scr_ref[...] = jnp.maximum(jnp.maximum(rh, left), right)

    # stride-2 downsample along W straight out of VMEM.
    o_ref[0] = scr_ref[:, pl.ds(0, Wp, stride=2), :]


# ---------------------------------------------------------------------------
# Glue: im2col for conv1 (plain JAX reshapes & pads, done in bf16)
# ---------------------------------------------------------------------------

def conv_im2col(x_nhwc, k, stride, pad):
    # TODO(synk): replace with in-kernel halo patch extraction to kill the ~12x
    # patch materialization on large inputs.
    N, H, W, C = x_nhwc.shape
    xp = jnp.pad(x_nhwc, ((0, 0), (pad, pad), (pad, pad), (0, 0)))
    Ho = (H + 2 * pad - k) // stride + 1
    Wo = (W + 2 * pad - k) // stride + 1
    cols = []
    for kh in range(k):
        for kw in range(k):
            cols.append(xp[:, kh:kh + stride * Ho:stride,
                           kw:kw + stride * Wo:stride, :])
    patches = jnp.stack(cols, axis=3)                    # (N,Ho,Wo,k*k,C)
    return patches.reshape(N * Ho * Wo, k * k * C), (Ho, Wo)


# ---------------------------------------------------------------------------
# firstcov forward
# ---------------------------------------------------------------------------

def firstcov_forward(x_nchw, p):
    N, Cin, H, W = x_nchw.shape
    C = 64
    x = jnp.transpose(x_nchw, (0, 2, 3, 1)).astype(jnp.bfloat16)   # NHWC, bf16

    # ---- conv1 (im2col + bf16 MXU matmul) with fused bn1 stats ---------------
    patches, (Ho, Wo) = conv_im2col(x, 7, 2, 3)          # bf16 patches
    K = 7 * 7 * Cin
    Kp = _round_up(K, 128)
    patches = jnp.pad(patches, ((0, 0), (0, Kp - K)))
    w1 = jnp.transpose(p['conv1_w'], (2, 3, 1, 0)).reshape(K, C)
    w1 = jnp.pad(w1, ((0, Kp - K), (0, 0))).astype(jnp.bfloat16)

    HW = Ho * Wo
    M = N * HW
    tm = _pick_tile(M, 1024, 8)
    Tm = M // tm
    flops = 2 * M * Kp * C
    bytes_accessed = M * Kp * 2 + Kp * C * 2 + M * C * 4

    y, s1p, ss1p = pl.pallas_call(
        conv_mm_kernel,
        out_shape=(jax.ShapeDtypeStruct((M, C), jnp.float32),
                   jax.ShapeDtypeStruct((Tm, 1, C), jnp.float32),
                   jax.ShapeDtypeStruct((Tm, 1, C), jnp.float32)),
        grid=(Tm,),
        in_specs=[pl.BlockSpec((tm, Kp), lambda i: (i, 0)),
                  pl.BlockSpec((Kp, C), lambda i: (0, 0)),
                  pl.BlockSpec((1, C), lambda i: (0, 0))],
        out_specs=(pl.BlockSpec((tm, C), lambda i: (i, 0)),
                   pl.BlockSpec((1, 1, C), lambda i: (i, 0, 0)),
                   pl.BlockSpec((1, 1, C), lambda i: (i, 0, 0))),
        compiler_params=_cp("parallel"),
        cost_estimate=pl.CostEstimate(
            flops=flops, transcendentals=0, bytes_accessed=bytes_accessed),
    )(patches, w1, p['conv1_b'].reshape(1, C))

    s1 = jnp.sum(s1p, axis=(0, 1)).reshape(1, C)
    ss1 = jnp.sum(ss1p, axis=(0, 1)).reshape(1, C)
    sc1, sh1 = _bn_scale_shift(s1, ss1, M, p['bn1_g'], p['bn1_b'])

    thw = _pick_tile(HW, 8192, 8)
    Thw = HW // thw

    # ---- bn1 + relu with fused CA pooling partials (sum / max / sumsq) -------
    x3, cas, cam, casq = pl.pallas_call(
        bn_relu_capool_kernel,
        out_shape=(jax.ShapeDtypeStruct((N, HW, C), jnp.float32),
                   jax.ShapeDtypeStruct((N, Thw, 1, C), jnp.float32),
                   jax.ShapeDtypeStruct((N, Thw, 1, C), jnp.float32),
                   jax.ShapeDtypeStruct((N, Thw, 1, C), jnp.float32)),
        grid=(N, Thw),
        in_specs=[pl.BlockSpec((1, thw, C), lambda n, t: (n, t, 0)),
                  pl.BlockSpec((1, 1, C), lambda n, t: (0, 0, 0)),
                  pl.BlockSpec((1, 1, C), lambda n, t: (0, 0, 0))],
        out_specs=(pl.BlockSpec((1, thw, C), lambda n, t: (n, t, 0)),
                   pl.BlockSpec((1, 1, 1, C), lambda n, t: (n, t, 0, 0)),
                   pl.BlockSpec((1, 1, 1, C), lambda n, t: (n, t, 0, 0)),
                   pl.BlockSpec((1, 1, 1, C), lambda n, t: (n, t, 0, 0))),
        compiler_params=_cp("parallel", "parallel"),
    )(y.reshape(N, HW, C), sc1.reshape(1, 1, C), sh1.reshape(1, 1, C))

    casum_n = jnp.sum(cas, axis=(1, 2))                  # (N, C)
    camax_n = jnp.max(cam, axis=(1, 2))                  # (N, C)
    casq_n = jnp.sum(casq, axis=(1, 2))                  # (N, C)
    ca_avg = casum_n * (1.0 / HW)

    # ---- channel attention gate (tiny shared MLP) -----------------------------
    ca_w1 = p['ca_fc1_w'].reshape(C // 16, C).T          # (C, C//16)
    ca_w2 = p['ca_fc2_w'].reshape(C, C // 16).T          # (C//16, C)
    gate = pl.pallas_call(
        ca_gate_kernel,
        out_shape=jax.ShapeDtypeStruct((N, C), jnp.float32),
    )(ca_avg, camax_n, ca_w1, ca_w2)

    # ---- bn2 stats: algebraic (gate is constant per (n,c)) --------------------
    s2 = jnp.sum(gate * casum_n, axis=0, keepdims=True)          # (1, C)
    ss2 = jnp.sum(gate * gate * casq_n, axis=0, keepdims=True)   # (1, C)
    sc2, sh2 = _bn_scale_shift(s2, ss2, M, p['bn2_g'], p['bn2_b'])

    # ---- gate*x3 -> bn2 normalize, emit SA avg/max map in one output ----------
    yb, sam = pl.pallas_call(
        gate_bn2_samap_kernel,
        out_shape=(jax.ShapeDtypeStruct((N, HW, C), jnp.float32),
                   jax.ShapeDtypeStruct((N, HW, 2), jnp.float32)),
        grid=(N, Thw),
        in_specs=[pl.BlockSpec((1, thw, C), lambda n, t: (n, t, 0)),
                  pl.BlockSpec((1, 1, C), lambda n, t: (n, 0, 0)),
                  pl.BlockSpec((1, 1, C), lambda n, t: (0, 0, 0)),
                  pl.BlockSpec((1, 1, C), lambda n, t: (0, 0, 0))],
        out_specs=(pl.BlockSpec((1, thw, C), lambda n, t: (n, t, 0)),
                   pl.BlockSpec((1, thw, 2), lambda n, t: (n, t, 0))),
        compiler_params=_cp("parallel", "parallel"),
    )(x3, gate.reshape(N, 1, C), sc2.reshape(1, 1, C), sh2.reshape(1, 1, C))

    # ---- spatial attention: 7x7 conv over the tiny [avg,max] map, Wo on lanes -
    sa_map = jnp.transpose(sam.reshape(N, Ho, Wo, 2), (0, 3, 1, 2))  # (N,2,Ho,Wo)
    sa_pad = jnp.pad(sa_map, ((0, 0), (0, 0), (3, 3), (3, 3)))
    sa_sh = jnp.stack([sa_pad[:, :, :, kw:kw + Wo] for kw in range(7)],
                      axis=2)                                        # (N,2,7,Ho+6,Wo)
    w_sa = p['sa_w'].reshape(-1)                                     # (98,)
    s_gate = pl.pallas_call(
        sa_conv_kernel,
        out_shape=jax.ShapeDtypeStruct((N, Ho, Wo), jnp.float32),
        grid=(N,),
        in_specs=[pl.BlockSpec((1, 2, 7, Ho + 6, Wo),
                               lambda n: (n, 0, 0, 0, 0)),
                  pl.BlockSpec(memory_space=pltpu.MemorySpace.SMEM)],
        out_specs=pl.BlockSpec((1, Ho, Wo), lambda n: (n, 0, 0)),
        compiler_params=_cp("parallel"),
    )(sa_sh, w_sa)

    # ---- bn3 pass 1: per-tile stats of sigmoid(sa)*yb --------------------------
    yb2 = yb.reshape(M, C)
    sflat = s_gate.reshape(M, 1)
    tr = _pick_tile(M, 8192, 8)
    Tr = M // tr
    s3p, ss3p = pl.pallas_call(
        smul_stats_kernel,
        out_shape=(jax.ShapeDtypeStruct((Tr, 1, C), jnp.float32),
                   jax.ShapeDtypeStruct((Tr, 1, C), jnp.float32)),
        grid=(Tr,),
        in_specs=[pl.BlockSpec((tr, C), lambda i: (i, 0)),
                  pl.BlockSpec((tr, 1), lambda i: (i, 0))],
        out_specs=(pl.BlockSpec((1, 1, C), lambda i: (i, 0, 0)),
                   pl.BlockSpec((1, 1, C), lambda i: (i, 0, 0))),
        compiler_params=_cp("parallel"),
    )(yb2, sflat)
    s3 = jnp.sum(s3p, axis=(0, 1)).reshape(1, C)
    ss3 = jnp.sum(ss3p, axis=(0, 1)).reshape(1, C)
    sc3, sh3 = _bn_scale_shift(s3, ss3, M, p['bn3_g'], p['bn3_b'])

    # ---- bn3 normalize + fused 3x3/s2/p1 maxpool (one image per grid step) ----
    # TODO(synk): tile the H axis with a 1-row halo for very large images so the
    # per-image block never approaches the VMEM limit.
    Hp = (Ho + 2 - 3) // 2 + 1
    Wp = (Wo + 2 - 3) // 2 + 1
    out = pl.pallas_call(
        bn3_maxpool_kernel,
        out_shape=jax.ShapeDtypeStruct((N, Hp, Wp, C), jnp.float32),
        grid=(N,),
        in_specs=[pl.BlockSpec((1, Ho, Wo, C), lambda n: (n, 0, 0, 0)),
                  pl.BlockSpec((1, Ho, Wo, 1), lambda n: (n, 0, 0, 0)),
                  pl.BlockSpec((1, 1, 1, C), lambda n: (0, 0, 0, 0)),
                  pl.BlockSpec((1, 1, 1, C), lambda n: (0, 0, 0, 0))],
        out_specs=pl.BlockSpec((1, Hp, Wp, C), lambda n: (n, 0, 0, 0)),
        scratch_shapes=[pltpu.VMEM((Hp, Wo, C), jnp.float32)],
        compiler_params=_cp("parallel"),
    )(yb.reshape(N, Ho, Wo, C), s_gate.reshape(N, Ho, Wo, 1),
      sc3.reshape(1, 1, 1, C), sh3.reshape(1, 1, 1, C))

    return jnp.transpose(out, (0, 3, 1, 2))              # -> NCHW


# ---------------------------------------------------------------------------
# Deterministic parameter init (synthetic; PyTorch-shaped weights)
# ---------------------------------------------------------------------------

def init_params(key, in_ch, num_ch=64):
    ks = jax.random.split(key, 11)
    f = lambda k, s, sc: (sc * jax.random.normal(k, s)).astype(jnp.float32)
    return {
        'conv1_w': f(ks[0], (64, in_ch, 7, 7), 0.05),
        'conv1_b': f(ks[1], (64,), 0.05),
        'bn1_g': 1.0 + f(ks[2], (64,), 0.1), 'bn1_b': f(ks[3], (64,), 0.1),
        'bn2_g': 1.0 + f(ks[4], (64,), 0.1), 'bn2_b': f(ks[5], (64,), 0.1),
        'bn3_g': 1.0 + f(ks[6], (64,), 0.1), 'bn3_b': f(ks[7], (64,), 0.1),
        'ca_fc1_w': f(ks[8], (num_ch // 16, num_ch, 1, 1), 0.1),   # Conv2d(64->4,1x1)
        'ca_fc2_w': f(ks[9], (num_ch, num_ch // 16, 1, 1), 0.1),   # Conv2d(4->64,1x1)
        'sa_w': f(ks[10], (1, 2, 7, 7), 0.1),                      # Conv2d(2->1,7x7)
    }


if __name__ == "__main__":
    key = jax.random.PRNGKey(0)
    k_p, k_x = jax.random.split(key)

    N, Cin, H, W = 2, 4, 16, 16        # firstcov(input_channels=4, num_channels=64)
    params = init_params(k_p, Cin, num_ch=64)
    x = jax.random.normal(k_x, (N, Cin, H, W), dtype=jnp.float32)

    fwd = jax.jit(firstcov_forward)
    out = jax.block_until_ready(fwd(x, params))

    assert out.shape == (N, 64, 4, 4), out.shape
    assert bool(jnp.all(jnp.isfinite(out)))
    print("KERNEL_OK")
</pallas_src>

<mosaic_0001>
module attributes {stable_mosaic.version = 11 : i64} {
  func.func @conv_mm_kernel(%arg0: i32, %arg1: memref<128x256xbf16, #tpu.memory_space<vmem>>, %arg2: memref<256x64xbf16, #tpu.memory_space<vmem>>, %arg3: memref<1x64xf32, #tpu.memory_space<vmem>>, %arg4: memref<128x64xf32, #tpu.memory_space<vmem>>, %arg5: memref<1x1x64xf32, #tpu.memory_space<vmem>>, %arg6: memref<1x1x64xf32, #tpu.memory_space<vmem>>) attributes {dimension_semantics = [#tpu.dimension_semantics<parallel>], iteration_bounds = array<i64: 1>, scalar_prefetch = 0 : i64, scratch_operands = 0 : i64, tpu.core_type = #tpu.core_type<tc>, window_params = [{transform_indices = @transform_0, window_bounds = array<i64: 128, 256>}, {pipeline_mode = #tpu.pipeline_mode<synchronous>, transform_indices = @transform_1, window_bounds = array<i64: 256, 64>}, {pipeline_mode = #tpu.pipeline_mode<synchronous>, transform_indices = @transform_2, window_bounds = array<i64: 1, 64>}, {transform_indices = @transform_3, window_bounds = array<i64: 128, 64>}, {transform_indices = @transform_4, window_bounds = array<i64: 1, 1, 64>}, {transform_indices = @transform_5, window_bounds = array<i64: 1, 1, 64>}]} {
    %c0 = arith.constant 0 : index
    %c0_0 = arith.constant 0 : index
    %0 = vector.load %arg1[%c0, %c0_0] : memref<128x256xbf16, #tpu.memory_space<vmem>>, vector<128x256xbf16>
    %c0_1 = arith.constant 0 : index
    %c0_2 = arith.constant 0 : index
    %1 = vector.load %arg2[%c0_1, %c0_2] : memref<256x64xbf16, #tpu.memory_space<vmem>>, vector<256x64xbf16>
    %cst = arith.constant dense<0.000000e+00> : vector<128x64xf32>
    %2 = tpu.matmul %0, %1, %cst {dimension_numbers = #tpu.dot_dimension_numbers<[1], [0], [0], [1], [0, 0, 1, 1], [], []>} : vector<128x256xbf16>, vector<256x64xbf16>, vector<128x64xf32> -> vector<128x64xf32>
    %c0_3 = arith.constant 0 : index
    %c0_4 = arith.constant 0 : index
    %3 = vector.load %arg3[%c0_3, %c0_4] : memref<1x64xf32, #tpu.memory_space<vmem>>, vector<1x64xf32>
    %4 = vector.broadcast %3 : vector<1x64xf32> to vector<128x64xf32>
    %5 = arith.addf %2, %4 : vector<128x64xf32>
    %c0_5 = arith.constant 0 : index
    %c0_6 = arith.constant 0 : index
    %6 = vector.load %arg4[%c0_5, %c0_6] : memref<128x64xf32, #tpu.memory_space<vmem>>, vector<128x64xf32>
    tpu.vector_store %arg4[%c0_5, %c0_6], %5 {strides = array<i32>} : memref<128x64xf32, #tpu.memory_space<vmem>>, vector<128x64xf32>,
    %cst_7 = arith.constant dense<0.000000e+00> : vector<64xf32>
    %7 = vector.multi_reduction <add>, %5, %cst_7 [0] : vector<128x64xf32> to vector<64xf32>
    %8 = vector.shape_cast %7 : vector<64xf32> to vector<1x64xf32>
    %c0_8 = arith.constant 0 : index
    %c0_9 = arith.constant 0 : index
    %c0_10 = arith.constant 0 : index
    %9 = vector.load %arg5[%c0_8, %c0_9, %c0_10] : memref<1x1x64xf32, #tpu.memory_space<vmem>>, vector<1x1x64xf32>
    %10 = vector.shape_cast %9 : vector<1x1x64xf32> to vector<1x64xf32>
    %11 = vector.shape_cast %8 : vector<1x64xf32> to vector<1x1x64xf32>
    tpu.vector_store %arg5[%c0_8, %c0_9, %c0_10], %11 {strides = array<i32>} : memref<1x1x64xf32, #tpu.memory_space<vmem>>, vector<1x1x64xf32>,
    %12 = arith.mulf %5, %5 : vector<128x64xf32>
    %cst_11 = arith.constant dense<0.000000e+00> : vector<64xf32>
    %13 = vector.multi_reduction <add>, %12, %cst_11 [0] : vector<128x64xf32> to vector<64xf32>
    %14 = vector.shape_cast %13 : vector<64xf32> to vector<1x64xf32>
    %c0_12 = arith.constant 0 : index
    %c0_13 = arith.constant 0 : index
    %c0_14 = arith.constant 0 : index
    %15 = vector.load %arg6[%c0_12, %c0_13, %c0_14] : memref<1x1x64xf32, #tpu.memory_space<vmem>>, vector<1x1x64xf32>
    %16 = vector.shape_cast %15 : vector<1x1x64xf32> to vector<1x64xf32>
    %17 = vector.shape_cast %14 : vector<1x64xf32> to vector<1x1x64xf32>
    tpu.vector_store %arg6[%c0_12, %c0_13, %c0_14], %17 {strides = array<i32>} : memref<1x1x64xf32, #tpu.memory_space<vmem>>, vector<1x1x64xf32>,
    return
  }
  func.func @transform_0(%arg0: i32) -> (i32, i32) {
    %c0_i32 = arith.constant 0 : i32
    %c0_i32_0 = arith.constant 0 : i32
    return %arg0, %c0_i32 : i32, i32
  }
  func.func @transform_1(%arg0: i32) -> (i32, i32) {
    %c0_i32 = arith.constant 0 : i32
    %c0_i32_0 = arith.constant 0 : i32
    %c0_i32_1 = arith.constant 0 : i32
    return %c0_i32, %c0_i32_0 : i32, i32
  }
  func.func @transform_2(%arg0: i32) -> (i32, i32) {
    %c0_i32 = arith.constant 0 : i32
    %c0_i32_0 = arith.constant 0 : i32
    %c0_i32_1 = arith.constant 0 : i32
    return %c0_i32, %c0_i32_0 : i32, i32
  }
  func.func @transform_3(%arg0: i32) -> (i32, i32) {
    %c0_i32 = arith.constant 0 : i32
    %c0_i32_0 = arith.constant 0 : i32
    return %arg0, %c0_i32 : i32, i32
  }
  func.func @transform_4(%arg0: i32) -> (i32, i32, i32) {
    %c0_i32 = arith.constant 0 : i32
    %c0_i32_0 = arith.constant 0 : i32
    %c0_i32_1 = arith.constant 0 : i32
    return %arg0, %c0_i32, %c0_i32_0 : i32, i32, i32
  }
  func.func @transform_5(%arg0: i32) -> (i32, i32, i32) {
    %c0_i32 = arith.constant 0 : i32
    %c0_i32_0 = arith.constant 0 : i32
    %c0_i32_1 = arith.constant 0 : i32
    return %arg0, %c0_i32, %c0_i32_0 : i32, i32, i32
  }
}

module attributes {stable_mosaic.version = 11 : i64} {
  func.func @bn_relu_capool_kernel(%arg0: i32, %arg1: i32, %arg2: memref<1x64x64xf32, #tpu.memory_space<vmem>>, %arg3: memref<1x1x64xf32, #tpu.memory_space<vmem>>, %arg4: memref<1x1x64xf32, #tpu.memory_space<vmem>>, %arg5: memref<1x64x64xf32, #tpu.memory_space<vmem>>, %arg6: memref<1x1x1x64xf32, #tpu.memory_space<vmem>>, %arg7: memref<1x1x1x64xf32, #tpu.memory_space<vmem>>, %arg8: memref<1x1x1x64xf32, #tpu.memory_space<vmem>>) attributes {dimension_semantics = [#tpu.dimension_semantics<parallel>, #tpu.dimension_semantics<parallel>], iteration_bounds = array<i64: 2, 1>, scalar_prefetch = 0 : i64, scratch_operands = 0 : i64, tpu.core_type = #tpu.core_type<tc>, window_params = [{transform_indices = @transform_0, window_bounds = array<i64: 1, 64, 64>}, {pipeline_mode = #tpu.pipeline_mode<synchronous>, transform_indices = @transform_1, window_bounds = array<i64: 1, 1, 64>}, {pipeline_mode = #tpu.pipeline_mode<synchronous>, transform_indices = @transform_2, window_bounds = array<i64: 1, 1, 64>}, {transform_indices = @transform_3, window_bounds = array<i64: 1, 64, 64>}, {transform_indices = @transform_4, window_bounds = array<i64: 1, 1, 1, 64>}, {transform_indices = @transform_5, window_bounds = array<i64: 1, 1, 1, 64>}, {transform_indices = @transform_6, window_bounds = array<i64: 1, 1, 1, 64>}]} {
    %c0 = arith.constant 0 : index
    %c0_0 = arith.constant 0 : index
    %c0_1 = arith.constant 0 : index
    %0 = vector.load %arg2[%c0, %c0_0, %c0_1] : memref<1x64x64xf32, #tpu.memory_space<vmem>>, vector<1x64x64xf32>
    %c0_2 = arith.constant 0 : index
    %c0_3 = arith.constant 0 : index
    %c0_4 = arith.constant 0 : index
    %1 = vector.load %arg3[%c0_2, %c0_3, %c0_4] : memref<1x1x64xf32, #tpu.memory_space<vmem>>, vector<1x1x64xf32>
    %2 = vector.broadcast %1 : vector<1x1x64xf32> to vector<1x64x64xf32>
    %3 = arith.mulf %0, %2 : vector<1x64x64xf32>
    %c0_5 = arith.constant 0 : index
    %c0_6 = arith.constant 0 : index
    %c0_7 = arith.constant 0 : index
    %4 = vector.load %arg4[%c0_5, %c0_6, %c0_7] : memref<1x1x64xf32, #tpu.memory_space<vmem>>, vector<1x1x64xf32>
    %5 = vector.broadcast %4 : vector<1x1x64xf32> to vector<1x64x64xf32>
    %6 = arith.addf %3, %5 : vector<1x64x64xf32>
    %cst = arith.constant 0.000000e+00 : f32
    %7 = vector.broadcast %cst : f32 to vector<1x64x64xf32>
    %8 = arith.maximumf %6, %7 : vector<1x64x64xf32>
    %c0_8 = arith.constant 0 : index
    %c0_9 = arith.constant 0 : index
    %c0_10 = arith.constant 0 : index
    %9 = vector.load %arg5[%c0_8, %c0_9, %c0_10] : memref<1x64x64xf32, #tpu.memory_space<vmem>>, vector<1x64x64xf32>
    tpu.vector_store %arg5[%c0_8, %c0_9, %c0_10], %8 {strides = array<i32>} : memref<1x64x64xf32, #tpu.memory_space<vmem>>, vector<1x64x64xf32>,
    %cst_11 = arith.constant dense<0.000000e+00> : vector<1x64xf32>
    %10 = vector.multi_reduction <add>, %8, %cst_11 [1] : vector<1x64x64xf32> to vector<1x64xf32>
    %11 = vector.shape_cast %10 : vector<1x64xf32> to vector<1x1x64xf32>
    %c0_12 = arith.constant 0 : index
    %c0_13 = arith.constant 0 : index
    %c0_14 = arith.constant 0 : index
    %c0_15 = arith.constant 0 : index
    %12 = vector.load %arg6[%c0_12, %c0_13, %c0_14, %c0_15] : memref<1x1x1x64xf32, #tpu.memory_space<vmem>>, vector<1x1x1x64xf32>
    %13 = vector.shape_cast %12 : vector<1x1x1x64xf32> to vector<1x1x64xf32>
    %14 = vector.shape_cast %11 : vector<1x1x64xf32> to vector<1x1x1x64xf32>
    tpu.vector_store %arg6[%c0_12, %c0_13, %c0_14, %c0_15], %14 {strides = array<i32>} : memref<1x1x1x64xf32, #tpu.memory_space<vmem>>, vector<1x1x1x64xf32>,
    %cst_16 = arith.constant dense<0xFF800000> : vector<1x64xf32>
    %15 = vector.multi_reduction <maximumf>, %8, %cst_16 [1] : vector<1x64x64xf32> to vector<1x64xf32>
    %16 = vector.shape_cast %15 : vector<1x64xf32> to vector<1x1x64xf32>
    %c0_17 = arith.constant 0 : index
    %c0_18 = arith.constant 0 : index
    %c0_19 = arith.constant 0 : index
    %c0_20 = arith.constant 0 : index
    %17 = vector.load %arg7[%c0_17, %c0_18, %c0_19, %c0_20] : memref<1x1x1x64xf32, #tpu.memory_space<vmem>>, vector<1x1x1x64xf32>
    %18 = vector.shape_cast %17 : vector<1x1x1x64xf32> to vector<1x1x64xf32>
    %19 = vector.shape_cast %16 : vector<1x1x64xf32> to vector<1x1x1x64xf32>
    tpu.vector_store %arg7[%c0_17, %c0_18, %c0_19, %c0_20], %19 {strides = array<i32>} : memref<1x1x1x64xf32, #tpu.memory_space<vmem>>, vector<1x1x1x64xf32>,
    %20 = arith.mulf %8, %8 : vector<1x64x64xf32>
    %cst_21 = arith.constant dense<0.000000e+00> : vector<1x64xf32>
    %21 = vector.multi_reduction <add>, %20, %cst_21 [1] : vector<1x64x64xf32> to vector<1x64xf32>
    %22 = vector.shape_cast %21 : vector<1x64xf32> to vector<1x1x64xf32>
    %c0_22 = arith.constant 0 : index
    %c0_23 = arith.constant 0 : index
    %c0_24 = arith.constant 0 : index
    %c0_25 = arith.constant 0 : index
    %23 = vector.load %arg8[%c0_22, %c0_23, %c0_24, %c0_25] : memref<1x1x1x64xf32, #tpu.memory_space<vmem>>, vector<1x1x1x64xf32>
    %24 = vector.shape_cast %23 : vector<1x1x1x64xf32> to vector<1x1x64xf32>
    %25 = vector.shape_cast %22 : vector<1x1x64xf32> to vector<1x1x1x64xf32>
    tpu.vector_store %arg8[%c0_22, %c0_23, %c0_24, %c0_25], %25 {strides = array<i32>} : memref<1x1x1x64xf32, #tpu.memory_space<vmem>>, vector<1x1x1x64xf32>,
    return
  }
  func.func @transform_0(%arg0: i32, %arg1: i32) -> (i32, i32, i32) {
    %c0_i32 = arith.constant 0 : i32
    %c0_i32_0 = arith.constant 0 : i32
    return %arg0, %arg1, %c0_i32 : i32, i32, i32
  }
  func.func @transform_1(%arg0: i32, %arg1: i32) -> (i32, i32, i32) {
    %c0_i32 = arith.constant 0 : i32
    %c0_i32_0 = arith.constant 0 : i32
    %c0_i32_1 = arith.constant 0 : i32
    %c0_i32_2 = arith.constant 0 : i32
    return %c0_i32, %c0_i32_0, %c0_i32_1 : i32, i32, i32
  }
  func.func @transform_2(%arg0: i32, %arg1: i32) -> (i32, i32, i32) {
    %c0_i32 = arith.constant 0 : i32
    %c0_i32_0 = arith.constant 0 : i32
    %c0_i32_1 = arith.constant 0 : i32
    %c0_i32_2 = arith.constant 0 : i32
    return %c0_i32, %c0_i32_0, %c0_i32_1 : i32, i32, i32
  }
  func.func @transform_3(%arg0: i32, %arg1: i32) -> (i32, i32, i32) {
    %c0_i32 = arith.constant 0 : i32
    %c0_i32_0 = arith.constant 0 : i32
    return %arg0, %arg1, %c0_i32 : i32, i32, i32
  }
  func.func @transform_4(%arg0: i32, %arg1: i32) -> (i32, i32, i32, i32) {
    %c0_i32 = arith.constant 0 : i32
    %c0_i32_0 = arith.constant 0 : i32
    %c0_i32_1 = arith.constant 0 : i32
    return %arg0, %arg1, %c0_i32, %c0_i32_0 : i32, i32, i32, i32
  }
  func.func @transform_5(%arg0: i32, %arg1: i32) -> (i32, i32, i32, i32) {
    %c0_i32 = arith.constant 0 : i32
    %c0_i32_0 = arith.constant 0 : i32
    %c0_i32_1 = arith.constant 0 : i32
    return %arg0, %arg1, %c0_i32, %c0_i32_0 : i32, i32, i32, i32
  }
  func.func @transform_6(%arg0: i32, %arg1: i32) -> (i32, i32, i32, i32) {
    %c0_i32 = arith.constant 0 : i32
    %c0_i32_0 = arith.constant 0 : i32
    %c0_i32_1 = arith.constant 0 : i32
    return %arg0, %arg1, %c0_i32, %c0_i32_0 : i32, i32, i32, i32
  }
}

module attributes {stable_mosaic.version = 11 : i64} {
  func.func @ca_gate_kernel(%arg0: memref<2x64xf32, #tpu.memory_space<vmem>>, %arg1: memref<2x64xf32, #tpu.memory_space<vmem>>, %arg2: memref<64x4xf32, #tpu.memory_space<vmem>>, %arg3: memref<4x64xf32, #tpu.memory_space<vmem>>, %arg4: memref<2x64xf32, #tpu.memory_space<vmem>>) attributes {dimension_semantics = [], scalar_prefetch = 0 : i64, scratch_operands = 0 : i64, tpu.core_type = #tpu.core_type<tc>} {
    %c0 = arith.constant 0 : index
    %c0_0 = arith.constant 0 : index
    %0 = vector.load %arg0[%c0, %c0_0] : memref<2x64xf32, #tpu.memory_space<vmem>>, vector<2x64xf32>
    %c0_1 = arith.constant 0 : index
    %c0_2 = arith.constant 0 : index
    %1 = vector.load %arg2[%c0_1, %c0_2] : memref<64x4xf32, #tpu.memory_space<vmem>>, vector<64x4xf32>
    %cst = arith.constant dense<0.000000e+00> : vector<2x4xf32>
    %2 = tpu.matmul %0, %1, %cst {dimension_numbers = #tpu.dot_dimension_numbers<[1], [0], [0], [1], [0, 0, 1, 1], [], []>} : vector<2x64xf32>, vector<64x4xf32>, vector<2x4xf32> -> vector<2x4xf32>
    %cst_3 = arith.constant 0.000000e+00 : f32
    %3 = vector.broadcast %cst_3 : f32 to vector<2x4xf32>
    %4 = arith.maximumf %2, %3 : vector<2x4xf32>
    %c0_4 = arith.constant 0 : index
    %c0_5 = arith.constant 0 : index
    %5 = vector.load %arg3[%c0_4, %c0_5] : memref<4x64xf32, #tpu.memory_space<vmem>>, vector<4x64xf32>
    %cst_6 = arith.constant dense<0.000000e+00> : vector<2x64xf32>
    %6 = tpu.matmul %4, %5, %cst_6 {dimension_numbers = #tpu.dot_dimension_numbers<[1], [0], [0], [1], [0, 0, 1, 1], [], []>} : vector<2x4xf32>, vector<4x64xf32>, vector<2x64xf32> -> vector<2x64xf32>
    %c0_7 = arith.constant 0 : index
    %c0_8 = arith.constant 0 : index
    %7 = vector.load %arg1[%c0_7, %c0_8] : memref<2x64xf32, #tpu.memory_space<vmem>>, vector<2x64xf32>
    %c0_9 = arith.constant 0 : index
    %c0_10 = arith.constant 0 : index
    %8 = vector.load %arg2[%c0_9, %c0_10] : memref<64x4xf32, #tpu.memory_space<vmem>>, vector<64x4xf32>
    %cst_11 = arith.constant dense<0.000000e+00> : vector<2x4xf32>
    %9 = tpu.matmul %7, %8, %cst_11 {dimension_numbers = #tpu.dot_dimension_numbers<[1], [0], [0], [1], [0, 0, 1, 1], [], []>} : vector<2x64xf32>, vector<64x4xf32>, vector<2x4xf32> -> vector<2x4xf32>
    %cst_12 = arith.constant 0.000000e+00 : f32
    %10 = vector.broadcast %cst_12 : f32 to vector<2x4xf32>
    %11 = arith.maximumf %9, %10 : vector<2x4xf32>
    %c0_13 = arith.constant 0 : index
    %c0_14 = arith.constant 0 : index
    %12 = vector.load %arg3[%c0_13, %c0_14] : memref<4x64xf32, #tpu.memory_space<vmem>>, vector<4x64xf32>
    %cst_15 = arith.constant dense<0.000000e+00> : vector<2x64xf32>
    %13 = tpu.matmul %11, %12, %cst_15 {dimension_numbers = #tpu.dot_dimension_numbers<[1], [0], [0], [1], [0, 0, 1, 1], [], []>} : vector<2x4xf32>, vector<4x64xf32>, vector<2x64xf32> -> vector<2x64xf32>
    %14 = arith.addf %6, %13 : vector<2x64xf32>
    %15 = arith.negf %14 : vector<2x64xf32>
    %16 = math.exp %15 : vector<2x64xf32>
    %cst_16 = arith.constant 1.000000e+00 : f32
    %17 = vector.broadcast %cst_16 : f32 to vector<2x64xf32>
    %18 = arith.addf %17, %16 : vector<2x64xf32>
    %19 = arith.divf %17, %18 : vector<2x64xf32>
    %c0_17 = arith.constant 0 : index
    %c0_18 = arith.constant 0 : index
    %20 = vector.load %arg4[%c0_17, %c0_18] : memref<2x64xf32, #tpu.memory_space<vmem>>, vector<2x64xf32>
    tpu.vector_store %arg4[%c0_17, %c0_18], %19 {strides = array<i32>} : memref<2x64xf32, #tpu.memory_space<vmem>>, vector<2x64xf32>,
    return
  }
}

module attributes {stable_mosaic.version = 11 : i64} {
  func.func @gate_bn2_samap_kernel(%arg0: i32, %arg1: i32, %arg2: memref<1x64x64xf32, #tpu.memory_space<vmem>>, %arg3: memref<1x1x64xf32, #tpu.memory_space<vmem>>, %arg4: memref<1x1x64xf32, #tpu.memory_space<vmem>>, %arg5: memref<1x1x64xf32, #tpu.memory_space<vmem>>, %arg6: memref<1x64x64xf32, #tpu.memory_space<vmem>>, %arg7: memref<1x64x2xf32, #tpu.memory_space<vmem>>) attributes {dimension_semantics = [#tpu.dimension_semantics<parallel>, #tpu.dimension_semantics<parallel>], iteration_bounds = array<i64: 2, 1>, scalar_prefetch = 0 : i64, scratch_operands = 0 : i64, tpu.core_type = #tpu.core_type<tc>, window_params = [{transform_indices = @transform_0, window_bounds = array<i64: 1, 64, 64>}, {transform_indices = @transform_1, window_bounds = array<i64: 1, 1, 64>}, {pipeline_mode = #tpu.pipeline_mode<synchronous>, transform_indices = @transform_2, window_bounds = array<i64: 1, 1, 64>}, {pipeline_mode = #tpu.pipeline_mode<synchronous>, transform_indices = @transform_3, window_bounds = array<i64: 1, 1, 64>}, {transform_indices = @transform_4, window_bounds = array<i64: 1, 64, 64>}, {transform_indices = @transform_5, window_bounds = array<i64: 1, 64, 2>}]} {
    %c0 = arith.constant 0 : index
    %c0_0 = arith.constant 0 : index
    %c0_1 = arith.constant 0 : index
    %0 = vector.load %arg2[%c0, %c0_0, %c0_1] : memref<1x64x64xf32, #tpu.memory_space<vmem>>, vector<1x64x64xf32>
    %c0_2 = arith.constant 0 : index
    %c0_3 = arith.constant 0 : index
    %c0_4 = arith.constant 0 : index
    %1 = vector.load %arg3[%c0_2, %c0_3, %c0_4] : memref<1x1x64xf32, #tpu.memory_space<vmem>>, vector<1x1x64xf32>
    %2 = vector.broadcast %1 : vector<1x1x64xf32> to vector<1x64x64xf32>
    %3 = arith.mulf %0, %2 : vector<1x64x64xf32>
    %c0_5 = arith.constant 0 : index
    %c0_6 = arith.constant 0 : index
    %c0_7 = arith.constant 0 : index
    %4 = vector.load %arg4[%c0_5, %c0_6, %c0_7] : memref<1x1x64xf32, #tpu.memory_space<vmem>>, vector<1x1x64xf32>
    %5 = vector.broadcast %4 : vector<1x1x64xf32> to vector<1x64x64xf32>
    %6 = arith.mulf %3, %5 : vector<1x64x64xf32>
    %c0_8 = arith.constant 0 : index
    %c0_9 = arith.constant 0 : index
    %c0_10 = arith.constant 0 : index
    %7 = vector.load %arg5[%c0_8, %c0_9, %c0_10] : memref<1x1x64xf32, #tpu.memory_space<vmem>>, vector<1x1x64xf32>
    %8 = vector.broadcast %7 : vector<1x1x64xf32> to vector<1x64x64xf32>
    %9 = arith.addf %6, %8 : vector<1x64x64xf32>
    %c0_11 = arith.constant 0 : index
    %c0_12 = arith.constant 0 : index
    %c0_13 = arith.constant 0 : index
    %10 = vector.load %arg6[%c0_11, %c0_12, %c0_13] : memref<1x64x64xf32, #tpu.memory_space<vmem>>, vector<1x64x64xf32>
    tpu.vector_store %arg6[%c0_11, %c0_12, %c0_13], %9 {strides = array<i32>} : memref<1x64x64xf32, #tpu.memory_space<vmem>>, vector<1x64x64xf32>,
    %cst = arith.constant dense<0.000000e+00> : vector<1x64xf32>
    %11 = vector.multi_reduction <add>, %9, %cst [2] : vector<1x64x64xf32> to vector<1x64xf32>
    %12 = vector.shape_cast %11 : vector<1x64xf32> to vector<1x64x1xf32>
    %cst_14 = arith.constant 6.400000e+01 : f32
    %13 = vector.broadcast %cst_14 : f32 to vector<1x64x1xf32>
    %14 = arith.divf %12, %13 : vector<1x64x1xf32>
    %cst_15 = arith.constant dense<0xFF800000> : vector<1x64xf32>
    %15 = vector.multi_reduction <maximumf>, %9, %cst_15 [2] : vector<1x64x64xf32> to vector<1x64xf32>
    %16 = vector.shape_cast %15 : vector<1x64xf32> to vector<1x64x1xf32>
    %17 = tpu.concatenate %14, %16 in 2 : vector<1x64x1xf32>, vector<1x64x1xf32> -> vector<1x64x2xf32>
    %c0_16 = arith.constant 0 : index
    %c0_17 = arith.constant 0 : index
    %c0_18 = arith.constant 0 : index
    %18 = vector.load %arg7[%c0_16, %c0_17, %c0_18] : memref<1x64x2xf32, #tpu.memory_space<vmem>>, vector<1x64x2xf32>
    tpu.vector_store %arg7[%c0_16, %c0_17, %c0_18], %17 {strides = array<i32>} : memref<1x64x2xf32, #tpu.memory_space<vmem>>, vector<1x64x2xf32>,
    return
  }
  func.func @transform_0(%arg0: i32, %arg1: i32) -> (i32, i32, i32) {
    %c0_i32 = arith.constant 0 : i32
    %c0_i32_0 = arith.constant 0 : i32
    return %arg0, %arg1, %c0_i32 : i32, i32, i32
  }
  func.func @transform_1(%arg0: i32, %arg1: i32) -> (i32, i32, i32) {
    %c0_i32 = arith.constant 0 : i32
    %c0_i32_0 = arith.constant 0 : i32
    %c0_i32_1 = arith.constant 0 : i32
    return %arg0, %c0_i32, %c0_i32_0 : i32, i32, i32
  }
  func.func @transform_2(%arg0: i32, %arg1: i32) -> (i32, i32, i32) {
    %c0_i32 = arith.constant 0 : i32
    %c0_i32_0 = arith.constant 0 : i32
    %c0_i32_1 = arith.constant 0 : i32
    %c0_i32_2 = arith.constant 0 : i32
    return %c0_i32, %c0_i32_0, %c0_i32_1 : i32, i32, i32
  }
  func.func @transform_3(%arg0: i32, %arg1: i32) -> (i32, i32, i32) {
    %c0_i32 = arith.constant 0 : i32
    %c0_i32_0 = arith.constant 0 : i32
    %c0_i32_1 = arith.constant 0 : i32
    %c0_i32_2 = arith.constant 0 : i32
    return %c0_i32, %c0_i32_0, %c0_i32_1 : i32, i32, i32
  }
  func.func @transform_4(%arg0: i32, %arg1: i32) -> (i32, i32, i32) {
    %c0_i32 = arith.constant 0 : i32
    %c0_i32_0 = arith.constant 0 : i32
    return %arg0, %arg1, %c0_i32 : i32, i32, i32
  }
  func.func @transform_5(%arg0: i32, %arg1: i32) -> (i32, i32, i32) {
    %c0_i32 = arith.constant 0 : i32
    %c0_i32_0 = arith.constant 0 : i32
    return %arg0, %arg1, %c0_i32 : i32, i32, i32
  }
}

module attributes {stable_mosaic.version = 11 : i64} {
  func.func @smul_stats_kernel(%arg0: i32, %arg1: memref<128x64xf32, #tpu.memory_space<vmem>>, %arg2: memref<128x1xf32, #tpu.memory_space<vmem>>, %arg3: memref<1x1x64xf32, #tpu.memory_space<vmem>>, %arg4: memref<1x1x64xf32, #tpu.memory_space<vmem>>) attributes {dimension_semantics = [#tpu.dimension_semantics<parallel>], iteration_bounds = array<i64: 1>, scalar_prefetch = 0 : i64, scratch_operands = 0 : i64, tpu.core_type = #tpu.core_type<tc>, window_params = [{transform_indices = @transform_0, window_bounds = array<i64: 128, 64>}, {transform_indices = @transform_1, window_bounds = array<i64: 128, 1>}, {transform_indices = @transform_2, window_bounds = array<i64: 1, 1, 64>}, {transform_indices = @transform_3, window_bounds = array<i64: 1, 1, 64>}]} {
    %c0 = arith.constant 0 : index
    %c0_0 = arith.constant 0 : index
    %0 = vector.load %arg1[%c0, %c0_0] : memref<128x64xf32, #tpu.memory_space<vmem>>, vector<128x64xf32>
    %c0_1 = arith.constant 0 : index
    %c0_2 = arith.constant 0 : index
    %1 = vector.load %arg2[%c0_1, %c0_2] : memref<128x1xf32, #tpu.memory_space<vmem>>, vector<128x1xf32>
    %2 = vector.broadcast %1 : vector<128x1xf32> to vector<128x64xf32>
    %3 = arith.mulf %0, %2 : vector<128x64xf32>
    %cst = arith.constant dense<0.000000e+00> : vector<64xf32>
    %4 = vector.multi_reduction <add>, %3, %cst [0] : vector<128x64xf32> to vector<64xf32>
    %5 = vector.shape_cast %4 : vector<64xf32> to vector<1x64xf32>
    %c0_3 = arith.constant 0 : index
    %c0_4 = arith.constant 0 : index
    %c0_5 = arith.constant 0 : index
    %6 = vector.load %arg3[%c0_3, %c0_4, %c0_5] : memref<1x1x64xf32, #tpu.memory_space<vmem>>, vector<1x1x64xf32>
    %7 = vector.shape_cast %6 : vector<1x1x64xf32> to vector<1x64xf32>
    %8 = vector.shape_cast %5 : vector<1x64xf32> to vector<1x1x64xf32>
    tpu.vector_store %arg3[%c0_3, %c0_4, %c0_5], %8 {strides = array<i32>} : memref<1x1x64xf32, #tpu.memory_space<vmem>>, vector<1x1x64xf32>,
    %9 = arith.mulf %3, %3 : vector<128x64xf32>
    %cst_6 = arith.constant dense<0.000000e+00> : vector<64xf32>
    %10 = vector.multi_reduction <add>, %9, %cst_6 [0] : vector<128x64xf32> to vector<64xf32>
    %11 = vector.shape_cast %10 : vector<64xf32> to vector<1x64xf32>
    %c0_7 = arith.constant 0 : index
    %c0_8 = arith.constant 0 : index
    %c0_9 = arith.constant 0 : index
    %12 = vector.load %arg4[%c0_7, %c0_8, %c0_9] : memref<1x1x64xf32, #tpu.memory_space<vmem>>, vector<1x1x64xf32>
    %13 = vector.shape_cast %12 : vector<1x1x64xf32> to vector<1x64xf32>
    %14 = vector.shape_cast %11 : vector<1x64xf32> to vector<1x1x64xf32>
    tpu.vector_store %arg4[%c0_7, %c0_8, %c0_9], %14 {strides = array<i32>} : memref<1x1x64xf32, #tpu.memory_space<vmem>>, vector<1x1x64xf32>,
    return
  }
  func.func @transform_0(%arg0: i32) -> (i32, i32) {
    %c0_i32 = arith.constant 0 : i32
    %c0_i32_0 = arith.constant 0 : i32
    return %arg0, %c0_i32 : i32, i32
  }
  func.func @transform_1(%arg0: i32) -> (i32, i32) {
    %c0_i32 = arith.constant 0 : i32
    %c0_i32_0 = arith.constant 0 : i32
    return %arg0, %c0_i32 : i32, i32
  }
  func.func @transform_2(%arg0: i32) -> (i32, i32, i32) {
    %c0_i32 = arith.constant 0 : i32
    %c0_i32_0 = arith.constant 0 : i32
    %c0_i32_1 = arith.constant 0 : i32
    return %arg0, %c0_i32, %c0_i32_0 : i32, i32, i32
  }
  func.func @transform_3(%arg0: i32) -> (i32, i32, i32) {
    %c0_i32 = arith.constant 0 : i32
    %c0_i32_0 = arith.constant 0 : i32
    %c0_i32_1 = arith.constant 0 : i32
    return %arg0, %c0_i32, %c0_i32_0 : i32, i32, i32
  }
}

module attributes {stable_mosaic.version = 11 : i64} {
  func.func @sa_conv_kernel(%arg0: i32, %arg1: memref<1x2x7x14x8xf32, #tpu.memory_space<vmem>>, %arg2: memref<98xf32, #tpu.memory_space<smem>>, %arg3: memref<1x8x8xf32, #tpu.memory_space<vmem>>) attributes {dimension_semantics = [#tpu.dimension_semantics<parallel>], iteration_bounds = array<i64: 2>, scalar_prefetch = 0 : i64, scratch_operands = 0 : i64, tpu.core_type = #tpu.core_type<tc>, window_params = [{transform_indices = @transform_0, window_bounds = array<i64: 1, 2, 7, 14, 8>}, {transform_indices = @transform_1, window_bounds = array<i64: 98>}, {transform_indices = @transform_2, window_bounds = array<i64: 1, 8, 8>}]} {
    %cst = arith.constant 0.000000e+00 : f32
    %0 = vector.broadcast %cst : f32 to vector<8x8xf32>
    %c0 = arith.constant 0 : index
    %c0_0 = arith.constant 0 : index
    %c0_1 = arith.constant 0 : index
    %c0_2 = arith.constant 0 : index
    %c0_3 = arith.constant 0 : index
    %1 = vector.load %arg1[%c0, %c0_0, %c0_1, %c0_2, %c0_3] : memref<1x2x7x14x8xf32, #tpu.memory_space<vmem>>, vector<1x1x1x8x8xf32>
    %2 = vector.shape_cast %1 : vector<1x1x1x8x8xf32> to vector<8x8xf32>
    %c0_4 = arith.constant 0 : index
    %3 = memref.load %arg2[%c0_4] : memref<98xf32, #tpu.memory_space<smem>>
    %4 = vector.broadcast %3 : f32 to vector<8x8xf32>
    %5 = arith.mulf %2, %4 : vector<8x8xf32>
    %6 = arith.addf %0, %5 : vector<8x8xf32>
    %c0_5 = arith.constant 0 : index
    %c0_6 = arith.constant 0 : index
    %c1 = arith.constant 1 : index
    %c0_7 = arith.constant 0 : index
    %c0_8 = arith.constant 0 : index
    %7 = vector.load %arg1[%c0_5, %c0_6, %c1, %c0_7, %c0_8] : memref<1x2x7x14x8xf32, #tpu.memory_space<vmem>>, vector<1x1x1x8x8xf32>
    %8 = vector.shape_cast %7 : vector<1x1x1x8x8xf32> to vector<8x8xf32>
    %c1_9 = arith.constant 1 : index
    %9 = memref.load %arg2[%c1_9] : memref<98xf32, #tpu.memory_space<smem>>
    %10 = vector.broadcast %9 : f32 to vector<8x8xf32>
    %11 = arith.mulf %8, %10 : vector<8x8xf32>
    %12 = arith.addf %6, %11 : vector<8x8xf32>
    %c0_10 = arith.constant 0 : index
    %c0_11 = arith.constant 0 : index
    %c2 = arith.constant 2 : index
    %c0_12 = arith.constant 0 : index
    %c0_13 = arith.constant 0 : index
    %13 = vector.load %arg1[%c0_10, %c0_11, %c2, %c0_12, %c0_13] : memref<1x2x7x14x8xf32, #tpu.memory_space<vmem>>, vector<1x1x1x8x8xf32>
    %14 = vector.shape_cast %13 : vector<1x1x1x8x8xf32> to vector<8x8xf32>
    %c2_14 = arith.constant 2 : index
    %15 = memref.load %arg2[%c2_14] : memref<98xf32, #tpu.memory_space<smem>>
    %16 = vector.broadcast %15 : f32 to vector<8x8xf32>
    %17 = arith.mulf %14, %16 : vector<8x8xf32>
    %18 = arith.addf %12, %17 : vector<8x8xf32>
    %c0_15 = arith.constant 0 : index
    %c0_16 = arith.constant 0 : index
    %c3 = arith.constant 3 : index
    %c0_17 = arith.constant 0 : index
    %c0_18 = arith.constant 0 : index
    %19 = vector.load %arg1[%c0_15, %c0_16, %c3, %c0_17, %c0_18] : memref<1x2x7x14x8xf32, #tpu.memory_space<vmem>>, vector<1x1x1x8x8xf32>
    %20 = vector.shape_cast %19 : vector<1x1x1x8x8xf32> to vector<8x8xf32>
    %c3_19 = arith.constant 3 : index
    %21 = memref.load %arg2[%c3_19] : memref<98xf32, #tpu.memory_space<smem>>
    %22 = vector.broadcast %21 : f32 to vector<8x8xf32>
    %23 = arith.mulf %20, %22 : vector<8x8xf32>
    %24 = arith.addf %18, %23 : vector<8x8xf32>
    %c0_20 = arith.constant 0 : index
    %c0_21 = arith.constant 0 : index
    %c4 = arith.constant 4 : index
    %c0_22 = arith.constant 0 : index
    %c0_23 = arith.constant 0 : index
    %25 = vector.load %arg1[%c0_20, %c0_21, %c4, %c0_22, %c0_23] : memref<1x2x7x14x8xf32, #tpu.memory_space<vmem>>, vector<1x1x1x8x8xf32>
    %26 = vector.shape_cast %25 : vector<1x1x1x8x8xf32> to vector<8x8xf32>
    %c4_24 = arith.constant 4 : index
    %27 = memref.load %arg2[%c4_24] : memref<98xf32, #tpu.memory_space<smem>>
    %28 = vector.broadcast %27 : f32 to vector<8x8xf32>
    %29 = arith.mulf %26, %28 : vector<8x8xf32>
    %30 = arith.addf %24, %29 : vector<8x8xf32>
    %c0_25 = arith.constant 0 : index
    %c0_26 = arith.constant 0 : index
    %c5 = arith.constant 5 : index
    %c0_27 = arith.constant 0 : index
    %c0_28 = arith.constant 0 : index
    %31 = vector.load %arg1[%c0_25, %c0_26, %c5, %c0_27, %c0_28] : memref<1x2x7x14x8xf32, #tpu.memory_space<vmem>>, vector<1x1x1x8x8xf32>
    %32 = vector.shape_cast %31 : vector<1x1x1x8x8xf32> to vector<8x8xf32>
    %c5_29 = arith.constant 5 : index
    %33 = memref.load %arg2[%c5_29] : memref<98xf32, #tpu.memory_space<smem>>
    %34 = vector.broadcast %33 : f32 to vector<8x8xf32>
    %35 = arith.mulf %32, %34 : vector<8x8xf32>
    %36 = arith.addf %30, %35 : vector<8x8xf32>
    %c0_30 = arith.constant 0 : index
    %c0_31 = arith.constant 0 : index
    %c6 = arith.constant 6 : index
    %c0_32 = arith.constant 0 : index
    %c0_33 = arith.constant 0 : index
    %37 = vector.load %arg1[%c0_30, %c0_31, %c6, %c0_32, %c0_33] : memref<1x2x7x14x8xf32, #tpu.memory_space<vmem>>, vector<1x1x1x8x8xf32>
    %38 = vector.shape_cast %37 : vector<1x1x1x8x8xf32> to vector<8x8xf32>
    %c6_34 = arith.constant 6 : index
    %39 = memref.load %arg2[%c6_34] : memref<98xf32, #tpu.memory_space<smem>>
    %40 = vector.broadcast %39 : f32 to vector<8x8xf32>
    %41 = arith.mulf %38, %40 : vector<8x8xf32>
    %42 = arith.addf %36, %41 : vector<8x8xf32>
    %c0_35 = arith.constant 0 : index
    %c0_36 = arith.constant 0 : index
    %c0_37 = arith.constant 0 : index
    %c1_38 = arith.constant 1 : index
    %c0_39 = arith.constant 0 : index
    %43 = vector.load %arg1[%c0_35, %c0_36, %c0_37, %c1_38, %c0_39] : memref<1x2x7x14x8xf32, #tpu.memory_space<vmem>>, vector<1x1x1x8x8xf32>
    %44 = vector.shape_cast %43 : vector<1x1x1x8x8xf32> to vector<8x8xf32>
    %c7 = arith.constant 7 : index
    %45 = memref.load %arg2[%c7] : memref<98xf32, #tpu.memory_space<smem>>
    %46 = vector.broadcast %45 : f32 to vector<8x8xf32>
    %47 = arith.mulf %44, %46 : vector<8x8xf32>
    %48 = arith.addf %42, %47 : vector<8x8xf32>
    %c0_40 = arith.constant 0 : index
    %c0_41 = arith.constant 0 : index
    %c1_42 = arith.constant 1 : index
    %c1_43 = arith.constant 1 : index
    %c0_44 = arith.constant 0 : index
    %49 = vector.load %arg1[%c0_40, %c0_41, %c1_42, %c1_43, %c0_44] : memref<1x2x7x14x8xf32, #tpu.memory_space<vmem>>, vector<1x1x1x8x8xf32>
    %50 = vector.shape_cast %49 : vector<1x1x1x8x8xf32> to vector<8x8xf32>
    %c8 = arith.constant 8 : index
    %51 = memref.load %arg2[%c8] : memref<98xf32, #tpu.memory_space<smem>>
    %52 = vector.broadcast %51 : f32 to vector<8x8xf32>
    %53 = arith.mulf %50, %52 : vector<8x8xf32>
    %54 = arith.addf %48, %53 : vector<8x8xf32>
    %c0_45 = arith.constant 0 : index
    %c0_46 = arith.constant 0 : index
    %c2_47 = arith.constant 2 : index
    %c1_48 = arith.constant 1 : index
    %c0_49 = arith.constant 0 : index
    %55 = vector.load %arg1[%c0_45, %c0_46, %c2_47, %c1_48, %c0_49] : memref<1x2x7x14x8xf32, #tpu.memory_space<vmem>>, vector<1x1x1x8x8xf32>
    %56 = vector.shape_cast %55 : vector<1x1x1x8x8xf32> to vector<8x8xf32>
    %c9 = arith.constant 9 : index
    %57 = memref.load %arg2[%c9] : memref<98xf32, #tpu.memory_space<smem>>
    %58 = vector.broadcast %57 : f32 to vector<8x8xf32>
    %59 = arith.mulf %56, %58 : vector<8x8xf32>
    %60 = arith.addf %54, %59 : vector<8x8xf32>
    %c0_50 = arith.constant 0 : index
    %c0_51 = arith.constant 0 : index
    %c3_52 = arith.constant 3 : index
    %c1_53 = arith.constant 1 : index
    %c0_54 = arith.constant 0 : index
    %61 = vector.load %arg1[%c0_50, %c0_51, %c3_52, %c1_53, %c0_54] : memref<1x2x7x14x8xf32, #tpu.memory_space<vmem>>, vector<1x1x1x8x8xf32>
    %62 = vector.shape_cast %61 : vector<1x1x1x8x8xf32> to vector<8x8xf32>
    %c10 = arith.constant 10 : index
    %63 = memref.load %arg2[%c10] : memref<98xf32, #tpu.memory_space<smem>>
    %64 = vector.broadcast %63 : f32 to vector<8x8xf32>
    %65 = arith.mulf %62, %64 : vector<8x8xf32>
    %66 = arith.addf %60, %65 : vector<8x8xf32>
    %c0_55 = arith.constant 0 : index
    %c0_56 = arith.constant 0 : index
    %c4_57 = arith.constant 4 : index
    %c1_58 = arith.constant 1 : index
    %c0_59 = arith.constant 0 : index
    %67 = vector.load %arg1[%c0_55, %c0_56, %c4_57, %c1_58, %c0_59] : memref<1x2x7x14x8xf32, #tpu.memory_space<vmem>>, vector<1x1x1x8x8xf32>
    %68 = vector.shape_cast %67 : vector<1x1x1x8x8xf32> to vector<8x8xf32>
    %c11 = arith.constant 11 : index
    %69 = memref.load %arg2[%c11] : memref<98xf32, #tpu.memory_space<smem>>
    %70 = vector.broadcast %69 : f32 to vector<8x8xf32>
    %71 = arith.mulf %68, %70 : vector<8x8xf32>
    %72 = arith.addf %66, %71 : vector<8x8xf32>
    %c0_60 = arith.constant 0 : index
    %c0_61 = arith.constant 0 : index
    %c5_62 = arith.constant 5 : index
    %c1_63 = arith.constant 1 : index
    %c0_64 = arith.constant 0 : index
    %73 = vector.load %arg1[%c0_60, %c0_61, %c5_62, %c1_63, %c0_64] : memref<1x2x7x14x8xf32, #tpu.memory_space<vmem>>, vector<1x1x1x8x8xf32>
    %74 = vector.shape_cast %73 : vector<1x1x1x8x8xf32> to vector<8x8xf32>
    %c12 = arith.constant 12 : index
    %75 = memref.load %arg2[%c12] : memref<98xf32, #tpu.memory_space<smem>>
    %76 = vector.broadcast %75 : f32 to vector<8x8xf32>
    %77 = arith.mulf %74, %76 : vector<8x8xf32>
    %78 = arith.addf %72, %77 : vector<8x8xf32>
    %c0_65 = arith.constant 0 : index
    %c0_66 = arith.constant 0 : index
    %c6_67 = arith.constant 6 : index
    %c1_68 = arith.constant 1 : index
    %c0_69 = arith.constant 0 : index
    %79 = vector.load %arg1[%c0_65, %c0_66, %c6_67, %c1_68, %c0_69] : memref<1x2x7x14x8xf32, #tpu.memory_space<vmem>>, vector<1x1x1x8x8xf32>
    %80 = vector.shape_cast %79 : vector<1x1x1x8x8xf32> to vector<8x8xf32>
    %c13 = arith.constant 13 : index
    %81 = memref.load %arg2[%c13] : memref<98xf32, #tpu.memory_space<smem>>
    %82 = vector.broadcast %81 : f32 to vector<8x8xf32>
    %83 = arith.mulf %80, %82 : vector<8x8xf32>
    %84 = arith.addf %78, %83 : vector<8x8xf32>
    %c0_70 = arith.constant 0 : index
    %c0_71 = arith.constant 0 : index
    %c0_72 = arith.constant 0 : index
    %c2_73 = arith.constant 2 : index
    %c0_74 = arith.constant 0 : index
    %85 = vector.load %arg1[%c0_70, %c0_71, %c0_72, %c2_73, %c0_74] : memref<1x2x7x14x8xf32, #tpu.memory_space<vmem>>, vector<1x1x1x8x8xf32>
    %86 = vector.shape_cast %85 : vector<1x1x1x8x8xf32> to vector<8x8xf32>
    %c14 = arith.constant 14 : index
    %87 = memref.load %arg2[%c14] : memref<98xf32, #tpu.memory_space<smem>>
    %88 = vector.broadcast %87 : f32 to vector<8x8xf32>
    %89 = arith.mulf %86, %88 : vector<8x8xf32>
    %90 = arith.addf %84, %89 : vector<8x8xf32>
    %c0_75 = arith.constant 0 : index
    %c0_76 = arith.constant 0 : index
    %c1_77 = arith.constant 1 : index
    %c2_78 = arith.constant 2 : index
    %c0_79 = arith.constant 0 : index
    %91 = vector.load %arg1[%c0_75, %c0_76, %c1_77, %c2_78, %c0_79] : memref<1x2x7x14x8xf32, #tpu.memory_space<vmem>>, vector<1x1x1x8x8xf32>
    %92 = vector.shape_cast %91 : vector<1x1x1x8x8xf32> to vector<8x8xf32>
    %c15 = arith.constant 15 : index
    %93 = memref.load %arg2[%c15] : memref<98xf32, #tpu.memory_space<smem>>
    %94 = vector.broadcast %93 : f32 to vector<8x8xf32>
    %95 = arith.mulf %92, %94 : vector<8x8xf32>
    %96 = arith.addf %90, %95 : vector<8x8xf32>
    %c0_80 = arith.constant 0 : index
    %c0_81 = arith.constant 0 : index
    %c2_82 = arith.constant 2 : index
    %c2_83 = arith.constant 2 : index
    %c0_84 = arith.constant 0 : index
    %97 = vector.load %arg1[%c0_80, %c0_81, %c2_82, %c2_83, %c0_84] : memref<1x2x7x14x8xf32, #tpu.memory_space<vmem>>, vector<1x1x1x8x8xf32>
    %98 = vector.shape_cast %97 : vector<1x1x1x8x8xf32> to vector<8x8xf32>
    %c16 = arith.constant 16 : index
    %99 = memref.load %arg2[%c16] : memref<98xf32, #tpu.memory_space<smem>>
    %100 = vector.broadcast %99 : f32 to vector<8x8xf32>
    %101 = arith.mulf %98, %100 : vector<8x8xf32>
    %102 = arith.addf %96, %101 : vector<8x8xf32>
    %c0_85 = arith.constant 0 : index
    %c0_86 = arith.constant 0 : index
    %c3_87 = arith.constant 3 : index
    %c2_88 = arith.constant 2 : index
    %c0_89 = arith.constant 0 : index
    %103 = vector.load %arg1[%c0_85, %c0_86, %c3_87, %c2_88, %c0_89] : memref<1x2x7x14x8xf32, #tpu.memory_space<vmem>>, vector<1x1x1x8x8xf32>
    %104 = vector.shape_cast %103 : vector<1x1x1x8x8xf32> to vector<8x8xf32>
    %c17 = arith.constant 17 : index
    %105 = memref.load %arg2[%c17] : memref<98xf32, #tpu.memory_space<smem>>
    %106 = vector.broadcast %105 : f32 to vector<8x8xf32>
    %107 = arith.mulf %104, %106 : vector<8x8xf32>
    %108 = arith.addf %102, %107 : vector<8x8xf32>
    %c0_90 = arith.constant 0 : index
    %c0_91 = arith.constant 0 : index
    %c4_92 = arith.constant 4 : index
    %c2_93 = arith.constant 2 : index
    %c0_94 = arith.constant 0 : index
    %109 = vector.load %arg1[%c0_90, %c0_91, %c4_92, %c2_93, %c0_94] : memref<1x2x7x14x8xf32, #tpu.memory_space<vmem>>, vector<1x1x1x8x8xf32>
    %110 = vector.shape_cast %109 : vector<1x1x1x8x8xf32> to vector<8x8xf32>
    %c18 = arith.constant 18 : index
    %111 = memref.load %arg2[%c18] : memref<98xf32, #tpu.memory_space<smem>>
    %112 = vector.broadcast %111 : f32 to vector<8x8xf32>
    %113 = arith.mulf %110, %112 : vector<8x8xf32>
    %114 = arith.addf %108, %113 : vector<8x8xf32>
    %c0_95 = arith.constant 0 : index
    %c0_96 = arith.constant 0 : index
    %c5_97 = arith.constant 5 : index
    %c2_98 = arith.constant 2 : index
    %c0_99 = arith.constant 0 : index
    %115 = vector.load %arg1[%c0_95, %c0_96, %c5_97, %c2_98, %c0_99] : memref<1x2x7x14x8xf32, #tpu.memory_space<vmem>>, vector<1x1x1x8x8xf32>
    %116 = vector.shape_cast %115 : vector<1x1x1x8x8xf32> to vector<8x8xf32>
    %c19 = arith.constant 19 : index
    %117 = memref.load %arg2[%c19] : memref<98xf32, #tpu.memory_space<smem>>
    %118 = vector.broadcast %117 : f32 to vector<8x8xf32>
    %119 = arith.mulf %116, %118 : vector<8x8xf32>
    %120 = arith.addf %114, %119 : vector<8x8xf32>
    %c0_100 = arith.constant 0 : index
    %c0_101 = arith.constant 0 : index
    %c6_102 = arith.constant 6 : index
    %c2_103 = arith.constant 2 : index
    %c0_104 = arith.constant 0 : index
    %121 = vector.load %arg1[%c0_100, %c0_101, %c6_102, %c2_103, %c0_104] : memref<1x2x7x14x8xf32, #tpu.memory_space<vmem>>, vector<1x1x1x8x8xf32>
    %122 = vector.shape_cast %121 : vector<1x1x1x8x8xf32> to vector<8x8xf32>
    %c20 = arith.constant 20 : index
    %123 = memref.load %arg2[%c20] : memref<98xf32, #tpu.memory_space<smem>>
    %124 = vector.broadcast %123 : f32 to vector<8x8xf32>
    %125 = arith.mulf %122, %124 : vector<8x8xf32>
    %126 = arith.addf %120, %125 : vector<8x8xf32>
    %c0_105 = arith.constant 0 : index
    %c0_106 = arith.constant 0 : index
    %c0_107 = arith.constant 0 : index
    %c3_108 = arith.constant 3 : index
    %c0_109 = arith.constant 0 : index
    %127 = vector.load %arg1[%c0_105, %c0_106, %c0_107, %c3_108, %c0_109] : memref<1x2x7x14x8xf32, #tpu.memory_space<vmem>>, vector<1x1x1x8x8xf32>
    %128 = vector.shape_cast %127 : vector<1x1x1x8x8xf32> to vector<8x8xf32>
    %c21 = arith.constant 21 : index
    %129 = memref.load %arg2[%c21] : memref<98xf32, #tpu.memory_space<smem>>
    %130 = vector.broadcast %129 : f32 to vector<8x8xf32>
    %131 = arith.mulf %128, %130 : vector<8x8xf32>
    %132 = arith.addf %126, %131 : vector<8x8xf32>
    %c0_110 = arith.constant 0 : index
    %c0_111 = arith.constant 0 : index
    %c1_112 = arith.constant 1 : index
    %c3_113 = arith.constant 3 : index
    %c0_114 = arith.constant 0 : index
    %133 = vector.load %arg1[%c0_110, %c0_111, %c1_112, %c3_113, %c0_114] : memref<1x2x7x14x8xf32, #tpu.memory_space<vmem>>, vector<1x1x1x8x8xf32>
    %134 = vector.shape_cast %133 : vector<1x1x1x8x8xf32> to vector<8x8xf32>
    %c22 = arith.constant 22 : index
    %135 = memref.load %arg2[%c22] : memref<98xf32, #tpu.memory_space<smem>>
    %136 = vector.broadcast %135 : f32 to vector<8x8xf32>
    %137 = arith.mulf %134, %136 : vector<8x8xf32>
    %138 = arith.addf %132, %137 : vector<8x8xf32>
    %c0_115 = arith.constant 0 : index
    %c0_116 = arith.constant 0 : index
    %c2_117 = arith.constant 2 : index
    %c3_118 = arith.constant 3 : index
    %c0_119 = arith.constant 0 : index
    %139 = vector.load %arg1[%c0_115, %c0_116, %c2_117, %c3_118, %c0_119] : memref<1x2x7x14x8xf32, #tpu.memory_space<vmem>>, vector<1x1x1x8x8xf32>
    %140 = vector.shape_cast %139 : vector<1x1x1x8x8xf32> to vector<8x8xf32>
    %c23 = arith.constant 23 : index
    %141 = memref.load %arg2[%c23] : memref<98xf32, #tpu.memory_space<smem>>
    %142 = vector.broadcast %141 : f32 to vector<8x8xf32>
    %143 = arith.mulf %140, %142 : vector<8x8xf32>
    %144 = arith.addf %138, %143 : vector<8x8xf32>
    %c0_120 = arith.constant 0 : index
    %c0_121 = arith.constant 0 : index
    %c3_122 = arith.constant 3 : index
    %c3_123 = arith.constant 3 : index
    %c0_124 = arith.constant 0 : index
    %145 = vector.load %arg1[%c0_120, %c0_121, %c3_122, %c3_123, %c0_124] : memref<1x2x7x14x8xf32, #tpu.memory_space<vmem>>, vector<1x1x1x8x8xf32>
    %146 = vector.shape_cast %145 : vector<1x1x1x8x8xf32> to vector<8x8xf32>
    %c24 = arith.constant 24 : index
    %147 = memref.load %arg2[%c24] : memref<98xf32, #tpu.memory_space<smem>>
    %148 = vector.broadcast %147 : f32 to vector<8x8xf32>
    %149 = arith.mulf %146, %148 : vector<8x8xf32>
    %150 = arith.addf %144, %149 : vector<8x8xf32>
    %c0_125 = arith.constant 0 : index
    %c0_126 = arith.constant 0 : index
    %c4_127 = arith.constant 4 : index
    %c3_128 = arith.constant 3 : index
    %c0_129 = arith.constant 0 : index
    %151 = vector.load %arg1[%c0_125, %c0_126, %c4_127, %c3_128, %c0_129] : memref<1x2x7x14x8xf32, #tpu.memory_space<vmem>>, vector<1x1x1x8x8xf32>
    %152 = vector.shape_cast %151 : vector<1x1x1x8x8xf32> to vector<8x8xf32>
    %c25 = arith.constant 25 : index
    %153 = memref.load %arg2[%c25] : memref<98xf32, #tpu.memory_space<smem>>
    %154 = vector.broadcast %153 : f32 to vector<8x8xf32>
    %155 = arith.mulf %152, %154 : vector<8x8xf32>
    %156 = arith.addf %150, %155 : vector<8x8xf32>
    %c0_130 = arith.constant 0 : index
    %c0_131 = arith.constant 0 : index
    %c5_132 = arith.constant 5 : index
    %c3_133 = arith.constant 3 : index
    %c0_134 = arith.constant 0 : index
    %157 = vector.load %arg1[%c0_130, %c0_131, %c5_132, %c3_133, %c0_134] : memref<1x2x7x14x8xf32, #tpu.memory_space<vmem>>, vector<1x1x1x8x8xf32>
    %158 = vector.shape_cast %157 : vector<1x1x1x8x8xf32> to vector<8x8xf32>
    %c26 = arith.constant 26 : index
    %159 = memref.load %arg2[%c26] : memref<98xf32, #tpu.memory_space<smem>>
    %160 = vector.broadcast %159 : f32 to vector<8x8xf32>
    %161 = arith.mulf %158, %160 : vector<8x8xf32>
    %162 = arith.addf %156, %161 : vector<8x8xf32>
    %c0_135 = arith.constant 0 : index
    %c0_136 = arith.constant 0 : index
    %c6_137 = arith.constant 6 : index
    %c3_138 = arith.constant 3 : index
    %c0_139 = arith.constant 0 : index
    %163 = vector.load %arg1[%c0_135, %c0_136, %c6_137, %c3_138, %c0_139] : memref<1x2x7x14x8xf32, #tpu.memory_space<vmem>>, vector<1x1x1x8x8xf32>
    %164 = vector.shape_cast %163 : vector<1x1x1x8x8xf32> to vector<8x8xf32>
    %c27 = arith.constant 27 : index
    %165 = memref.load %arg2[%c27] : memref<98xf32, #tpu.memory_space<smem>>
    %166 = vector.broadcast %165 : f32 to vector<8x8xf32>
    %167 = arith.mulf %164, %166 : vector<8x8xf32>
    %168 = arith.addf %162, %167 : vector<8x8xf32>
    %c0_140 = arith.constant 0 : index
    %c0_141 = arith.constant 0 : index
    %c0_142 = arith.constant 0 : index
    %c4_143 = arith.constant 4 : index
    %c0_144 = arith.constant 0 : index
    %169 = vector.load %arg1[%c0_140, %c0_141, %c0_142, %c4_143, %c0_144] : memref<1x2x7x14x8xf32, #tpu.memory_space<vmem>>, vector<1x1x1x8x8xf32>
    %170 = vector.shape_cast %169 : vector<1x1x1x8x8xf32> to vector<8x8xf32>
    %c28 = arith.constant 28 : index
    %171 = memref.load %arg2[%c28] : memref<98xf32, #tpu.memory_space<smem>>
    %172 = vector.broadcast %171 : f32 to vector<8x8xf32>
    %173 = arith.mulf %170, %172 : vector<8x8xf32>
    %174 = arith.addf %168, %173 : vector<8x8xf32>
    %c0_145 = arith.constant 0 : index
    %c0_146 = arith.constant 0 : index
    %c1_147 = arith.constant 1 : index
    %c4_148 = arith.constant 4 : index
    %c0_149 = arith.constant 0 : index
    %175 = vector.load %arg1[%c0_145, %c0_146, %c1_147, %c4_148, %c0_149] : memref<1x2x7x14x8xf32, #tpu.memory_space<vmem>>, vector<1x1x1x8x8xf32>
    %176 = vector.shape_cast %175 : vector<1x1x1x8x8xf32> to vector<8x8xf32>
    %c29 = arith.constant 29 : index
    %177 = memref.load %arg2[%c29] : memref<98xf32, #tpu.memory_space<smem>>
    %178 = vector.broadcast %177 : f32 to vector<8x8xf32>
    %179 = arith.mulf %176, %178 : vector<8x8xf32>
    %180 = arith.addf %174, %179 : vector<8x8xf32>
    %c0_150 = arith.constant 0 : index
    %c0_151 = arith.constant 0 : index
    %c2_152 = arith.constant 2 : index
    %c4_153 = arith.constant 4 : index
    %c0_154 = arith.constant 0 : index
    %181 = vector.load %arg1[%c0_150, %c0_151, %c2_152, %c4_153, %c0_154] : memref<1x2x7x14x8xf32, #tpu.memory_space<vmem>>, vector<1x1x1x8x8xf32>
    %182 = vector.shape_cast %181 : vector<1x1x1x8x8xf32> to vector<8x8xf32>
    %c30 = arith.constant 30 : index
    %183 = memref.load %arg2[%c30] : memref<98xf32, #tpu.memory_space<smem>>
    %184 = vector.broadcast %183 : f32 to vector<8x8xf32>
    %185 = arith.mulf %182, %184 : vector<8x8xf32>
    %186 = arith.addf %180, %185 : vector<8x8xf32>
    %c0_155 = arith.constant 0 : index
    %c0_156 = arith.constant 0 : index
    %c3_157 = arith.constant 3 : index
    %c4_158 = arith.constant 4 : index
    %c0_159 = arith.constant 0 : index
    %187 = vector.load %arg1[%c0_155, %c0_156, %c3_157, %c4_158, %c0_159] : memref<1x2x7x14x8xf32, #tpu.memory_space<vmem>>, vector<1x1x1x8x8xf32>
    %188 = vector.shape_cast %187 : vector<1x1x1x8x8xf32> to vector<8x8xf32>
    %c31 = arith.constant 31 : index
    %189 = memref.load %arg2[%c31] : memref<98xf32, #tpu.memory_space<smem>>
    %190 = vector.broadcast %189 : f32 to vector<8x8xf32>
    %191 = arith.mulf %188, %190 : vector<8x8xf32>
    %192 = arith.addf %186, %191 : vector<8x8xf32>
    %c0_160 = arith.constant 0 : index
    %c0_161 = arith.constant 0 : index
    %c4_162 = arith.constant 4 : index
    %c4_163 = arith.constant 4 : index
    %c0_164 = arith.constant 0 : index
    %193 = vector.load %arg1[%c0_160, %c0_161, %c4_162, %c4_163, %c0_164] : memref<1x2x7x14x8xf32, #tpu.memory_space<vmem>>, vector<1x1x1x8x8xf32>
    %194 = vector.shape_cast %193 : vector<1x1x1x8x8xf32> to vector<8x8xf32>
    %c32 = arith.constant 32 : index
    %195 = memref.load %arg2[%c32] : memref<98xf32, #tpu.memory_space<smem>>
    %196 = vector.broadcast %195 : f32 to vector<8x8xf32>
    %197 = arith.mulf %194, %196 : vector<8x8xf32>
    %198 = arith.addf %192, %197 : vector<8x8xf32>
    %c0_165 = arith.constant 0 : index
    %c0_166 = arith.constant 0 : index
    %c5_167 = arith.constant 5 : index
    %c4_168 = arith.constant 4 : index
    %c0_169 = arith.constant 0 : index
    %199 = vector.load %arg1[%c0_165, %c0_166, %c5_167, %c4_168, %c0_169] : memref<1x2x7x14x8xf32, #tpu.memory_space<vmem>>, vector<1x1x1x8x8xf32>
    %200 = vector.shape_cast %199 : vector<1x1x1x8x8xf32> to vector<8x8xf32>
    %c33 = arith.constant 33 : index
    %201 = memref.load %arg2[%c33] : memref<98xf32, #tpu.memory_space<smem>>
    %202 = vector.broadcast %201 : f32 to vector<8x8xf32>
    %203 = arith.mulf %200, %202 : vector<8x8xf32>
    %204 = arith.addf %198, %203 : vector<8x8xf32>
    %c0_170 = arith.constant 0 : index
    %c0_171 = arith.constant 0 : index
    %c6_172 = arith.constant 6 : index
    %c4_173 = arith.constant 4 : index
    %c0_174 = arith.constant 0 : index
    %205 = vector.load %arg1[%c0_170, %c0_171, %c6_172, %c4_173, %c0_174] : memref<1x2x7x14x8xf32, #tpu.memory_space<vmem>>, vector<1x1x1x8x8xf32>
    %206 = vector.shape_cast %205 : vector<1x1x1x8x8xf32> to vector<8x8xf32>
    %c34 = arith.constant 34 : index
    %207 = memref.load %arg2[%c34] : memref<98xf32, #tpu.memory_space<smem>>
    %208 = vector.broadcast %207 : f32 to vector<8x8xf32>
    %209 = arith.mulf %206, %208 : vector<8x8xf32>
    %210 = arith.addf %204, %209 : vector<8x8xf32>
    %c0_175 = arith.constant 0 : index
    %c0_176 = arith.constant 0 : index
    %c0_177 = arith.constant 0 : index
    %c5_178 = arith.constant 5 : index
    %c0_179 = arith.constant 0 : index
    %211 = vector.load %arg1[%c0_175, %c0_176, %c0_177, %c5_178, %c0_179] : memref<1x2x7x14x8xf32, #tpu.memory_space<vmem>>, vector<1x1x1x8x8xf32>
    %212 = vector.shape_cast %211 : vector<1x1x1x8x8xf32> to vector<8x8xf32>
    %c35 = arith.constant 35 : index
    %213 = memref.load %arg2[%c35] : memref<98xf32, #tpu.memory_space<smem>>
    %214 = vector.broadcast %213 : f32 to vector<8x8xf32>
    %215 = arith.mulf %212, %214 : vector<8x8xf32>
    %216 = arith.addf %210, %215 : vector<8x8xf32>
    %c0_180 = arith.constant 0 : index
    %c0_181 = arith.constant 0 : index
    %c1_182 = arith.constant 1 : index
    %c5_183 = arith.constant 5 : index
    %c0_184 = arith.constant 0 : index
    %217 = vector.load %arg1[%c0_180, %c0_181, %c1_182, %c5_183, %c0_184] : memref<1x2x7x14x8xf32, #tpu.memory_space<vmem>>, vector<1x1x1x8x8xf32>
    %218 = vector.shape_cast %217 : vector<1x1x1x8x8xf32> to vector<8x8xf32>
    %c36 = arith.constant 36 : index
    %219 = memref.load %arg2[%c36] : memref<98xf32, #tpu.memory_space<smem>>
    %220 = vector.broadcast %219 : f32 to vector<8x8xf32>
    %221 = arith.mulf %218, %220 : vector<8x8xf32>
    %222 = arith.addf %216, %221 : vector<8x8xf32>
    %c0_185 = arith.constant 0 : index
    %c0_186 = arith.constant 0 : index
    %c2_187 = arith.constant 2 : index
    %c5_188 = arith.constant 5 : index
    %c0_189 = arith.constant 0 : index
    %223 = vector.load %arg1[%c0_185, %c0_186, %c2_187, %c5_188, %c0_189] : memref<1x2x7x14x8xf32, #tpu.memory_space<vmem>>, vector<1x1x1x8x8xf32>
    %224 = vector.shape_cast %223 : vector<1x1x1x8x8xf32> to vector<8x8xf32>
    %c37 = arith.constant 37 : index
    %225 = memref.load %arg2[%c37] : memref<98xf32, #tpu.memory_space<smem>>
    %226 = vector.broadcast %225 : f32 to vector<8x8xf32>
    %227 = arith.mulf %224, %226 : vector<8x8xf32>
    %228 = arith.addf %222, %227 : vector<8x8xf32>
    %c0_190 = arith.constant 0 : index
    %c0_191 = arith.constant 0 : index
    %c3_192 = arith.constant 3 : index
    %c5_193 = arith.constant 5 : index
    %c0_194 = arith.constant 0 : index
    %229 = vector.load %arg1[%c0_190, %c0_191, %c3_192, %c5_193, %c0_194] : memref<1x2x7x14x8xf32, #tpu.memory_space<vmem>>, vector<1x1x1x8x8xf32>
    %230 = vector.shape_cast %229 : vector<1x1x1x8x8xf32> to vector<8x8xf32>
    %c38 = arith.constant 38 : index
    %231 = memref.load %arg2[%c38] : memref<98xf32, #tpu.memory_space<smem>>
    %232 = vector.broadcast %231 : f32 to vector<8x8xf32>
    %233 = arith.mulf %230, %232 : vector<8x8xf32>
    %234 = arith.addf %228, %233 : vector<8x8xf32>
    %c0_195 = arith.constant 0 : index
    %c0_196 = arith.constant 0 : index
    %c4_197 = arith.constant 4 : index
    %c5_198 = arith.constant 5 : index
    %c0_199 = arith.constant 0 : index
    %235 = vector.load %arg1[%c0_195, %c0_196, %c4_197, %c5_198, %c0_199] : memref<1x2x7x14x8xf32, #tpu.memory_space<vmem>>, vector<1x1x1x8x8xf32>
    %236 = vector.shape_cast %235 : vector<1x1x1x8x8xf32> to vector<8x8xf32>
    %c39 = arith.constant 39 : index
    %237 = memref.load %arg2[%c39] : memref<98xf32, #tpu.memory_space<smem>>
    %238 = vector.broadcast %237 : f32 to vector<8x8xf32>
    %239 = arith.mulf %236, %238 : vector<8x8xf32>
    %240 = arith.addf %234, %239 : vector<8x8xf32>
    %c0_200 = arith.constant 0 : index
    %c0_201 = arith.constant 0 : index
    %c5_202 = arith.constant 5 : index
    %c5_203 = arith.constant 5 : index
    %c0_204 = arith.constant 0 : index
    %241 = vector.load %arg1[%c0_200, %c0_201, %c5_202, %c5_203, %c0_204] : memref<1x2x7x14x8xf32, #tpu.memory_space<vmem>>, vector<1x1x1x8x8xf32>
    %242 = vector.shape_cast %241 : vector<1x1x1x8x8xf32> to vector<8x8xf32>
    %c40 = arith.constant 40 : index
    %243 = memref.load %arg2[%c40] : memref<98xf32, #tpu.memory_space<smem>>
    %244 = vector.broadcast %243 : f32 to vector<8x8xf32>
    %245 = arith.mulf %242, %244 : vector<8x8xf32>
    %246 = arith.addf %240, %245 : vector<8x8xf32>
    %c0_205 = arith.constant 0 : index
    %c0_206 = arith.constant 0 : index
    %c6_207 = arith.constant 6 : index
    %c5_208 = arith.constant 5 : index
    %c0_209 = arith.constant 0 : index
    %247 = vector.load %arg1[%c0_205, %c0_206, %c6_207, %c5_208, %c0_209] : memref<1x2x7x14x8xf32, #tpu.memory_space<vmem>>, vector<1x1x1x8x8xf32>
    %248 = vector.shape_cast %247 : vector<1x1x1x8x8xf32> to vector<8x8xf32>
    %c41 = arith.constant 41 : index
    %249 = memref.load %arg2[%c41] : memref<98xf32, #tpu.memory_space<smem>>
    %250 = vector.broadcast %249 : f32 to vector<8x8xf32>
    %251 = arith.mulf %248, %250 : vector<8x8xf32>
    %252 = arith.addf %246, %251 : vector<8x8xf32>
    %c0_210 = arith.constant 0 : index
    %c0_211 = arith.constant 0 : index
    %c0_212 = arith.constant 0 : index
    %c6_213 = arith.constant 6 : index
    %c0_214 = arith.constant 0 : index
    %253 = vector.load %arg1[%c0_210, %c0_211, %c0_212, %c6_213, %c0_214] : memref<1x2x7x14x8xf32, #tpu.memory_space<vmem>>, vector<1x1x1x8x8xf32>
    %254 = vector.shape_cast %253 : vector<1x1x1x8x8xf32> to vector<8x8xf32>
    %c42 = arith.constant 42 : index
    %255 = memref.load %arg2[%c42] : memref<98xf32, #tpu.memory_space<smem>>
    %256 = vector.broadcast %255 : f32 to vector<8x8xf32>
    %257 = arith.mulf %254, %256 : vector<8x8xf32>
    %258 = arith.addf %252, %257 : vector<8x8xf32>
    %c0_215 = arith.constant 0 : index
    %c0_216 = arith.constant 0 : index
    %c1_217 = arith.constant 1 : index
    %c6_218 = arith.constant 6 : index
    %c0_219 = arith.constant 0 : index
    %259 = vector.load %arg1[%c0_215, %c0_216, %c1_217, %c6_218, %c0_219] : memref<1x2x7x14x8xf32, #tpu.memory_space<vmem>>, vector<1x1x1x8x8xf32>
    %260 = vector.shape_cast %259 : vector<1x1x1x8x8xf32> to vector<8x8xf32>
    %c43 = arith.constant 43 : index
    %261 = memref.load %arg2[%c43] : memref<98xf32, #tpu.memory_space<smem>>
    %262 = vector.broadcast %261 : f32 to vector<8x8xf32>
    %263 = arith.mulf %260, %262 : vector<8x8xf32>
    %264 = arith.addf %258, %263 : vector<8x8xf32>
    %c0_220 = arith.constant 0 : index
    %c0_221 = arith.constant 0 : index
    %c2_222 = arith.constant 2 : index
    %c6_223 = arith.constant 6 : index
    %c0_224 = arith.constant 0 : index
    %265 = vector.load %arg1[%c0_220, %c0_221, %c2_222, %c6_223, %c0_224] : memref<1x2x7x14x8xf32, #tpu.memory_space<vmem>>, vector<1x1x1x8x8xf32>
    %266 = vector.shape_cast %265 : vector<1x1x1x8x8xf32> to vector<8x8xf32>
    %c44 = arith.constant 44 : index
    %267 = memref.load %arg2[%c44] : memref<98xf32, #tpu.memory_space<smem>>
    %268 = vector.broadcast %267 : f32 to vector<8x8xf32>
    %269 = arith.mulf %266, %268 : vector<8x8xf32>
    %270 = arith.addf %264, %269 : vector<8x8xf32>
    %c0_225 = arith.constant 0 : index
    %c0_226 = arith.constant 0 : index
    %c3_227 = arith.constant 3 : index
    %c6_228 = arith.constant 6 : index
    %c0_229 = arith.constant 0 : index
    %271 = vector.load %arg1[%c0_225, %c0_226, %c3_227, %c6_228, %c0_229] : memref<1x2x7x14x8xf32, #tpu.memory_space<vmem>>, vector<1x1x1x8x8xf32>
    %272 = vector.shape_cast %271 : vector<1x1x1x8x8xf32> to vector<8x8xf32>
    %c45 = arith.constant 45 : index
    %273 = memref.load %arg2[%c45] : memref<98xf32, #tpu.memory_space<smem>>
    %274 = vector.broadcast %273 : f32 to vector<8x8xf32>
    %275 = arith.mulf %272, %274 : vector<8x8xf32>
    %276 = arith.addf %270, %275 : vector<8x8xf32>
    %c0_230 = arith.constant 0 : index
    %c0_231 = arith.constant 0 : index
    %c4_232 = arith.constant 4 : index
    %c6_233 = arith.constant 6 : index
    %c0_234 = arith.constant 0 : index
    %277 = vector.load %arg1[%c0_230, %c0_231, %c4_232, %c6_233, %c0_234] : memref<1x2x7x14x8xf32, #tpu.memory_space<vmem>>, vector<1x1x1x8x8xf32>
    %278 = vector.shape_cast %277 : vector<1x1x1x8x8xf32> to vector<8x8xf32>
    %c46 = arith.constant 46 : index
    %279 = memref.load %arg2[%c46] : memref<98xf32, #tpu.memory_space<smem>>
    %280 = vector.broadcast %279 : f32 to vector<8x8xf32>
    %281 = arith.mulf %278, %280 : vector<8x8xf32>
    %282 = arith.addf %276, %281 : vector<8x8xf32>
    %c0_235 = arith.constant 0 : index
    %c0_236 = arith.constant 0 : index
    %c5_237 = arith.constant 5 : index
    %c6_238 = arith.constant 6 : index
    %c0_239 = arith.constant 0 : index
    %283 = vector.load %arg1[%c0_235, %c0_236, %c5_237, %c6_238, %c0_239] : memref<1x2x7x14x8xf32, #tpu.memory_space<vmem>>, vector<1x1x1x8x8xf32>
    %284 = vector.shape_cast %283 : vector<1x1x1x8x8xf32> to vector<8x8xf32>
    %c47 = arith.constant 47 : index
    %285 = memref.load %arg2[%c47] : memref<98xf32, #tpu.memory_space<smem>>
    %286 = vector.broadcast %285 : f32 to vector<8x8xf32>
    %287 = arith.mulf %284, %286 : vector<8x8xf32>
    %288 = arith.addf %282, %287 : vector<8x8xf32>
    %c0_240 = arith.constant 0 : index
    %c0_241 = arith.constant 0 : index
    %c6_242 = arith.constant 6 : index
    %c6_243 = arith.constant 6 : index
    %c0_244 = arith.constant 0 : index
    %289 = vector.load %arg1[%c0_240, %c0_241, %c6_242, %c6_243, %c0_244] : memref<1x2x7x14x8xf32, #tpu.memory_space<vmem>>, vector<1x1x1x8x8xf32>
    %290 = vector.shape_cast %289 : vector<1x1x1x8x8xf32> to vector<8x8xf32>
    %c48 = arith.constant 48 : index
    %291 = memref.load %arg2[%c48] : memref<98xf32, #tpu.memory_space<smem>>
    %292 = vector.broadcast %291 : f32 to vector<8x8xf32>
    %293 = arith.mulf %290, %292 : vector<8x8xf32>
    %294 = arith.addf %288, %293 : vector<8x8xf32>
    %c0_245 = arith.constant 0 : index
    %c1_246 = arith.constant 1 : index
    %c0_247 = arith.constant 0 : index
    %c0_248 = arith.constant 0 : index
    %c0_249 = arith.constant 0 : index
    %295 = vector.load %arg1[%c0_245, %c1_246, %c0_247, %c0_248, %c0_249] : memref<1x2x7x14x8xf32, #tpu.memory_space<vmem>>, vector<1x1x1x8x8xf32>
    %296 = vector.shape_cast %295 : vector<1x1x1x8x8xf32> to vector<8x8xf32>
    %c49 = arith.constant 49 : index
    %297 = memref.load %arg2[%c49] : memref<98xf32, #tpu.memory_space<smem>>
    %298 = vector.broadcast %297 : f32 to vector<8x8xf32>
    %299 = arith.mulf %296, %298 : vector<8x8xf32>
    %300 = arith.addf %294, %299 : vector<8x8xf32>
    %c0_250 = arith.constant 0 : index
    %c1_251 = arith.constant 1 : index
    %c1_252 = arith.constant 1 : index
    %c0_253 = arith.constant 0 : index
    %c0_254 = arith.constant 0 : index
    %301 = vector.load %arg1[%c0_250, %c1_251, %c1_252, %c0_253, %c0_254] : memref<1x2x7x14x8xf32, #tpu.memory_space<vmem>>, vector<1x1x1x8x8xf32>
    %302 = vector.shape_cast %301 : vector<1x1x1x8x8xf32> to vector<8x8xf32>
    %c50 = arith.constant 50 : index
    %303 = memref.load %arg2[%c50] : memref<98xf32, #tpu.memory_space<smem>>
    %304 = vector.broadcast %303 : f32 to vector<8x8xf32>
    %305 = arith.mulf %302, %304 : vector<8x8xf32>
    %306 = arith.addf %300, %305 : vector<8x8xf32>
    %c0_255 = arith.constant 0 : index
    %c1_256 = arith.constant 1 : index
    %c2_257 = arith.constant 2 : index
    %c0_258 = arith.constant 0 : index
    %c0_259 = arith.constant 0 : index
    %307 = vector.load %arg1[%c0_255, %c1_256, %c2_257, %c0_258, %c0_259] : memref<1x2x7x14x8xf32, #tpu.memory_space<vmem>>, vector<1x1x1x8x8xf32>
    %308 = vector.shape_cast %307 : vector<1x1x1x8x8xf32> to vector<8x8xf32>
    %c51 = arith.constant 51 : index
    %309 = memref.load %arg2[%c51] : memref<98xf32, #tpu.memory_space<smem>>
    %310 = vector.broadcast %309 : f32 to vector<8x8xf32>
    %311 = arith.mulf %308, %310 : vector<8x8xf32>
    %312 = arith.addf %306, %311 : vector<8x8xf32>
    %c0_260 = arith.constant 0 : index
    %c1_261 = arith.constant 1 : index
    %c3_262 = arith.constant 3 : index
    %c0_263 = arith.constant 0 : index
    %c0_264 = arith.constant 0 : index
    %313 = vector.load %arg1[%c0_260, %c1_261, %c3_262, %c0_263, %c0_264] : memref<1x2x7x14x8xf32, #tpu.memory_space<vmem>>, vector<1x1x1x8x8xf32>
    %314 = vector.shape_cast %313 : vector<1x1x1x8x8xf32> to vector<8x8xf32>
    %c52 = arith.constant 52 : index
    %315 = memref.load %arg2[%c52] : memref<98xf32, #tpu.memory_space<smem>>
    %316 = vector.broadcast %315 : f32 to vector<8x8xf32>
    %317 = arith.mulf %314, %316 : vector<8x8xf32>
    %318 = arith.addf %312, %317 : vector<8x8xf32>
    %c0_265 = arith.constant 0 : index
    %c1_266 = arith.constant 1 : index
    %c4_267 = arith.constant 4 : index
    %c0_268 = arith.constant 0 : index
    %c0_269 = arith.constant 0 : index
    %319 = vector.load %arg1[%c0_265, %c1_266, %c4_267, %c0_268, %c0_269] : memref<1x2x7x14x8xf32, #tpu.memory_space<vmem>>, vector<1x1x1x8x8xf32>
    %320 = vector.shape_cast %319 : vector<1x1x1x8x8xf32> to vector<8x8xf32>
    %c53 = arith.constant 53 : index
    %321 = memref.load %arg2[%c53] : memref<98xf32, #tpu.memory_space<smem>>
    %322 = vector.broadcast %321 : f32 to vector<8x8xf32>
    %323 = arith.mulf %320, %322 : vector<8x8xf32>
    %324 = arith.addf %318, %323 : vector<8x8xf32>
    %c0_270 = arith.constant 0 : index
    %c1_271 = arith.constant 1 : index
    %c5_272 = arith.constant 5 : index
    %c0_273 = arith.constant 0 : index
    %c0_274 = arith.constant 0 : index
    %325 = vector.load %arg1[%c0_270, %c1_271, %c5_272, %c0_273, %c0_274] : memref<1x2x7x14x8xf32, #tpu.memory_space<vmem>>, vector<1x1x1x8x8xf32>
    %326 = vector.shape_cast %325 : vector<1x1x1x8x8xf32> to vector<8x8xf32>
    %c54 = arith.constant 54 : index
    %327 = memref.load %arg2[%c54] : memref<98xf32, #tpu.memory_space<smem>>
    %328 = vector.broadcast %327 : f32 to vector<8x8xf32>
    %329 = arith.mulf %326, %328 : vector<8x8xf32>
    %330 = arith.addf %324, %329 : vector<8x8xf32>
    %c0_275 = arith.constant 0 : index
    %c1_276 = arith.constant 1 : index
    %c6_277 = arith.constant 6 : index
    %c0_278 = arith.constant 0 : index
    %c0_279 = arith.constant 0 : index
    %331 = vector.load %arg1[%c0_275, %c1_276, %c6_277, %c0_278, %c0_279] : memref<1x2x7x14x8xf32, #tpu.memory_space<vmem>>, vector<1x1x1x8x8xf32>
    %332 = vector.shape_cast %331 : vector<1x1x1x8x8xf32> to vector<8x8xf32>
    %c55 = arith.constant 55 : index
    %333 = memref.load %arg2[%c55] : memref<98xf32, #tpu.memory_space<smem>>
    %334 = vector.broadcast %333 : f32 to vector<8x8xf32>
    %335 = arith.mulf %332, %334 : vector<8x8xf32>
    %336 = arith.addf %330, %335 : vector<8x8xf32>
    %c0_280 = arith.constant 0 : index
    %c1_281 = arith.constant 1 : index
    %c0_282 = arith.constant 0 : index
    %c1_283 = arith.constant 1 : index
    %c0_284 = arith.constant 0 : index
    %337 = vector.load %arg1[%c0_280, %c1_281, %c0_282, %c1_283, %c0_284] : memref<1x2x7x14x8xf32, #tpu.memory_space<vmem>>, vector<1x1x1x8x8xf32>
    %338 = vector.shape_cast %337 : vector<1x1x1x8x8xf32> to vector<8x8xf32>
    %c56 = arith.constant 56 : index
    %339 = memref.load %arg2[%c56] : memref<98xf32, #tpu.memory_space<smem>>
    %340 = vector.broadcast %339 : f32 to vector<8x8xf32>
    %341 = arith.mulf %338, %340 : vector<8x8xf32>
    %342 = arith.addf %336, %341 : vector<8x8xf32>
    %c0_285 = arith.constant 0 : index
    %c1_286 = arith.constant 1 : index
    %c1_287 = arith.constant 1 : index
    %c1_288 = arith.constant 1 : index
    %c0_289 = arith.constant 0 : index
    %343 = vector.load %arg1[%c0_285, %c1_286, %c1_287, %c1_288, %c0_289] : memref<1x2x7x14x8xf32, #tpu.memory_space<vmem>>, vector<1x1x1x8x8xf32>
    %344 = vector.shape_cast %343 : vector<1x1x1x8x8xf32> to vector<8x8xf32>
    %c57 = arith.constant 57 : index
    %345 = memref.load %arg2[%c57] : memref<98xf32, #tpu.memory_space<smem>>
    %346 = vector.broadcast %345 : f32 to vector<8x8xf32>
    %347 = arith.mulf %344, %346 : vector<8x8xf32>
    %348 = arith.addf %342, %347 : vector<8x8xf32>
    %c0_290 = arith.constant 0 : index
    %c1_291 = arith.constant 1 : index
    %c2_292 = arith.constant 2 : index
    %c1_293 = arith.constant 1 : index
    %c0_294 = arith.constant 0 : index
    %349 = vector.load %arg1[%c0_290, %c1_291, %c2_292, %c1_293, %c0_294] : memref<1x2x7x14x8xf32, #tpu.memory_space<vmem>>, vector<1x1x1x8x8xf32>
    %350 = vector.shape_cast %349 : vector<1x1x1x8x8xf32> to vector<8x8xf32>
    %c58 = arith.constant 58 : index
    %351 = memref.load %arg2[%c58] : memref<98xf32, #tpu.memory_space<smem>>
    %352 = vector.broadcast %351 : f32 to vector<8x8xf32>
    %353 = arith.mulf %350, %352 : vector<8x8xf32>
    %354 = arith.addf %348, %353 : vector<8x8xf32>
    %c0_295 = arith.constant 0 : index
    %c1_296 = arith.constant 1 : index
    %c3_297 = arith.constant 3 : index
    %c1_298 = arith.constant 1 : index
    %c0_299 = arith.constant 0 : index
    %355 = vector.load %arg1[%c0_295, %c1_296, %c3_297, %c1_298, %c0_299] : memref<1x2x7x14x8xf32, #tpu.memory_space<vmem>>, vector<1x1x1x8x8xf32>
    %356 = vector.shape_cast %355 : vector<1x1x1x8x8xf32> to vector<8x8xf32>
    %c59 = arith.constant 59 : index
    %357 = memref.load %arg2[%c59] : memref<98xf32, #tpu.memory_space<smem>>
    %358 = vector.broadcast %357 : f32 to vector<8x8xf32>
    %359 = arith.mulf %356, %358 : vector<8x8xf32>
    %360 = arith.addf %354, %359 : vector<8x8xf32>
    %c0_300 = arith.constant 0 : index
    %c1_301 = arith.constant 1 : index
    %c4_302 = arith.constant 4 : index
    %c1_303 = arith.constant 1 : index
    %c0_304 = arith.constant 0 : index
    %361 = vector.load %arg1[%c0_300, %c1_301, %c4_302, %c1_303, %c0_304] : memref<1x2x7x14x8xf32, #tpu.memory_space<vmem>>, vector<1x1x1x8x8xf32>
    %362 = vector.shape_cast %361 : vector<1x1x1x8x8xf32> to vector<8x8xf32>
    %c60 = arith.constant 60 : index
    %363 = memref.load %arg2[%c60] : memref<98xf32, #tpu.memory_space<smem>>
    %364 = vector.broadcast %363 : f32 to vector<8x8xf32>
    %365 = arith.mulf %362, %364 : vector<8x8xf32>
    %366 = arith.addf %360, %365 : vector<8x8xf32>
    %c0_305 = arith.constant 0 : index
    %c1_306 = arith.constant 1 : index
    %c5_307 = arith.constant 5 : index
    %c1_308 = arith.constant 1 : index
    %c0_309 = arith.constant 0 : index
    %367 = vector.load %arg1[%c0_305, %c1_306, %c5_307, %c1_308, %c0_309] : memref<1x2x7x14x8xf32, #tpu.memory_space<vmem>>, vector<1x1x1x8x8xf32>
    %368 = vector.shape_cast %367 : vector<1x1x1x8x8xf32> to vector<8x8xf32>
    %c61 = arith.constant 61 : index
    %369 = memref.load %arg2[%c61] : memref<98xf32, #tpu.memory_space<smem>>
    %370 = vector.broadcast %369 : f32 to vector<8x8xf32>
    %371 = arith.mulf %368, %370 : vector<8x8xf32>
    %372 = arith.addf %366, %371 : vector<8x8xf32>
    %c0_310 = arith.constant 0 : index
    %c1_311 = arith.constant 1 : index
    %c6_312 = arith.constant 6 : index
    %c1_313 = arith.constant 1 : index
    %c0_314 = arith.constant 0 : index
    %373 = vector.load %arg1[%c0_310, %c1_311, %c6_312, %c1_313, %c0_314] : memref<1x2x7x14x8xf32, #tpu.memory_space<vmem>>, vector<1x1x1x8x8xf32>
    %374 = vector.shape_cast %373 : vector<1x1x1x8x8xf32> to vector<8x8xf32>
    %c62 = arith.constant 62 : index
    %375 = memref.load %arg2[%c62] : memref<98xf32, #tpu.memory_space<smem>>
    %376 = vector.broadcast %375 : f32 to vector<8x8xf32>
    %377 = arith.mulf %374, %376 : vector<8x8xf32>
    %378 = arith.addf %372, %377 : vector<8x8xf32>
    %c0_315 = arith.constant 0 : index
    %c1_316 = arith.constant 1 : index
    %c0_317 = arith.constant 0 : index
    %c2_318 = arith.constant 2 : index
    %c0_319 = arith.constant 0 : index
    %379 = vector.load %arg1[%c0_315, %c1_316, %c0_317, %c2_318, %c0_319] : memref<1x2x7x14x8xf32, #tpu.memory_space<vmem>>, vector<1x1x1x8x8xf32>
    %380 = vector.shape_cast %379 : vector<1x1x1x8x8xf32> to vector<8x8xf32>
    %c63 = arith.constant 63 : index
    %381 = memref.load %arg2[%c63] : memref<98xf32, #tpu.memory_space<smem>>
    %382 = vector.broadcast %381 : f32 to vector<8x8xf32>
    %383 = arith.mulf %380, %382 : vector<8x8xf32>
    %384 = arith.addf %378, %383 : vector<8x8xf32>
    %c0_320 = arith.constant 0 : index
    %c1_321 = arith.constant 1 : index
    %c1_322 = arith.constant 1 : index
    %c2_323 = arith.constant 2 : index
    %c0_324 = arith.constant 0 : index
    %385 = vector.load %arg1[%c0_320, %c1_321, %c1_322, %c2_323, %c0_324] : memref<1x2x7x14x8xf32, #tpu.memory_space<vmem>>, vector<1x1x1x8x8xf32>
    %386 = vector.shape_cast %385 : vector<1x1x1x8x8xf32> to vector<8x8xf32>
    %c64 = arith.constant 64 : index
    %387 = memref.load %arg2[%c64] : memref<98xf32, #tpu.memory_space<smem>>
    %388 = vector.broadcast %387 : f32 to vector<8x8xf32>
    %389 = arith.mulf %386, %388 : vector<8x8xf32>
    %390 = arith.addf %384, %389 : vector<8x8xf32>
    %c0_325 = arith.constant 0 : index
    %c1_326 = arith.constant 1 : index
    %c2_327 = arith.constant 2 : index
    %c2_328 = arith.constant 2 : index
    %c0_329 = arith.constant 0 : index
    %391 = vector.load %arg1[%c0_325, %c1_326, %c2_327, %c2_328, %c0_329] : memref<1x2x7x14x8xf32, #tpu.memory_space<vmem>>, vector<1x1x1x8x8xf32>
    %392 = vector.shape_cast %391 : vector<1x1x1x8x8xf32> to vector<8x8xf32>
    %c65 = arith.constant 65 : index
    %393 = memref.load %arg2[%c65] : memref<98xf32, #tpu.memory_space<smem>>
    %394 = vector.broadcast %393 : f32 to vector<8x8xf32>
    %395 = arith.mulf %392, %394 : vector<8x8xf32>
    %396 = arith.addf %390, %395 : vector<8x8xf32>
    %c0_330 = arith.constant 0 : index
    %c1_331 = arith.constant 1 : index
    %c3_332 = arith.constant 3 : index
    %c2_333 = arith.constant 2 : index
    %c0_334 = arith.constant 0 : index
    %397 = vector.load %arg1[%c0_330, %c1_331, %c3_332, %c2_333, %c0_334] : memref<1x2x7x14x8xf32, #tpu.memory_space<vmem>>, vector<1x1x1x8x8xf32>
    %398 = vector.shape_cast %397 : vector<1x1x1x8x8xf32> to vector<8x8xf32>
    %c66 = arith.constant 66 : index
    %399 = memref.load %arg2[%c66] : memref<98xf32, #tpu.memory_space<smem>>
    %400 = vector.broadcast %399 : f32 to vector<8x8xf32>
    %401 = arith.mulf %398, %400 : vector<8x8xf32>
    %402 = arith.addf %396, %401 : vector<8x8xf32>
    %c0_335 = arith.constant 0 : index
    %c1_336 = arith.constant 1 : index
    %c4_337 = arith.constant 4 : index
    %c2_338 = arith.constant 2 : index
    %c0_339 = arith.constant 0 : index
    %403 = vector.load %arg1[%c0_335, %c1_336, %c4_337, %c2_338, %c0_339] : memref<1x2x7x14x8xf32, #tpu.memory_space<vmem>>, vector<1x1x1x8x8xf32>
    %404 = vector.shape_cast %403 : vector<1x1x1x8x8xf32> to vector<8x8xf32>
    %c67 = arith.constant 67 : index
    %405 = memref.load %arg2[%c67] : memref<98xf32, #tpu.memory_space<smem>>
    %406 = vector.broadcast %405 : f32 to vector<8x8xf32>
    %407 = arith.mulf %404, %406 : vector<8x8xf32>
    %408 = arith.addf %402, %407 : vector<8x8xf32>
    %c0_340 = arith.constant 0 : index
    %c1_341 = arith.constant 1 : index
    %c5_342 = arith.constant 5 : index
    %c2_343 = arith.constant 2 : index
    %c0_344 = arith.constant 0 : index
    %409 = vector.load %arg1[%c0_340, %c1_341, %c5_342, %c2_343, %c0_344] : memref<1x2x7x14x8xf32, #tpu.memory_space<vmem>>, vector<1x1x1x8x8xf32>
    %410 = vector.shape_cast %409 : vector<1x1x1x8x8xf32> to vector<8x8xf32>
    %c68 = arith.constant 68 : index
    %411 = memref.load %arg2[%c68] : memref<98xf32, #tpu.memory_space<smem>>
    %412 = vector.broadcast %411 : f32 to vector<8x8xf32>
    %413 = arith.mulf %410, %412 : vector<8x8xf32>
    %414 = arith.addf %408, %413 : vector<8x8xf32>
    %c0_345 = arith.constant 0 : index
    %c1_346 = arith.constant 1 : index
    %c6_347 = arith.constant 6 : index
    %c2_348 = arith.constant 2 : index
    %c0_349 = arith.constant 0 : index
    %415 = vector.load %arg1[%c0_345, %c1_346, %c6_347, %c2_348, %c0_349] : memref<1x2x7x14x8xf32, #tpu.memory_space<vmem>>, vector<1x1x1x8x8xf32>
    %416 = vector.shape_cast %415 : vector<1x1x1x8x8xf32> to vector<8x8xf32>
    %c69 = arith.constant 69 : index
    %417 = memref.load %arg2[%c69] : memref<98xf32, #tpu.memory_space<smem>>
    %418 = vector.broadcast %417 : f32 to vector<8x8xf32>
    %419 = arith.mulf %416, %418 : vector<8x8xf32>
    %420 = arith.addf %414, %419 : vector<8x8xf32>
    %c0_350 = arith.constant 0 : index
    %c1_351 = arith.constant 1 : index
    %c0_352 = arith.constant 0 : index
    %c3_353 = arith.constant 3 : index
    %c0_354 = arith.constant 0 : index
    %421 = vector.load %arg1[%c0_350, %c1_351, %c0_352, %c3_353, %c0_354] : memref<1x2x7x14x8xf32, #tpu.memory_space<vmem>>, vector<1x1x1x8x8xf32>
    %422 = vector.shape_cast %421 : vector<1x1x1x8x8xf32> to vector<8x8xf32>
    %c70 = arith.constant 70 : index
    %423 = memref.load %arg2[%c70] : memref<98xf32, #tpu.memory_space<smem>>
    %424 = vector.broadcast %423 : f32 to vector<8x8xf32>
    %425 = arith.mulf %422, %424 : vector<8x8xf32>
    %426 = arith.addf %420, %425 : vector<8x8xf32>
    %c0_355 = arith.constant 0 : index
    %c1_356 = arith.constant 1 : index
    %c1_357 = arith.constant 1 : index
    %c3_358 = arith.constant 3 : index
    %c0_359 = arith.constant 0 : index
    %427 = vector.load %arg1[%c0_355, %c1_356, %c1_357, %c3_358, %c0_359] : memref<1x2x7x14x8xf32, #tpu.memory_space<vmem>>, vector<1x1x1x8x8xf32>
    %428 = vector.shape_cast %427 : vector<1x1x1x8x8xf32> to vector<8x8xf32>
    %c71 = arith.constant 71 : index
    %429 = memref.load %arg2[%c71] : memref<98xf32, #tpu.memory_space<smem>>
    %430 = vector.broadcast %429 : f32 to vector<8x8xf32>
    %431 = arith.mulf %428, %430 : vector<8x8xf32>
    %432 = arith.addf %426, %431 : vector<8x8xf32>
    %c0_360 = arith.constant 0 : index
    %c1_361 = arith.constant 1 : index
    %c2_362 = arith.constant 2 : index
    %c3_363 = arith.constant 3 : index
    %c0_364 = arith.constant 0 : index
    %433 = vector.load %arg1[%c0_360, %c1_361, %c2_362, %c3_363, %c0_364] : memref<1x2x7x14x8xf32, #tpu.memory_space<vmem>>, vector<1x1x1x8x8xf32>
    %434 = vector.shape_cast %433 : vector<1x1x1x8x8xf32> to vector<8x8xf32>
    %c72 = arith.constant 72 : index
    %435 = memref.load %arg2[%c72] : memref<98xf32, #tpu.memory_space<smem>>
    %436 = vector.broadcast %435 : f32 to vector<8x8xf32>
    %437 = arith.mulf %434, %436 : vector<8x8xf32>
    %438 = arith.addf %432, %437 : vector<8x8xf32>
    %c0_365 = arith.constant 0 : index
    %c1_366 = arith.constant 1 : index
    %c3_367 = arith.constant 3 : index
    %c3_368 = arith.constant 3 : index
    %c0_369 = arith.constant 0 : index
    %439 = vector.load %arg1[%c0_365, %c1_366, %c3_367, %c3_368, %c0_369] : memref<1x2x7x14x8xf32, #tpu.memory_space<vmem>>, vector<1x1x1x8x8xf32>
    %440 = vector.shape_cast %439 : vector<1x1x1x8x8xf32> to vector<8x8xf32>
    %c73 = arith.constant 73 : index
    %441 = memref.load %arg2[%c73] : memref<98xf32, #tpu.memory_space<smem>>
    %442 = vector.broadcast %441 : f32 to vector<8x8xf32>
    %443 = arith.mulf %440, %442 : vector<8x8xf32>
    %444 = arith.addf %438, %443 : vector<8x8xf32>
    %c0_370 = arith.constant 0 : index
    %c1_371 = arith.constant 1 : index
    %c4_372 = arith.constant 4 : index
    %c3_373 = arith.constant 3 : index
    %c0_374 = arith.constant 0 : index
    %445 = vector.load %arg1[%c0_370, %c1_371, %c4_372, %c3_373, %c0_374] : memref<1x2x7x14x8xf32, #tpu.memory_space<vmem>>, vector<1x1x1x8x8xf32>
    %446 = vector.shape_cast %445 : vector<1x1x1x8x8xf32> to vector<8x8xf32>
    %c74 = arith.constant 74 : index
    %447 = memref.load %arg2[%c74] : memref<98xf32, #tpu.memory_space<smem>>
    %448 = vector.broadcast %447 : f32 to vector<8x8xf32>
    %449 = arith.mulf %446, %448 : vector<8x8xf32>
    %450 = arith.addf %444, %449 : vector<8x8xf32>
    %c0_375 = arith.constant 0 : index
    %c1_376 = arith.constant 1 : index
    %c5_377 = arith.constant 5 : index
    %c3_378 = arith.constant 3 : index
    %c0_379 = arith.constant 0 : index
    %451 = vector.load %arg1[%c0_375, %c1_376, %c5_377, %c3_378, %c0_379] : memref<1x2x7x14x8xf32, #tpu.memory_space<vmem>>, vector<1x1x1x8x8xf32>
    %452 = vector.shape_cast %451 : vector<1x1x1x8x8xf32> to vector<8x8xf32>
    %c75 = arith.constant 75 : index
    %453 = memref.load %arg2[%c75] : memref<98xf32, #tpu.memory_space<smem>>
    %454 = vector.broadcast %453 : f32 to vector<8x8xf32>
    %455 = arith.mulf %452, %454 : vector<8x8xf32>
    %456 = arith.addf %450, %455 : vector<8x8xf32>
    %c0_380 = arith.constant 0 : index
    %c1_381 = arith.constant 1 : index
    %c6_382 = arith.constant 6 : index
    %c3_383 = arith.constant 3 : index
    %c0_384 = arith.constant 0 : index
    %457 = vector.load %arg1[%c0_380, %c1_381, %c6_382, %c3_383, %c0_384] : memref<1x2x7x14x8xf32, #tpu.memory_space<vmem>>, vector<1x1x1x8x8xf32>
    %458 = vector.shape_cast %457 : vector<1x1x1x8x8xf32> to vector<8x8xf32>
    %c76 = arith.constant 76 : index
    %459 = memref.load %arg2[%c76] : memref<98xf32, #tpu.memory_space<smem>>
    %460 = vector.broadcast %459 : f32 to vector<8x8xf32>
    %461 = arith.mulf %458, %460 : vector<8x8xf32>
    %462 = arith.addf %456, %461 : vector<8x8xf32>
    %c0_385 = arith.constant 0 : index
    %c1_386 = arith.constant 1 : index
    %c0_387 = arith.constant 0 : index
    %c4_388 = arith.constant 4 : index
    %c0_389 = arith.constant 0 : index
    %463 = vector.load %arg1[%c0_385, %c1_386, %c0_387, %c4_388, %c0_389] : memref<1x2x7x14x8xf32, #tpu.memory_space<vmem>>, vector<1x1x1x8x8xf32>
    %464 = vector.shape_cast %463 : vector<1x1x1x8x8xf32> to vector<8x8xf32>
    %c77 = arith.constant 77 : index
    %465 = memref.load %arg2[%c77] : memref<98xf32, #tpu.memory_space<smem>>
    %466 = vector.broadcast %465 : f32 to vector<8x8xf32>
    %467 = arith.mulf %464, %466 : vector<8x8xf32>
    %468 = arith.addf %462, %467 : vector<8x8xf32>
    %c0_390 = arith.constant 0 : index
    %c1_391 = arith.constant 1 : index
    %c1_392 = arith.constant 1 : index
    %c4_393 = arith.constant 4 : index
    %c0_394 = arith.constant 0 : index
    %469 = vector.load %arg1[%c0_390, %c1_391, %c1_392, %c4_393, %c0_394] : memref<1x2x7x14x8xf32, #tpu.memory_space<vmem>>, vector<1x1x1x8x8xf32>
    %470 = vector.shape_cast %469 : vector<1x1x1x8x8xf32> to vector<8x8xf32>
    %c78 = arith.constant 78 : index
    %471 = memref.load %arg2[%c78] : memref<98xf32, #tpu.memory_space<smem>>
    %472 = vector.broadcast %471 : f32 to vector<8x8xf32>
    %473 = arith.mulf %470, %472 : vector<8x8xf32>
    %474 = arith.addf %468, %473 : vector<8x8xf32>
    %c0_395 = arith.constant 0 : index
    %c1_396 = arith.constant 1 : index
    %c2_397 = arith.constant 2 : index
    %c4_398 = arith.constant 4 : index
    %c0_399 = arith.constant 0 : index
    %475 = vector.load %arg1[%c0_395, %c1_396, %c2_397, %c4_398, %c0_399] : memref<1x2x7x14x8xf32, #tpu.memory_space<vmem>>, vector<1x1x1x8x8xf32>
    %476 = vector.shape_cast %475 : vector<1x1x1x8x8xf32> to vector<8x8xf32>
    %c79 = arith.constant 79 : index
    %477 = memref.load %arg2[%c79] : memref<98xf32, #tpu.memory_space<smem>>
    %478 = vector.broadcast %477 : f32 to vector<8x8xf32>
    %479 = arith.mulf %476, %478 : vector<8x8xf32>
    %480 = arith.addf %474, %479 : vector<8x8xf32>
    %c0_400 = arith.constant 0 : index
    %c1_401 = arith.constant 1 : index
    %c3_402 = arith.constant 3 : index
    %c4_403 = arith.constant 4 : index
    %c0_404 = arith.constant 0 : index
    %481 = vector.load %arg1[%c0_400, %c1_401, %c3_402, %c4_403, %c0_404] : memref<1x2x7x14x8xf32, #tpu.memory_space<vmem>>, vector<1x1x1x8x8xf32>
    %482 = vector.shape_cast %481 : vector<1x1x1x8x8xf32> to vector<8x8xf32>
    %c80 = arith.constant 80 : index
    %483 = memref.load %arg2[%c80] : memref<98xf32, #tpu.memory_space<smem>>
    %484 = vector.broadcast %483 : f32 to vector<8x8xf32>
    %485 = arith.mulf %482, %484 : vector<8x8xf32>
    %486 = arith.addf %480, %485 : vector<8x8xf32>
    %c0_405 = arith.constant 0 : index
    %c1_406 = arith.constant 1 : index
    %c4_407 = arith.constant 4 : index
    %c4_408 = arith.constant 4 : index
    %c0_409 = arith.constant 0 : index
    %487 = vector.load %arg1[%c0_405, %c1_406, %c4_407, %c4_408, %c0_409] : memref<1x2x7x14x8xf32, #tpu.memory_space<vmem>>, vector<1x1x1x8x8xf32>
    %488 = vector.shape_cast %487 : vector<1x1x1x8x8xf32> to vector<8x8xf32>
    %c81 = arith.constant 81 : index
    %489 = memref.load %arg2[%c81] : memref<98xf32, #tpu.memory_space<smem>>
    %490 = vector.broadcast %489 : f32 to vector<8x8xf32>
    %491 = arith.mulf %488, %490 : vector<8x8xf32>
    %492 = arith.addf %486, %491 : vector<8x8xf32>
    %c0_410 = arith.constant 0 : index
    %c1_411 = arith.constant 1 : index
    %c5_412 = arith.constant 5 : index
    %c4_413 = arith.constant 4 : index
    %c0_414 = arith.constant 0 : index
    %493 = vector.load %arg1[%c0_410, %c1_411, %c5_412, %c4_413, %c0_414] : memref<1x2x7x14x8xf32, #tpu.memory_space<vmem>>, vector<1x1x1x8x8xf32>
    %494 = vector.shape_cast %493 : vector<1x1x1x8x8xf32> to vector<8x8xf32>
    %c82 = arith.constant 82 : index
    %495 = memref.load %arg2[%c82] : memref<98xf32, #tpu.memory_space<smem>>
    %496 = vector.broadcast %495 : f32 to vector<8x8xf32>
    %497 = arith.mulf %494, %496 : vector<8x8xf32>
    %498 = arith.addf %492, %497 : vector<8x8xf32>
    %c0_415 = arith.constant 0 : index
    %c1_416 = arith.constant 1 : index
    %c6_417 = arith.constant 6 : index
    %c4_418 = arith.constant 4 : index
    %c0_419 = arith.constant 0 : index
    %499 = vector.load %arg1[%c0_415, %c1_416, %c6_417, %c4_418, %c0_419] : memref<1x2x7x14x8xf32, #tpu.memory_space<vmem>>, vector<1x1x1x8x8xf32>
    %500 = vector.shape_cast %499 : vector<1x1x1x8x8xf32> to vector<8x8xf32>
    %c83 = arith.constant 83 : index
    %501 = memref.load %arg2[%c83] : memref<98xf32, #tpu.memory_space<smem>>
    %502 = vector.broadcast %501 : f32 to vector<8x8xf32>
    %503 = arith.mulf %500, %502 : vector<8x8xf32>
    %504 = arith.addf %498, %503 : vector<8x8xf32>
    %c0_420 = arith.constant 0 : index
    %c1_421 = arith.constant 1 : index
    %c0_422 = arith.constant 0 : index
    %c5_423 = arith.constant 5 : index
    %c0_424 = arith.constant 0 : index
    %505 = vector.load %arg1[%c0_420, %c1_421, %c0_422, %c5_423, %c0_424] : memref<1x2x7x14x8xf32, #tpu.memory_space<vmem>>, vector<1x1x1x8x8xf32>
    %506 = vector.shape_cast %505 : vector<1x1x1x8x8xf32> to vector<8x8xf32>
    %c84 = arith.constant 84 : index
    %507 = memref.load %arg2[%c84] : memref<98xf32, #tpu.memory_space<smem>>
    %508 = vector.broadcast %507 : f32 to vector<8x8xf32>
    %509 = arith.mulf %506, %508 : vector<8x8xf32>
    %510 = arith.addf %504, %509 : vector<8x8xf32>
    %c0_425 = arith.constant 0 : index
    %c1_426 = arith.constant 1 : index
    %c1_427 = arith.constant 1 : index
    %c5_428 = arith.constant 5 : index
    %c0_429 = arith.constant 0 : index
    %511 = vector.load %arg1[%c0_425, %c1_426, %c1_427, %c5_428, %c0_429] : memref<1x2x7x14x8xf32, #tpu.memory_space<vmem>>, vector<1x1x1x8x8xf32>
    %512 = vector.shape_cast %511 : vector<1x1x1x8x8xf32> to vector<8x8xf32>
    %c85 = arith.constant 85 : index
    %513 = memref.load %arg2[%c85] : memref<98xf32, #tpu.memory_space<smem>>
    %514 = vector.broadcast %513 : f32 to vector<8x8xf32>
    %515 = arith.mulf %512, %514 : vector<8x8xf32>
    %516 = arith.addf %510, %515 : vector<8x8xf32>
    %c0_430 = arith.constant 0 : index
    %c1_431 = arith.constant 1 : index
    %c2_432 = arith.constant 2 : index
    %c5_433 = arith.constant 5 : index
    %c0_434 = arith.constant 0 : index
    %517 = vector.load %arg1[%c0_430, %c1_431, %c2_432, %c5_433, %c0_434] : memref<1x2x7x14x8xf32, #tpu.memory_space<vmem>>, vector<1x1x1x8x8xf32>
    %518 = vector.shape_cast %517 : vector<1x1x1x8x8xf32> to vector<8x8xf32>
    %c86 = arith.constant 86 : index
    %519 = memref.load %arg2[%c86] : memref<98xf32, #tpu.memory_space<smem>>
    %520 = vector.broadcast %519 : f32 to vector<8x8xf32>
    %521 = arith.mulf %518, %520 : vector<8x8xf32>
    %522 = arith.addf %516, %521 : vector<8x8xf32>
    %c0_435 = arith.constant 0 : index
    %c1_436 = arith.constant 1 : index
    %c3_437 = arith.constant 3 : index
    %c5_438 = arith.constant 5 : index
    %c0_439 = arith.constant 0 : index
    %523 = vector.load %arg1[%c0_435, %c1_436, %c3_437, %c5_438, %c0_439] : memref<1x2x7x14x8xf32, #tpu.memory_space<vmem>>, vector<1x1x1x8x8xf32>
    %524 = vector.shape_cast %523 : vector<1x1x1x8x8xf32> to vector<8x8xf32>
    %c87 = arith.constant 87 : index
    %525 = memref.load %arg2[%c87] : memref<98xf32, #tpu.memory_space<smem>>
    %526 = vector.broadcast %525 : f32 to vector<8x8xf32>
    %527 = arith.mulf %524, %526 : vector<8x8xf32>
    %528 = arith.addf %522, %527 : vector<8x8xf32>
    %c0_440 = arith.constant 0 : index
    %c1_441 = arith.constant 1 : index
    %c4_442 = arith.constant 4 : index
    %c5_443 = arith.constant 5 : index
    %c0_444 = arith.constant 0 : index
    %529 = vector.load %arg1[%c0_440, %c1_441, %c4_442, %c5_443, %c0_444] : memref<1x2x7x14x8xf32, #tpu.memory_space<vmem>>, vector<1x1x1x8x8xf32>
    %530 = vector.shape_cast %529 : vector<1x1x1x8x8xf32> to vector<8x8xf32>
    %c88 = arith.constant 88 : index
    %531 = memref.load %arg2[%c88] : memref<98xf32, #tpu.memory_space<smem>>
    %532 = vector.broadcast %531 : f32 to vector<8x8xf32>
    %533 = arith.mulf %530, %532 : vector<8x8xf32>
    %534 = arith.addf %528, %533 : vector<8x8xf32>
    %c0_445 = arith.constant 0 : index
    %c1_446 = arith.constant 1 : index
    %c5_447 = arith.constant 5 : index
    %c5_448 = arith.constant 5 : index
    %c0_449 = arith.constant 0 : index
    %535 = vector.load %arg1[%c0_445, %c1_446, %c5_447, %c5_448, %c0_449] : memref<1x2x7x14x8xf32, #tpu.memory_space<vmem>>, vector<1x1x1x8x8xf32>
    %536 = vector.shape_cast %535 : vector<1x1x1x8x8xf32> to vector<8x8xf32>
    %c89 = arith.constant 89 : index
    %537 = memref.load %arg2[%c89] : memref<98xf32, #tpu.memory_space<smem>>
    %538 = vector.broadcast %537 : f32 to vector<8x8xf32>
    %539 = arith.mulf %536, %538 : vector<8x8xf32>
    %540 = arith.addf %534, %539 : vector<8x8xf32>
    %c0_450 = arith.constant 0 : index
    %c1_451 = arith.constant 1 : index
    %c6_452 = arith.constant 6 : index
    %c5_453 = arith.constant 5 : index
    %c0_454 = arith.constant 0 : index
    %541 = vector.load %arg1[%c0_450, %c1_451, %c6_452, %c5_453, %c0_454] : memref<1x2x7x14x8xf32, #tpu.memory_space<vmem>>, vector<1x1x1x8x8xf32>
    %542 = vector.shape_cast %541 : vector<1x1x1x8x8xf32> to vector<8x8xf32>
    %c90 = arith.constant 90 : index
    %543 = memref.load %arg2[%c90] : memref<98xf32, #tpu.memory_space<smem>>
    %544 = vector.broadcast %543 : f32 to vector<8x8xf32>
    %545 = arith.mulf %542, %544 : vector<8x8xf32>
    %546 = arith.addf %540, %545 : vector<8x8xf32>
    %c0_455 = arith.constant 0 : index
    %c1_456 = arith.constant 1 : index
    %c0_457 = arith.constant 0 : index
    %c6_458 = arith.constant 6 : index
    %c0_459 = arith.constant 0 : index
    %547 = vector.load %arg1[%c0_455, %c1_456, %c0_457, %c6_458, %c0_459] : memref<1x2x7x14x8xf32, #tpu.memory_space<vmem>>, vector<1x1x1x8x8xf32>
    %548 = vector.shape_cast %547 : vector<1x1x1x8x8xf32> to vector<8x8xf32>
    %c91 = arith.constant 91 : index
    %549 = memref.load %arg2[%c91] : memref<98xf32, #tpu.memory_space<smem>>
    %550 = vector.broadcast %549 : f32 to vector<8x8xf32>
    %551 = arith.mulf %548, %550 : vector<8x8xf32>
    %552 = arith.addf %546, %551 : vector<8x8xf32>
    %c0_460 = arith.constant 0 : index
    %c1_461 = arith.constant 1 : index
    %c1_462 = arith.constant 1 : index
    %c6_463 = arith.constant 6 : index
    %c0_464 = arith.constant 0 : index
    %553 = vector.load %arg1[%c0_460, %c1_461, %c1_462, %c6_463, %c0_464] : memref<1x2x7x14x8xf32, #tpu.memory_space<vmem>>, vector<1x1x1x8x8xf32>
    %554 = vector.shape_cast %553 : vector<1x1x1x8x8xf32> to vector<8x8xf32>
    %c92 = arith.constant 92 : index
    %555 = memref.load %arg2[%c92] : memref<98xf32, #tpu.memory_space<smem>>
    %556 = vector.broadcast %555 : f32 to vector<8x8xf32>
    %557 = arith.mulf %554, %556 : vector<8x8xf32>
    %558 = arith.addf %552, %557 : vector<8x8xf32>
    %c0_465 = arith.constant 0 : index
    %c1_466 = arith.constant 1 : index
    %c2_467 = arith.constant 2 : index
    %c6_468 = arith.constant 6 : index
    %c0_469 = arith.constant 0 : index
    %559 = vector.load %arg1[%c0_465, %c1_466, %c2_467, %c6_468, %c0_469] : memref<1x2x7x14x8xf32, #tpu.memory_space<vmem>>, vector<1x1x1x8x8xf32>
    %560 = vector.shape_cast %559 : vector<1x1x1x8x8xf32> to vector<8x8xf32>
    %c93 = arith.constant 93 : index
    %561 = memref.load %arg2[%c93] : memref<98xf32, #tpu.memory_space<smem>>
    %562 = vector.broadcast %561 : f32 to vector<8x8xf32>
    %563 = arith.mulf %560, %562 : vector<8x8xf32>
    %564 = arith.addf %558, %563 : vector<8x8xf32>
    %c0_470 = arith.constant 0 : index
    %c1_471 = arith.constant 1 : index
    %c3_472 = arith.constant 3 : index
    %c6_473 = arith.constant 6 : index
    %c0_474 = arith.constant 0 : index
    %565 = vector.load %arg1[%c0_470, %c1_471, %c3_472, %c6_473, %c0_474] : memref<1x2x7x14x8xf32, #tpu.memory_space<vmem>>, vector<1x1x1x8x8xf32>
    %566 = vector.shape_cast %565 : vector<1x1x1x8x8xf32> to vector<8x8xf32>
    %c94 = arith.constant 94 : index
    %567 = memref.load %arg2[%c94] : memref<98xf32, #tpu.memory_space<smem>>
    %568 = vector.broadcast %567 : f32 to vector<8x8xf32>
    %569 = arith.mulf %566, %568 : vector<8x8xf32>
    %570 = arith.addf %564, %569 : vector<8x8xf32>
    %c0_475 = arith.constant 0 : index
    %c1_476 = arith.constant 1 : index
    %c4_477 = arith.constant 4 : index
    %c6_478 = arith.constant 6 : index
    %c0_479 = arith.constant 0 : index
    %571 = vector.load %arg1[%c0_475, %c1_476, %c4_477, %c6_478, %c0_479] : memref<1x2x7x14x8xf32, #tpu.memory_space<vmem>>, vector<1x1x1x8x8xf32>
    %572 = vector.shape_cast %571 : vector<1x1x1x8x8xf32> to vector<8x8xf32>
    %c95 = arith.constant 95 : index
    %573 = memref.load %arg2[%c95] : memref<98xf32, #tpu.memory_space<smem>>
    %574 = vector.broadcast %573 : f32 to vector<8x8xf32>
    %575 = arith.mulf %572, %574 : vector<8x8xf32>
    %576 = arith.addf %570, %575 : vector<8x8xf32>
    %c0_480 = arith.constant 0 : index
    %c1_481 = arith.constant 1 : index
    %c5_482 = arith.constant 5 : index
    %c6_483 = arith.constant 6 : index
    %c0_484 = arith.constant 0 : index
    %577 = vector.load %arg1[%c0_480, %c1_481, %c5_482, %c6_483, %c0_484] : memref<1x2x7x14x8xf32, #tpu.memory_space<vmem>>, vector<1x1x1x8x8xf32>
    %578 = vector.shape_cast %577 : vector<1x1x1x8x8xf32> to vector<8x8xf32>
    %c96 = arith.constant 96 : index
    %579 = memref.load %arg2[%c96] : memref<98xf32, #tpu.memory_space<smem>>
    %580 = vector.broadcast %579 : f32 to vector<8x8xf32>
    %581 = arith.mulf %578, %580 : vector<8x8xf32>
    %582 = arith.addf %576, %581 : vector<8x8xf32>
    %c0_485 = arith.constant 0 : index
    %c1_486 = arith.constant 1 : index
    %c6_487 = arith.constant 6 : index
    %c6_488 = arith.constant 6 : index
    %c0_489 = arith.constant 0 : index
    %583 = vector.load %arg1[%c0_485, %c1_486, %c6_487, %c6_488, %c0_489] : memref<1x2x7x14x8xf32, #tpu.memory_space<vmem>>, vector<1x1x1x8x8xf32>
    %584 = vector.shape_cast %583 : vector<1x1x1x8x8xf32> to vector<8x8xf32>
    %c97 = arith.constant 97 : index
    %585 = memref.load %arg2[%c97] : memref<98xf32, #tpu.memory_space<smem>>
    %586 = vector.broadcast %585 : f32 to vector<8x8xf32>
    %587 = arith.mulf %584, %586 : vector<8x8xf32>
    %588 = arith.addf %582, %587 : vector<8x8xf32>
    %589 = arith.negf %588 : vector<8x8xf32>
    %590 = math.exp %589 : vector<8x8xf32>
    %cst_490 = arith.constant 1.000000e+00 : f32
    %591 = vector.broadcast %cst_490 : f32 to vector<8x8xf32>
    %592 = arith.addf %591, %590 : vector<8x8xf32>
    %593 = arith.divf %591, %592 : vector<8x8xf32>
    %c0_491 = arith.constant 0 : index
    %c0_492 = arith.constant 0 : index
    %c0_493 = arith.constant 0 : index
    %594 = vector.load %arg3[%c0_491, %c0_492, %c0_493] : memref<1x8x8xf32, #tpu.memory_space<vmem>>, vector<1x8x8xf32>
    %595 = vector.shape_cast %594 : vector<1x8x8xf32> to vector<8x8xf32>
    %596 = vector.shape_cast %593 : vector<8x8xf32> to vector<1x8x8xf32>
    tpu.vector_store %arg3[%c0_491, %c0_492, %c0_493], %596 {strides = array<i32>} : memref<1x8x8xf32, #tpu.memory_space<vmem>>, vector<1x8x8xf32>,
    return
  }
  func.func @transform_0(%arg0: i32) -> (i32, i32, i32, i32, i32) {
    %c0_i32 = arith.constant 0 : i32
    %c0_i32_0 = arith.constant 0 : i32
    %c0_i32_1 = arith.constant 0 : i32
    %c0_i32_2 = arith.constant 0 : i32
    %c0_i32_3 = arith.constant 0 : i32
    return %arg0, %c0_i32, %c0_i32_0, %c0_i32_1, %c0_i32_2 : i32, i32, i32, i32, i32
  }
  func.func @transform_1(%arg0: i32) -> i32 {
    %c0_i32 = arith.constant 0 : i32
    %c0_i32_0 = arith.constant 0 : i32
    return %c0_i32 : i32
  }
  func.func @transform_2(%arg0: i32) -> (i32, i32, i32) {
    %c0_i32 = arith.constant 0 : i32
    %c0_i32_0 = arith.constant 0 : i32
    %c0_i32_1 = arith.constant 0 : i32
    return %arg0, %c0_i32, %c0_i32_0 : i32, i32, i32
  }
}

module attributes {stable_mosaic.version = 11 : i64} {
  func.func @bn3_maxpool_kernel(%arg0: i32, %arg1: memref<1x8x8x64xf32, #tpu.memory_space<vmem>>, %arg2: memref<1x8x8x1xf32, #tpu.memory_space<vmem>>, %arg3: memref<1x1x1x64xf32, #tpu.memory_space<vmem>>, %arg4: memref<1x1x1x64xf32, #tpu.memory_space<vmem>>, %arg5: memref<1x4x4x64xf32, #tpu.memory_space<vmem>>, %arg6: memref<4x8x64xf32, #tpu.memory_space<vmem>>) attributes {dimension_semantics = [#tpu.dimension_semantics<parallel>], iteration_bounds = array<i64: 2>, scalar_prefetch = 0 : i64, scratch_operands = 1 : i64, tpu.core_type = #tpu.core_type<tc>, window_params = [{transform_indices = @transform_0, window_bounds = array<i64: 1, 8, 8, 64>}, {transform_indices = @transform_1, window_bounds = array<i64: 1, 8, 8, 1>}, {pipeline_mode = #tpu.pipeline_mode<synchronous>, transform_indices = @transform_2, window_bounds = array<i64: 1, 1, 1, 64>}, {pipeline_mode = #tpu.pipeline_mode<synchronous>, transform_indices = @transform_3, window_bounds = array<i64: 1, 1, 1, 64>}, {transform_indices = @transform_4, window_bounds = array<i64: 1, 4, 4, 64>}]} {
    %c0 = arith.constant 0 : index
    %c0_0 = arith.constant 0 : index
    %c0_1 = arith.constant 0 : index
    %c0_2 = arith.constant 0 : index
    %0 = vector.load %arg1[%c0, %c0_0, %c0_1, %c0_2] : memref<1x8x8x64xf32, #tpu.memory_space<vmem>>, vector<1x8x8x64xf32>
    %c0_3 = arith.constant 0 : index
    %c0_4 = arith.constant 0 : index
    %c0_5 = arith.constant 0 : index
    %c0_6 = arith.constant 0 : index
    %1 = vector.load %arg2[%c0_3, %c0_4, %c0_5, %c0_6] : memref<1x8x8x1xf32, #tpu.memory_space<vmem>>, vector<1x8x8x1xf32>
    %2 = vector.broadcast %1 : vector<1x8x8x1xf32> to vector<1x8x8x64xf32>
    %3 = arith.mulf %0, %2 : vector<1x8x8x64xf32>
    %c0_7 = arith.constant 0 : index
    %c0_8 = arith.constant 0 : index
    %c0_9 = arith.constant 0 : index
    %c0_10 = arith.constant 0 : index
    %4 = vector.load %arg3[%c0_7, %c0_8, %c0_9, %c0_10] : memref<1x1x1x64xf32, #tpu.memory_space<vmem>>, vector<1x1x1x64xf32>
    %5 = vector.broadcast %4 : vector<1x1x1x64xf32> to vector<1x8x8x64xf32>
    %6 = arith.mulf %3, %5 : vector<1x8x8x64xf32>
    %c0_11 = arith.constant 0 : index
    %c0_12 = arith.constant 0 : index
    %c0_13 = arith.constant 0 : index
    %c0_14 = arith.constant 0 : index
    %7 = vector.load %arg4[%c0_11, %c0_12, %c0_13, %c0_14] : memref<1x1x1x64xf32, #tpu.memory_space<vmem>>, vector<1x1x1x64xf32>
    %8 = vector.broadcast %7 : vector<1x1x1x64xf32> to vector<1x8x8x64xf32>
    %9 = arith.addf %6, %8 : vector<1x8x8x64xf32>
    %10 = vector.extract_strided_slice %9 {offsets = [0, 0, 0, 0], sizes = [1, 1, 8, 64], strides = [1, 1, 1, 1]} : vector<1x8x8x64xf32> to vector<1x1x8x64xf32>
    %11 = vector.shape_cast %10 : vector<1x1x8x64xf32> to vector<8x64xf32>
    %12 = vector.extract_strided_slice %9 {offsets = [0, 1, 0, 0], sizes = [1, 1, 8, 64], strides = [1, 1, 1, 1]} : vector<1x8x8x64xf32> to vector<1x1x8x64xf32>
    %13 = vector.shape_cast %12 : vector<1x1x8x64xf32> to vector<8x64xf32>
    %14 = arith.maximumf %11, %13 : vector<8x64xf32>
    %c0_15 = arith.constant 0 : index
    %c0_16 = arith.constant 0 : index
    %c0_17 = arith.constant 0 : index
    %15 = vector.load %arg6[%c0_15, %c0_16, %c0_17] : memref<4x8x64xf32, #tpu.memory_space<vmem>>, vector<1x8x64xf32>
    %16 = vector.shape_cast %15 : vector<1x8x64xf32> to vector<8x64xf32>
    %17 = vector.shape_cast %14 : vector<8x64xf32> to vector<1x8x64xf32>
    tpu.vector_store %arg6[%c0_15, %c0_16, %c0_17], %17 {strides = array<i32>} : memref<4x8x64xf32, #tpu.memory_space<vmem>>, vector<1x8x64xf32>,
    %18 = vector.extract_strided_slice %9 {offsets = [0, 1, 0, 0], sizes = [1, 1, 8, 64], strides = [1, 1, 1, 1]} : vector<1x8x8x64xf32> to vector<1x1x8x64xf32>
    %19 = vector.shape_cast %18 : vector<1x1x8x64xf32> to vector<8x64xf32>
    %20 = vector.extract_strided_slice %9 {offsets = [0, 2, 0, 0], sizes = [1, 1, 8, 64], strides = [1, 1, 1, 1]} : vector<1x8x8x64xf32> to vector<1x1x8x64xf32>
    %21 = vector.shape_cast %20 : vector<1x1x8x64xf32> to vector<8x64xf32>
    %22 = arith.maximumf %19, %21 : vector<8x64xf32>
    %23 = vector.extract_strided_slice %9 {offsets = [0, 3, 0, 0], sizes = [1, 1, 8, 64], strides = [1, 1, 1, 1]} : vector<1x8x8x64xf32> to vector<1x1x8x64xf32>
    %24 = vector.shape_cast %23 : vector<1x1x8x64xf32> to vector<8x64xf32>
    %25 = arith.maximumf %22, %24 : vector<8x64xf32>
    %c1 = arith.constant 1 : index
    %c0_18 = arith.constant 0 : index
    %c0_19 = arith.constant 0 : index
    %26 = vector.load %arg6[%c1, %c0_18, %c0_19] : memref<4x8x64xf32, #tpu.memory_space<vmem>>, vector<1x8x64xf32>
    %27 = vector.shape_cast %26 : vector<1x8x64xf32> to vector<8x64xf32>
    %28 = vector.shape_cast %25 : vector<8x64xf32> to vector<1x8x64xf32>
    tpu.vector_store %arg6[%c1, %c0_18, %c0_19], %28 {strides = array<i32>} : memref<4x8x64xf32, #tpu.memory_space<vmem>>, vector<1x8x64xf32>,
    %29 = vector.extract_strided_slice %9 {offsets = [0, 3, 0, 0], sizes = [1, 1, 8, 64], strides = [1, 1, 1, 1]} : vector<1x8x8x64xf32> to vector<1x1x8x64xf32>
    %30 = vector.shape_cast %29 : vector<1x1x8x64xf32> to vector<8x64xf32>
    %31 = vector.extract_strided_slice %9 {offsets = [0, 4, 0, 0], sizes = [1, 1, 8, 64], strides = [1, 1, 1, 1]} : vector<1x8x8x64xf32> to vector<1x1x8x64xf32>
    %32 = vector.shape_cast %31 : vector<1x1x8x64xf32> to vector<8x64xf32>
    %33 = arith.maximumf %30, %32 : vector<8x64xf32>
    %34 = vector.extract_strided_slice %9 {offsets = [0, 5, 0, 0], sizes = [1, 1, 8, 64], strides = [1, 1, 1, 1]} : vector<1x8x8x64xf32> to vector<1x1x8x64xf32>
    %35 = vector.shape_cast %34 : vector<1x1x8x64xf32> to vector<8x64xf32>
    %36 = arith.maximumf %33, %35 : vector<8x64xf32>
    %c2 = arith.constant 2 : index
    %c0_20 = arith.constant 0 : index
    %c0_21 = arith.constant 0 : index
    %37 = vector.load %arg6[%c2, %c0_20, %c0_21] : memref<4x8x64xf32, #tpu.memory_space<vmem>>, vector<1x8x64xf32>
    %38 = vector.shape_cast %37 : vector<1x8x64xf32> to vector<8x64xf32>
    %39 = vector.shape_cast %36 : vector<8x64xf32> to vector<1x8x64xf32>
    tpu.vector_store %arg6[%c2, %c0_20, %c0_21], %39 {strides = array<i32>} : memref<4x8x64xf32, #tpu.memory_space<vmem>>, vector<1x8x64xf32>,
    %40 = vector.extract_strided_slice %9 {offsets = [0, 5, 0, 0], sizes = [1, 1, 8, 64], strides = [1, 1, 1, 1]} : vector<1x8x8x64xf32> to vector<1x1x8x64xf32>
    %41 = vector.shape_cast %40 : vector<1x1x8x64xf32> to vector<8x64xf32>
    %42 = vector.extract_strided_slice %9 {offsets = [0, 6, 0, 0], sizes = [1, 1, 8, 64], strides = [1, 1, 1, 1]} : vector<1x8x8x64xf32> to vector<1x1x8x64xf32>
    %43 = vector.shape_cast %42 : vector<1x1x8x64xf32> to vector<8x64xf32>
    %44 = arith.maximumf %41, %43 : vector<8x64xf32>
    %45 = vector.extract_strided_slice %9 {offsets = [0, 7, 0, 0], sizes = [1, 1, 8, 64], strides = [1, 1, 1, 1]} : vector<1x8x8x64xf32> to vector<1x1x8x64xf32>
    %46 = vector.shape_cast %45 : vector<1x1x8x64xf32> to vector<8x64xf32>
    %47 = arith.maximumf %44, %46 : vector<8x64xf32>
    %c3 = arith.constant 3 : index
    %c0_22 = arith.constant 0 : index
    %c0_23 = arith.constant 0 : index
    %48 = vector.load %arg6[%c3, %c0_22, %c0_23] : memref<4x8x64xf32, #tpu.memory_space<vmem>>, vector<1x8x64xf32>
    %49 = vector.shape_cast %48 : vector<1x8x64xf32> to vector<8x64xf32>
    %50 = vector.shape_cast %47 : vector<8x64xf32> to vector<1x8x64xf32>
    tpu.vector_store %arg6[%c3, %c0_22, %c0_23], %50 {strides = array<i32>} : memref<4x8x64xf32, #tpu.memory_space<vmem>>, vector<1x8x64xf32>,
    %c0_24 = arith.constant 0 : index
    %c0_25 = arith.constant 0 : index
    %c0_26 = arith.constant 0 : index
    %51 = vector.load %arg6[%c0_24, %c0_25, %c0_26] : memref<4x8x64xf32, #tpu.memory_space<vmem>>, vector<4x8x64xf32>
    %cst = arith.constant 0xFF800000 : f32
    %52 = vector.broadcast %cst : f32 to vector<4x1x64xf32>
    %53 = vector.extract_strided_slice %51 {offsets = [0, 0, 0], sizes = [4, 7, 64], strides = [1, 1, 1]} : vector<4x8x64xf32> to vector<4x7x64xf32>
    %54 = tpu.concatenate %52, %53 in 1 : vector<4x1x64xf32>, vector<4x7x64xf32> -> vector<4x8x64xf32>
    %55 = vector.extract_strided_slice %51 {offsets = [0, 1, 0], sizes = [4, 7, 64], strides = [1, 1, 1]} : vector<4x8x64xf32> to vector<4x7x64xf32>
    %56 = tpu.concatenate %55, %52 in 1 : vector<4x7x64xf32>, vector<4x1x64xf32> -> vector<4x8x64xf32>
    %57 = arith.maximumf %51, %54 : vector<4x8x64xf32>
    %58 = arith.maximumf %57, %56 : vector<4x8x64xf32>
    %c0_27 = arith.constant 0 : index
    %c0_28 = arith.constant 0 : index
    %c0_29 = arith.constant 0 : index
    %59 = vector.load %arg6[%c0_27, %c0_28, %c0_29] : memref<4x8x64xf32, #tpu.memory_space<vmem>>, vector<4x8x64xf32>
    tpu.vector_store %arg6[%c0_27, %c0_28, %c0_29], %58 {strides = array<i32>} : memref<4x8x64xf32, #tpu.memory_space<vmem>>, vector<4x8x64xf32>,
    %c0_30 = arith.constant 0 : index
    %c0_31 = arith.constant 0 : index
    %c0_32 = arith.constant 0 : index
    %60 = tpu.strided_load %arg6[%c0_30, %c0_31, %c0_32] {strides = array<i32: 1, 2, 1>} : memref<4x8x64xf32, #tpu.memory_space<vmem>>, vector<4x4x64xf32>
    %c0_33 = arith.constant 0 : index
    %c0_34 = arith.constant 0 : index
    %c0_35 = arith.constant 0 : index
    %c0_36 = arith.constant 0 : index
    %61 = vector.load %arg5[%c0_33, %c0_34, %c0_35, %c0_36] : memref<1x4x4x64xf32, #tpu.memory_space<vmem>>, vector<1x4x4x64xf32>
    %62 = vector.shape_cast %61 : vector<1x4x4x64xf32> to vector<4x4x64xf32>
    %63 = vector.shape_cast %60 : vector<4x4x64xf32> to vector<1x4x4x64xf32>
    tpu.vector_store %arg5[%c0_33, %c0_34, %c0_35, %c0_36], %63 {strides = array<i32>} : memref<1x4x4x64xf32, #tpu.memory_space<vmem>>, vector<1x4x4x64xf32>,
    return
  }
  func.func @transform_0(%arg0: i32) -> (i32, i32, i32, i32) {
    %c0_i32 = arith.constant 0 : i32
    %c0_i32_0 = arith.constant 0 : i32
    %c0_i32_1 = arith.constant 0 : i32
    %c0_i32_2 = arith.constant 0 : i32
    return %arg0, %c0_i32, %c0_i32_0, %c0_i32_1 : i32, i32, i32, i32
  }
  func.func @transform_1(%arg0: i32) -> (i32, i32, i32, i32) {
    %c0_i32 = arith.constant 0 : i32
    %c0_i32_0 = arith.constant 0 : i32
    %c0_i32_1 = arith.constant 0 : i32
    %c0_i32_2 = arith.constant 0 : i32
    return %arg0, %c0_i32, %c0_i32_0, %c0_i32_1 : i32, i32, i32, i32
  }
  func.func @transform_2(%arg0: i32) -> (i32, i32, i32, i32) {
    %c0_i32 = arith.constant 0 : i32
    %c0_i32_0 = arith.constant 0 : i32
    %c0_i32_1 = arith.constant 0 : i32
    %c0_i32_2 = arith.constant 0 : i32
    %c0_i32_3 = arith.constant 0 : i32
    return %c0_i32, %c0_i32_0, %c0_i32_1, %c0_i32_2 : i32, i32, i32, i32
  }
  func.func @transform_3(%arg0: i32) -> (i32, i32, i32, i32) {
    %c0_i32 = arith.constant 0 : i32
    %c0_i32_0 = arith.constant 0 : i32
    %c0_i32_1 = arith.constant 0 : i32
    %c0_i32_2 = arith.constant 0 : i32
    %c0_i32_3 = arith.constant 0 : i32
    return %c0_i32, %c0_i32_0, %c0_i32_1, %c0_i32_2 : i32, i32, i32, i32
  }
  func.func @transform_4(%arg0: i32) -> (i32, i32, i32, i32) {
    %c0_i32 = arith.constant 0 : i32
    %c0_i32_0 = arith.constant 0 : i32
    %c0_i32_1 = arith.constant 0 : i32
    %c0_i32_2 = arith.constant 0 : i32
    return %arg0, %c0_i32, %c0_i32_0, %c0_i32_1 : i32, i32, i32, i32
  }
}

</mosaic_0001>

<bundles_post_ra>
// kernel: firstcov_forward.8
= control target key start
LH: loop header
LB: loop body
LE: loop exit
PB: predicated region body
PF: predicated region fallthrough
CT: control target
= control target key end

     0   :  { %s754_s21 = smov 0   ;;  %s756_s22 = smov 0   ;;  %s850_s0 = inlined_call_operand.vmem [shape: f32[2,64,64], index: 0, kind: input, shape index: {}]   ;;  %s851_s1 = inlined_call_operand.vmem [shape: f32[1,1,64], index: 1, kind: input, shape index: {}]   ;;  %s852_s2 = inlined_call_operand.vmem [shape: f32[1,1,64], index: 2, kind: input, shape index: {}]   ;;  %s853_s3 = inlined_call_operand.vmem [shape: f32[2,64,64], index: 3, kind: output, shape index: {0}]   ;;  %s854_s4 = inlined_call_operand.vmem [shape: f32[2,1,1,64], index: 4, kind: output, shape index: {1}]   ;;  %s855_s5 = inlined_call_operand.vmem [shape: f32[2,1,1,64], index: 5, kind: output, shape index: {2}]   ;;  %s856_s6 = inlined_call_operand.vmem [shape: f32[2,1,1,64], index: 6, kind: output, shape index: {3}]  }
   0x1   :  { %s758_s23 = smov 0  }
   0x2 LB: > { %s29_s24 = sadd.s32 1, %s713_s22  ;;  %p660_p0 = scmp.ge.s32.totalorder %s717_s23, 1  ;;  %s717_s23 = sphi %s758_s23, %s17_s23   ;;  %s713_s22 = sphi %s756_s22, %s858_s22   ;;  %s709_s21 = sphi %s754_s21, %s857_s21  }
   0x3   : > { %p31_p1 = scmp.ge.s32.totalorder %s29_s24, 2  ;;  %p246_p2 = scmp.lt.s32.totalorder %s717_s23, 3 }
   0x5   : > { %s860_s24 = smov (%p31_p1, %s29_s24), 0  ;;  %p247_p3 = pnand %p660_p0, %p246_p2 }
   0x6   : > { %p303_p4 = scmp.lt.s32.totalorder (!%p247_p3), %s709_s21, 1 }
   0x7   : > { %250 = sbr.rel (%p247_p3) target bundleno = 55 (0x37), region = 32 }
   0xc   : > { %s862_s21 = smov (!%p303_p4, %s709_s21), 1  ;;  %v693_v0 = vld [vmem:[%s851_s1] ss:$0 sm:$0xff]  ;;  %vm380_vm0 = vcmask 523264   ;;  %vm410_vm1 = vcmask 516096  }
   0xd   : > { %s667_s27 = sshll.u32 %s862_s21, 6  ;;  %v694_v1 = vld [vmem:[%s852_s2] ss:$0 sm:$0xff]  ;;  %s327_s14 = scalar_lea.vmem %s854_s4, %s862_s21 }
   0xe   : > { %s310_s30 = scalar_lea.vmem %s850_s0, %s667_s27  ;;  %s787_s11 = scalar_lea.vmem %s853_s3, %s667_s27 }
   0xf   : > { %v340_v2 = vld [vmem:[%s310_s30] sm:$0xff]  ;;  %v341_v3 = vld [vmem:[%s310_s30 + $0x8] sm:$0xff]  ;;  %v342_v4 = vld [vmem:[%s310_s30 + $0x10] sm:$0xff]  ;;  %s333_s17 = scalar_lea.vmem %s855_s5, %s862_s21  ;;  %s339_s20 = scalar_lea.vmem %s856_s6, %s862_s21 }
  0x10   : > { %v352_v5 = vmul.f32 %v693_v0, %v340_v2  ;;  %v353_v6 = vmul.f32 %v693_v0, %v341_v3  ;;  %v354_v7 = vmul.f32 %v693_v0, %v342_v4  ;;  %v343_v8 = vld [vmem:[%s310_s30 + $0x18] sm:$0xff]  ;;  %v344_v9 = vld [vmem:[%s310_s30 + $0x20] sm:$0xff]  ;;  %v345_v10 = vld [vmem:[%s310_s30 + $0x28] sm:$0xff] }
  0x11   : > { %v355_v11 = vmul.f32 %v693_v0, %v343_v8  ;;  %v356_v12 = vmul.f32 %v693_v0, %v344_v9  ;;  %v357_v13 = vmul.f32 %v693_v0, %v345_v10  ;;  %v346_v14 = vld [vmem:[%s310_s30 + $0x30] sm:$0xff]  ;;  %v347_v15 = vld [vmem:[%s310_s30 + $0x38] sm:$0xff] }
  0x12   : > { %v364_v16 = vadd.f32 %v694_v1, %v352_v5  ;;  %v365_v17 = vadd.f32 %v694_v1, %v353_v6  ;;  %v366_v18 = vadd.f32 %v694_v1, %v354_v7  ;;  %v358_v19 = vmul.f32 %v693_v0, %v346_v14 }
  0x13   : > { %v367_v20 = vadd.f32 %v694_v1, %v355_v11  ;;  %v368_v21 = vadd.f32 %v694_v1, %v356_v12  ;;  %v369_v22 = vadd.f32 %v694_v1, %v357_v13  ;;  %v359_v23 = vmul.f32 %v693_v0, %v347_v15 }
  0x14   : > { %v372_v24 = vmax.f32 %v364_v16, 0.0  ;;  %v373_v25 = vmax.f32 %v365_v17, 0.0  ;;  %v374_v26 = vmax.f32 %v366_v18, 0.0  ;;  %v370_v29 = vadd.f32 %v694_v1, %v358_v19 }
  0x15   : > { %v375_v27 = vmax.f32 %v367_v20, 0.0  ;;  %v376_v28 = vmax.f32 %v368_v21, 0.0  ;;  %v371_v30 = vadd.f32 %v694_v1, %v359_v23  ;;  %v377_v38 = vmax.f32 %v369_v22, 0.0 }
  0x16   : > { %381 = vst.msk [vmem:[%s787_s11] sm:$0xff] %vm380_vm0, %v372_v24  ;;  %v389_v31 = vsel %vm380_vm0, %v372_v24, 0.0  ;;  %v434_v32 = vmul.f32 %v372_v24, %v372_v24  ;;  %v390_v33 = vsel %vm380_vm0, %v373_v25, 0.0  ;;  %v435_v34 = vmul.f32 %v373_v25, %v373_v25 }
  0x17   : > { %382 = vst.msk [vmem:[%s787_s11 + $0x8] sm:$0xff] %vm380_vm0, %v373_v25  ;;  %v391_v35 = vadd.f32 %v390_v33, %v389_v31  ;;  %v392_v36 = vsel %vm380_vm0, %v374_v26, 0.0  ;;  %v436_v37 = vmul.f32 %v374_v26, %v374_v26  ;;  %v394_v41 = vsel %vm380_vm0, %v375_v27, 0.0 }
  0x18   : > { %v442_v39 = vsel %vm380_vm0, %v434_v32, 0.0  ;;  %v443_v40 = vsel %vm380_vm0, %v435_v34, 0.0  ;;  %383 = vst.msk [vmem:[%s787_s11 + $0x10] sm:$0xff] %vm380_vm0, %v374_v26  ;;  %v437_v42 = vmul.f32 %v375_v27, %v375_v27  ;;  %v396_v46 = vsel %vm380_vm0, %v376_v28, 0.0 }
  0x19   : > { %v444_v43 = vadd.f32 %v443_v40, %v442_v39  ;;  %v393_v44 = vadd.f32 %v392_v36, %v391_v35  ;;  %v445_v45 = vsel %vm380_vm0, %v436_v37, 0.0  ;;  %384 = vst.msk [vmem:[%s787_s11 + $0x18] sm:$0xff] %vm380_vm0, %v375_v27  ;;  %v438_v48 = vmul.f32 %v376_v28, %v376_v28 }
  0x1a   : > { %v447_v47 = vsel %vm380_vm0, %v437_v42, 0.0  ;;  %385 = vst.msk [vmem:[%s787_s11 + $0x20] sm:$0xff] %vm380_vm0, %v376_v28  ;;  %v378_v49 = vmax.f32 %v370_v29, 0.0  ;;  %v379_v50 = vmax.f32 %v371_v30, 0.0  ;;  %v439_v53 = vmul.f32 %v377_v38, %v377_v38 }
  0x1b   : > { %v446_v51 = vadd.f32 %v445_v45, %v444_v43  ;;  %v395_v52 = vadd.f32 %v394_v41, %v393_v44  ;;  %386 = vst.msk [vmem:[%s787_s11 + $0x28] sm:$0xff] %vm380_vm0, %v377_v38  ;;  %v412_v54 = vsel %vm380_vm0, %v372_v24, -inf  ;;  %v398_v55 = vsel %vm380_vm0, %v377_v38, 0.0 }
  0x1c   : > { %387 = vst.msk [vmem:[%s787_s11 + $0x30] sm:$0xff] %vm380_vm0, %v378_v49  ;;  %v400_v56 = vsel %vm380_vm0, %v378_v49, 0.0  ;;  %v413_v57 = vsel %vm380_vm0, %v373_v25, -inf  ;;  %v414_v58 = vsel %vm380_vm0, %v374_v26, -inf  ;;  %v415_v60 = vsel %vm380_vm0, %v375_v27, -inf }
  0x1d   : > { %388 = vst.msk [vmem:[%s787_s11 + $0x38] sm:$0xff] %vm380_vm0, %v379_v50  ;;  %v397_v59 = vadd.f32 %v396_v46, %v395_v52  ;;  %v416_v61 = vsel %vm380_vm0, %v376_v28, -inf  ;;  %v418_v62 = vsel %vm380_vm0, %v377_v38, -inf  ;;  %v420_v1 = vsel %vm380_vm0, %v378_v49, -inf }
  0x1e   : > { %v417_v63 = vmax.f32 %v412_v54, %v416_v61  ;;  %v419_v0 = vmax.f32 %v413_v57, %v418_v62  ;;  %v422_v2 = vsel %vm380_vm0, %v379_v50, -inf  ;;  %v421_v4 = vmax.f32 %v414_v58, %v420_v1 }
  0x1f   : > { %v399_v3 = vadd.f32 %v398_v55, %v397_v59  ;;  %v423_v5 = vmax.f32 %v415_v60, %v422_v2  ;;  %v440_v6 = vmul.f32 %v378_v49, %v378_v49  ;;  %v402_v7 = vsel %vm380_vm0, %v379_v50, 0.0 }
  0x20   : > { %v424_v8 = vmax.f32 %v417_v63, %v419_v0  ;;  %v448_v9 = vadd.f32 %v447_v47, %v446_v51  ;;  %v449_v10 = vsel %vm380_vm0, %v438_v48, 0.0  ;;  %v441_v13 = vmul.f32 %v379_v50, %v379_v50 }
  0x21   : > { %v401_v11 = vadd.f32 %v400_v56, %v399_v3  ;;  %v425_v12 = vmax.f32 %v421_v4, %v423_v5  ;;  %v451_v14 = vsel %vm380_vm0, %v439_v53, 0.0  ;;  %v453_v18 = vsel %vm380_vm0, %v440_v6, 0.0 }
  0x22   : > { %v450_v15 = vadd.f32 %v449_v10, %v448_v9  ;;  %v455_v22 = vsel %vm380_vm0, %v441_v13, 0.0 }
  0x23   : > { %v403_v16 = vadd.f32 %v402_v7, %v401_v11  ;;  %v426_v17 = vmax.f32 %v424_v8, %v425_v12 }
  0x24   : > { %v452_v19 = vadd.f32 %v451_v14, %v450_v15 }
  0x25   : > { %v404_v20 = vrot.slane %v403_v16, 4  ;;  %v427_v21 = vrot.slane %v426_v17, 4 }
  0x26   : > { %v454_v23 = vadd.f32 %v453_v18, %v452_v19 }
  0x27   : > { %v405_v24 = vadd.f32 %v404_v20, %v403_v16  ;;  %v428_v25 = vmax.f32 %v426_v17, %v427_v21 }
  0x28   : > { %v456_v26 = vadd.f32 %v455_v22, %v454_v23 }
  0x29   : > { %v406_v27 = vrot.slane %v405_v24, 2  ;;  %v429_v28 = vrot.slane %v428_v25, 2 }
  0x2a   : > { %v457_v29 = vrot.slane %v456_v26, 4 }
  0x2b   : > { %v407_v30 = vadd.f32 %v406_v27, %v405_v24  ;;  %v430_v31 = vmax.f32 %v428_v25, %v429_v28 }
  0x2c   : > { %v458_v32 = vadd.f32 %v457_v29, %v456_v26 }
  0x2d   : > { %v408_v33 = vrot.slane %v407_v30, 1  ;;  %v431_v34 = vrot.slane %v430_v31, 1 }
  0x2e   : > { %v459_v35 = vrot.slane %v458_v32, 2 }
  0x2f   : > { %v409_v36 = vadd.f32 %v408_v33, %v407_v30  ;;  %v432_v37 = vmax.f32 %v430_v31, %v431_v34 }
  0x30   : > { %v460_v38 = vadd.f32 %v459_v35, %v458_v32 }
  0x31   : > { %411 = vst.msk [vmem:[%s327_s14] sm:$0x1] %vm410_vm1, %v409_v36 }
  0x32   : > { %433 = vst.msk [vmem:[%s333_s17] sm:$0x1] %vm410_vm1, %v432_v37  ;;  %v461_v39 = vrot.slane %v460_v38, 1 }
  0x34   : > { %v462_v40 = vadd.f32 %v461_v39, %v460_v38 }
  0x36   : > { %463 = vst.msk [vmem:[%s339_s20] sm:$0x1] %vm410_vm1, %v462_v40 }
  0x37 PF: > { %s17_s23 = sadd.s32 1, %s717_s23   ;;  %s857_s21 = smov %s713_s22 }
  0x38   : > { %p14_p5 = scmp.ge.s32.totalorder %s17_s23, 4   ;;  %s858_s22 = smov %s860_s24 }
  0x3a   :  { %16 = sbr.rel (!%p14_p5) target bundleno = 2 (0x2), region = 98 }

// kernel: firstcov_forward.9
= control target key start
LH: loop header
LB: loop body
LE: loop exit
PB: predicated region body
PF: predicated region fallthrough
CT: control target
= control target key end

     0   :  { %vm26_vm0 = vcmask 523264   ;;  %vm81_vm1 = vcmask 1043456   ;;  %vm77_vm2 = vcmask 31744   ;;  %vm147_vm6 = vcmask 517120   ;;  %s225_s2 = inlined_call_operand.vmem [shape: f32[64,4], index: 2, kind: input, shape index: {}]   ;;  %s226_s0 = inlined_call_operand.vmem [shape: f32[2,64], index: 0, kind: input, shape index: {}]   ;;  %s227_s1 = inlined_call_operand.vmem [shape: f32[2,64], index: 1, kind: input, shape index: {}]   ;;  %s228_s3 = inlined_call_operand.vmem [shape: f32[4,64], index: 3, kind: input, shape index: {}]   ;;  %s229_s4 = inlined_call_operand.vmem [shape: f32[2,64], index: 4, kind: output, shape index: {}]  }
   0x1   :  { %v25_v0 = vld [vmem:[%s225_s2 + $0x38] sm:$0xff]  ;;  %v24_v1 = vld [vmem:[%s225_s2 + $0x30] sm:$0xff]  ;;  %v23_v2 = vld [vmem:[%s225_s2 + $0x28] sm:$0xff] }
   0x2   :  { %38 = vmatpush.msra.mxu0 %v25_v0  ;;  %64 = vmatpush.msra.mxu1 %v25_v0  ;;  %v22_v3 = vld [vmem:[%s225_s2 + $0x20] sm:$0xff]  ;;  %v21_v4 = vld [vmem:[%s225_s2 + $0x18] sm:$0xff]  ;;  %v20_v5 = vld [vmem:[%s225_s2 + $0x10] sm:$0xff] }
   0x3   :  { %v19_v6 = vld [vmem:[%s225_s2 + $0x8] sm:$0xff]  ;;  %v18_v7 = vld [vmem:[%s225_s2] sm:$0xff] }
   0x4   :  { %39 = vmatpush.msra.mxu0 %v24_v1  ;;  %65 = vmatpush.msra.mxu1 %v24_v1  ;;  %v17_v8 = vld [vmem:[%s226_s0] sm:$0x3] }
   0x5   :  { %v52_v9 = vld [vmem:[%s227_s1] sm:$0x3] }
   0x6   :  { %40 = vmatpush.msra.mxu0 %v23_v2  ;;  %66 = vmatpush.msra.mxu1 %v23_v2  ;;  %v51_v10 = vld [vmem:[%s228_s3] sm:$0xf] }
   0x7   :  { %155 = vmatpush.msk.msra.mxu2 %vm81_vm1, %v51_v10  ;;  %157 = vmatpush.msk.msra.mxu3 %vm81_vm1, %v51_v10 }
   0x8   :  { %41 = vmatpush.msra.mxu0 %v22_v3  ;;  %67 = vmatpush.msra.mxu1 %v22_v3 }
   0xa   :  { %42 = vmatpush.msra.mxu0 %v21_v4  ;;  %68 = vmatpush.msra.mxu1 %v21_v4 }
   0xc   :  { %43 = vmatpush.msra.mxu0 %v20_v5  ;;  %69 = vmatpush.msra.mxu1 %v20_v5 }
   0xe   :  { %44 = vmatpush.msra.mxu0 %v19_v6  ;;  %70 = vmatpush.msra.mxu1 %v19_v6 }
  0x10   :  { %45 = vmatpush.msra.mxu0 %v18_v7  ;;  %71 = vmatpush.msra.mxu1 %v18_v7 }
  0x11   :  { %153 = vmatmul.msk.f32.vlgmr.msra.gmra.mxu0 %vm26_vm0, %v17_v8  ;;  %154 = vmatmul.msk.f32.vlgmr.msra.gmra.mxu1 %vm26_vm0, %v52_v9 }
  0x8e   :  { %v47_v11 = vpop.f32.mrf.mxu0  ;;  %v73_v12 = vpop.f32.mrf.mxu1 }
  0x8f   :  { %v50_v13 = vmax.f32 %v47_v11, 0.0  ;;  %v76_v14 = vmax.f32 %v73_v12, 0.0 }
  0x91   :  { %156 = vmatmul.msk.f32.vlgmr.msra.gmra.mxu2 %vm77_vm2, %v76_v14  ;;  %158 = vmatmul.msk.f32.vlgmr.msra.gmra.mxu3 %vm77_vm2, %v50_v13 }
 0x114   :  { %v102_v15 = vpop.f32.mrf.mxu2  ;;  %v125_v16 = vpop.f32.mrf.mxu3 }
 0x115   :  { %v126_v17 = vadd.f32 %v125_v16, %v102_v15 }
 0x117   :  { %v159_v18 = vmul.f32 -1.442695, %v126_v17 }
 0x119   :  { %160 = vpow2.f32 %v159_v18 }
 0x11f   :  { %v161_v19 = vpop.eup %160 }
 0x120   :  { %v131_v20 = vadd.f32 1.0, %v161_v19 }
 0x122   :  { %162 = vrcp.f32 %v131_v20  ;;  %v143_v24 = vand.u32 2147483648, %v131_v20  ;;  %v141_v26 = vand.u32 2147483647, %v131_v20  ;;  %vm137_vm4 = vweird.f32 %v131_v20 }
 0x124   :  { %v144_v28 = vor.u32 1.1754944e-38, %v143_v24  ;;  %vm142_vm7 = vcmp.eq.f32.partialorder %v141_v26, 8.507059e+37 }
 0x128   :  { %v163_v21 = vpop.eup %162 }
 0x129   :  { %v133_v22 = vmul.f32 %v163_v21, %v131_v20  ;;  %vm138_vm3 = vweird.f32 %v163_v21 }
 0x12a   :  { %vm139_vm5 = vmor %vm137_vm4, %vm138_vm3 }
 0x12b   :  { %v134_v23 = vsub.f32 1.0, %v133_v22 }
 0x12d   :  { %v135_v25 = vmul.f32 %v163_v21, %v134_v23 }
 0x12f   :  { %v136_v27 = vadd.f32 %v163_v21, %v135_v25 }
 0x131   :  { %v140_v29 = vsel %vm139_vm5, %v163_v21, %v136_v27 }
 0x132   :  { %v145_v30 = vsel %vm142_vm7, %v144_v28, %v140_v29 }
 0x133   :  { %148 = vst.msk [vmem:[%s229_s4] sm:$0x3] %vm147_vm6, %v145_v30 }

// kernel: firstcov_forward.7
= control target key start
LH: loop header
LB: loop body
LE: loop exit
PB: predicated region body
PF: predicated region fallthrough
CT: control target
= control target key end

     0   :  { %vm343_vm0 = vcmask 523264   ;;  %vm397_vm1 = vcmask 516096   ;;  %s975_s1 = inlined_call_operand.vmem [shape: bf16[256,64], index: 1, kind: input, shape index: {}]   ;;  %s976_s2 = inlined_call_operand.vmem [shape: f32[1,64], index: 2, kind: input, shape index: {}]   ;;  %s977_s0 = inlined_call_operand.vmem [shape: bf16[128,256], index: 0, kind: input, shape index: {}]   ;;  %s978_s3 = inlined_call_operand.vmem [shape: f32[128,64], index: 3, kind: output, shape index: {0}]   ;;  %s979_s4 = inlined_call_operand.vmem [shape: f32[1,1,64], index: 4, kind: output, shape index: {1}]   ;;  %s980_s5 = inlined_call_operand.vmem [shape: f32[1,1,64], index: 5, kind: output, shape index: {2}]  }
   0x1   :  { %v616_v0 = vld [vmem:[%s975_s1 + $0x38] sm:$0xff]  ;;  %v615_v2 = vld [vmem:[%s975_s1 + $0x30] sm:$0xff]  ;;  %v614_v4 = vld [vmem:[%s975_s1 + $0x28] sm:$0xff] }
   0x2   :  { %v624_v1 = vld [vmem:[%s975_s1 + $0x78] sm:$0xff]  ;;  %245 = vmatpush.bf16.msra.mxu0 %v616_v0  ;;  %v623_v3 = vld [vmem:[%s975_s1 + $0x70] sm:$0xff]  ;;  %625 = vmatpush.bf16.msra.mxu2 %v616_v0  ;;  %v622_v5 = vld [vmem:[%s975_s1 + $0x68] sm:$0xff] }
   0x3   :  { %294 = vmatpush.bf16.msra.mxu1 %v624_v1  ;;  %633 = vmatpush.bf16.msra.mxu3 %v624_v1  ;;  %v613_v6 = vld [vmem:[%s975_s1 + $0x20] sm:$0xff]  ;;  %v612_v8 = vld [vmem:[%s975_s1 + $0x18] sm:$0xff]  ;;  %v611_v10 = vld [vmem:[%s975_s1 + $0x10] sm:$0xff] }
   0x4   :  { %v621_v7 = vld [vmem:[%s975_s1 + $0x60] sm:$0xff]  ;;  %v620_v9 = vld [vmem:[%s975_s1 + $0x58] sm:$0xff]  ;;  %v619_v11 = vld [vmem:[%s975_s1 + $0x50] sm:$0xff] }
   0x5   :  { %v610_v12 = vld [vmem:[%s975_s1 + $0x8] sm:$0xff]  ;;  %v609_v14 = vld [vmem:[%s975_s1] sm:$0xff]  ;;  %v475_v28 = vld [vmem:[%s977_s0 + $0x10] sm:$0xf] }
   0x6   :  { %246 = vmatpush.bf16.msra.mxu0 %v615_v2  ;;  %626 = vmatpush.bf16.msra.mxu2 %v615_v2  ;;  %v618_v13 = vld [vmem:[%s975_s1 + $0x48] sm:$0xff]  ;;  %v617_v15 = vld [vmem:[%s975_s1 + $0x40] sm:$0xff]  ;;  %v596_v29 = vld [vmem:[%s977_s0 + $0x14] sm:$0xf0] }
   0x7   :  { %295 = vmatpush.bf16.msra.mxu1 %v623_v3  ;;  %634 = vmatpush.bf16.msra.mxu3 %v623_v3  ;;  %v467_v16 = vld [vmem:[%s977_s0] sm:$0xf]  ;;  %v594_v17 = vld [vmem:[%s977_s0 + $0x4] sm:$0xf0]  ;;  %v593_v18 = vld [vmem:[%s977_s0 + $0x4] sm:$0xf]  ;;  %v476_v36 = vor.u32 %v596_v29, %v475_v28 }
   0x8   :  { %v469_v19 = vld [vmem:[%s977_s0 + $0x8] sm:$0xf0]  ;;  %v499_v20 = vld [vmem:[%s977_s0 + $0x40] sm:$0xf]  ;;  %v602_v21 = vld [vmem:[%s977_s0 + $0x44] sm:$0xf0]  ;;  %v468_v24 = vor.u32 %v594_v17, %v467_v16 }
   0x9   :  { %v601_v22 = vld [vmem:[%s977_s0 + $0x44] sm:$0xf]  ;;  %v501_v23 = vld [vmem:[%s977_s0 + $0x48] sm:$0xf0]  ;;  %v472_v25 = vor.u32 %v593_v18, %v469_v19  ;;  %v500_v26 = vor.u32 %v602_v21, %v499_v20  ;;  %v595_v30 = vld [vmem:[%s977_s0 + $0x14] sm:$0xf] }
   0xa   :  { %247 = vmatpush.bf16.msra.mxu0 %v614_v4  ;;  %627 = vmatpush.bf16.msra.mxu2 %v614_v4  ;;  %v504_v27 = vor.u32 %v601_v22, %v501_v23  ;;  %v477_v31 = vld [vmem:[%s977_s0 + $0x18] sm:$0xf0]  ;;  %v507_v32 = vld [vmem:[%s977_s0 + $0x50] sm:$0xf]  ;;  %v604_v33 = vld [vmem:[%s977_s0 + $0x54] sm:$0xf0] }
   0xb   :  { %296 = vmatpush.bf16.msra.mxu1 %v622_v5  ;;  %635 = vmatpush.bf16.msra.mxu3 %v622_v5  ;;  %v603_v34 = vld [vmem:[%s977_s0 + $0x54] sm:$0xf]  ;;  %v509_v35 = vld [vmem:[%s977_s0 + $0x58] sm:$0xf0]  ;;  %v480_v37 = vor.u32 %v595_v30, %v477_v31  ;;  %v508_v38 = vor.u32 %v604_v33, %v507_v32  ;;  %v483_v40 = vld [vmem:[%s977_s0 + $0x20] sm:$0xf] }
   0xc   :  { %v512_v39 = vor.u32 %v603_v34, %v509_v35  ;;  %v598_v41 = vld [vmem:[%s977_s0 + $0x24] sm:$0xf0]  ;;  %v597_v42 = vld [vmem:[%s977_s0 + $0x24] sm:$0xf]  ;;  %v485_v43 = vld [vmem:[%s977_s0 + $0x28] sm:$0xf0] }
   0xd   :  { %v515_v44 = vld [vmem:[%s977_s0 + $0x60] sm:$0xf]  ;;  %v606_v45 = vld [vmem:[%s977_s0 + $0x64] sm:$0xf0]  ;;  %v605_v46 = vld [vmem:[%s977_s0 + $0x64] sm:$0xf]  ;;  %v484_v48 = vor.u32 %v598_v41, %v483_v40  ;;  %v488_v49 = vor.u32 %v597_v42, %v485_v43 }
   0xe   :  { %248 = vmatpush.bf16.msra.mxu0 %v613_v6  ;;  %628 = vmatpush.bf16.msra.mxu2 %v613_v6  ;;  %v517_v47 = vld [vmem:[%s977_s0 + $0x68] sm:$0xf0]  ;;  %v516_v50 = vor.u32 %v606_v45, %v515_v44  ;;  %v491_v52 = vld [vmem:[%s977_s0 + $0x30] sm:$0xf]  ;;  %v600_v53 = vld [vmem:[%s977_s0 + $0x34] sm:$0xf0] }
   0xf   :  { %297 = vmatpush.bf16.msra.mxu1 %v621_v7  ;;  %636 = vmatpush.bf16.msra.mxu3 %v621_v7  ;;  %v520_v51 = vor.u32 %v605_v46, %v517_v47  ;;  %v599_v54 = vld [vmem:[%s977_s0 + $0x34] sm:$0xf]  ;;  %v493_v55 = vld [vmem:[%s977_s0 + $0x38] sm:$0xf0]  ;;  %v523_v56 = vld [vmem:[%s977_s0 + $0x70] sm:$0xf]  ;;  %v492_v60 = vor.u32 %v600_v53, %v491_v52 }
  0x10   :  { %v608_v57 = vld [vmem:[%s977_s0 + $0x74] sm:$0xf0]  ;;  %v607_v58 = vld [vmem:[%s977_s0 + $0x74] sm:$0xf]  ;;  %v525_v59 = vld [vmem:[%s977_s0 + $0x78] sm:$0xf0]  ;;  %v496_v61 = vor.u32 %v599_v54, %v493_v55 }
  0x11   :  { %v524_v62 = vor.u32 %v608_v57, %v523_v56  ;;  %v528_v63 = vor.u32 %v607_v58, %v525_v59  ;;  %v819_v0 = vld [vmem:[%s976_s2] ss:$0 sm:$0xff] }
  0x12   :  { %249 = vmatpush.bf16.msra.mxu0 %v612_v8  ;;  %629 = vmatpush.bf16.msra.mxu2 %v612_v8 }
  0x13   :  { %298 = vmatpush.bf16.msra.mxu1 %v620_v9  ;;  %637 = vmatpush.bf16.msra.mxu3 %v620_v9 }
  0x16   :  { %250 = vmatpush.bf16.msra.mxu0 %v611_v10  ;;  %630 = vmatpush.bf16.msra.mxu2 %v611_v10 }
  0x17   :  { %299 = vmatpush.bf16.msra.mxu1 %v619_v11  ;;  %638 = vmatpush.bf16.msra.mxu3 %v619_v11 }
  0x1a   :  { %251 = vmatpush.bf16.msra.mxu0 %v610_v12  ;;  %631 = vmatpush.bf16.msra.mxu2 %v610_v12 }
  0x1b   :  { %300 = vmatpush.bf16.msra.mxu1 %v618_v13  ;;  %639 = vmatpush.bf16.msra.mxu3 %v618_v13 }
  0x1e   :  { %252 = vmatpush.bf16.msra.mxu0 %v609_v14  ;;  %632 = vmatpush.bf16.msra.mxu2 %v609_v14 }
  0x1f   :  { %301 = vmatpush.bf16.msra.mxu1 %v617_v15  ;;  %640 = vmatpush.bf16.msra.mxu3 %v617_v15 }
  0x21   :  { %253 = vmatmul.bf16.vlgmr.msra.gmra.mxu0 %v468_v24  ;;  %273 = vmatmul.bf16.vlgmr.msra.gmra.mxu2 %v500_v26 }
  0x22   :  { %302 = vmatmul.bf16.vlgmr.msra.gmra.mxu1 %v472_v25  ;;  %322 = vmatmul.bf16.vlgmr.msra.gmra.mxu3 %v504_v27 }
  0x31   :  { %258 = vmatmul.bf16.gmra.mxu0 %v476_v36  ;;  %278 = vmatmul.bf16.gmra.mxu2 %v508_v38 }
  0x32   :  { %307 = vmatmul.bf16.gmra.mxu1 %v480_v37  ;;  %327 = vmatmul.bf16.gmra.mxu3 %v512_v39 }
  0x41   :  { %263 = vmatmul.bf16.gmra.mxu0 %v484_v48  ;;  %283 = vmatmul.bf16.gmra.mxu2 %v516_v50 }
  0x42   :  { %312 = vmatmul.bf16.gmra.mxu1 %v488_v49  ;;  %332 = vmatmul.bf16.gmra.mxu3 %v520_v51 }
  0x51   :  { %268 = vmatmul.bf16.gmra.mxu0 %v492_v60  ;;  %288 = vmatmul.bf16.gmra.mxu2 %v524_v62 }
  0x52   :  { %317 = vmatmul.bf16.gmra.mxu1 %v496_v61  ;;  %337 = vmatmul.bf16.gmra.mxu3 %v528_v63 }
  0x9e   :  { %v254_v1 = vpop.f32.mrf.mxu0 }
  0x9f   :  { %v303_v2 = vpop.f32.mrf.mxu1  ;;  %v255_v3 = vadd.f32 %v819_v0, %v254_v1 }
  0xa1   :  { %v304_v4 = vadd.f32 %v303_v2, %v255_v3 }
  0xa3   :  { %344 = vst.msk [vmem:[%s978_s3] sm:$0xff] %vm343_vm0, %v304_v4  ;;  %v399_v46 = vmul.f32 %v304_v4, %v304_v4  ;;  %v360_v51 = vsel %vm343_vm0, %v304_v4, 0.0 }
  0xa4   :  { %v274_v5 = vpop.f32.mrf.mxu2 }
  0xa5   :  { %v323_v6 = vpop.f32.mrf.mxu3  ;;  %v275_v8 = vadd.f32 %v819_v0, %v274_v5  ;;  %v415_v59 = vsel %vm343_vm0, %v399_v46, 0.0 }
  0xa6   :  { %v256_v7 = vpop.f32.mrf.mxu0 }
  0xa7   :  { %v305_v9 = vpop.f32.mrf.mxu1  ;;  %v257_v10 = vadd.f32 %v819_v0, %v256_v7  ;;  %v828_v11 = vadd.f32 %v323_v6, %v275_v8 }
  0xa9   :  { %v306_v12 = vadd.f32 %v305_v9, %v257_v10  ;;  %352 = vst.msk [vmem:[%s978_s3 + $0x40] sm:$0xff] %vm343_vm0, %v828_v11 }
  0xab   :  { %345 = vst.msk [vmem:[%s978_s3 + $0x8] sm:$0xff] %vm343_vm0, %v306_v12  ;;  %v400_v45 = vmul.f32 %v306_v12, %v306_v12  ;;  %v361_v47 = vsel %vm343_vm0, %v306_v12, 0.0 }
  0xac   :  { %v276_v13 = vpop.f32.mrf.mxu2  ;;  %v362_v60 = vadd.f32 %v361_v47, %v360_v51 }
  0xad   :  { %v325_v14 = vpop.f32.mrf.mxu3  ;;  %v277_v16 = vadd.f32 %v819_v0, %v276_v13  ;;  %v416_v55 = vsel %vm343_vm0, %v400_v45, 0.0 }
  0xae   :  { %v259_v15 = vpop.f32.mrf.mxu0  ;;  %v417_v3 = vadd.f32 %v416_v55, %v415_v59 }
  0xaf   :  { %v308_v17 = vpop.f32.mrf.mxu1  ;;  %v260_v18 = vadd.f32 %v819_v0, %v259_v15  ;;  %v841_v19 = vadd.f32 %v325_v14, %v277_v16 }
  0xb1   :  { %v309_v20 = vadd.f32 %v308_v17, %v260_v18  ;;  %353 = vst.msk [vmem:[%s978_s3 + $0x48] sm:$0xff] %vm343_vm0, %v841_v19 }
  0xb3   :  { %346 = vst.msk [vmem:[%s978_s3 + $0x10] sm:$0xff] %vm343_vm0, %v309_v20  ;;  %v401_v48 = vmul.f32 %v309_v20, %v309_v20  ;;  %v363_v56 = vsel %vm343_vm0, %v309_v20, 0.0 }
  0xb4   :  { %v279_v21 = vpop.f32.mrf.mxu2  ;;  %v364_v4 = vadd.f32 %v363_v56, %v362_v60 }
  0xb5   :  { %v328_v22 = vpop.f32.mrf.mxu3  ;;  %v280_v24 = vadd.f32 %v819_v0, %v279_v21  ;;  %v418_v62 = vsel %vm343_vm0, %v401_v48, 0.0 }
  0xb6   :  { %v261_v23 = vpop.f32.mrf.mxu0  ;;  %v419_v8 = vadd.f32 %v418_v62, %v417_v3 }
  0xb7   :  { %v310_v25 = vpop.f32.mrf.mxu1  ;;  %v262_v26 = vadd.f32 %v819_v0, %v261_v23  ;;  %v854_v27 = vadd.f32 %v328_v22, %v280_v24 }
  0xb9   :  { %v311_v28 = vadd.f32 %v310_v25, %v262_v26  ;;  %354 = vst.msk [vmem:[%s978_s3 + $0x50] sm:$0xff] %vm343_vm0, %v854_v27 }
  0xbb   :  { %347 = vst.msk [vmem:[%s978_s3 + $0x18] sm:$0xff] %vm343_vm0, %v311_v28  ;;  %v402_v57 = vmul.f32 %v311_v28, %v311_v28  ;;  %v365_v63 = vsel %vm343_vm0, %v311_v28, 0.0 }
  0xbc   :  { %v281_v29 = vpop.f32.mrf.mxu2  ;;  %v366_v9 = vadd.f32 %v365_v63, %v364_v4 }
  0xbd   :  { %v330_v30 = vpop.f32.mrf.mxu3  ;;  %v282_v32 = vadd.f32 %v819_v0, %v281_v29  ;;  %v420_v5 = vsel %vm343_vm0, %v402_v57, 0.0 }
  0xbe   :  { %v264_v31 = vpop.f32.mrf.mxu0  ;;  %v421_v16 = vadd.f32 %v420_v5, %v419_v8 }
  0xbf   :  { %v313_v33 = vpop.f32.mrf.mxu1  ;;  %v265_v34 = vadd.f32 %v819_v0, %v264_v31  ;;  %v867_v35 = vadd.f32 %v330_v30, %v282_v32 }
  0xc1   :  { %v314_v36 = vadd.f32 %v313_v33, %v265_v34  ;;  %355 = vst.msk [vmem:[%s978_s3 + $0x58] sm:$0xff] %vm343_vm0, %v867_v35  ;;  %v407_v33 = vmul.f32 %v828_v11, %v828_v11  ;;  %v410_v55 = vmul.f32 %v867_v35, %v867_v35  ;;  %v381_v57 = vsel %vm343_vm0, %v867_v35, 0.0 }
  0xc3   :  { %348 = vst.msk [vmem:[%s978_s3 + $0x20] sm:$0xff] %vm343_vm0, %v314_v36  ;;  %v403_v1 = vmul.f32 %v314_v36, %v314_v36  ;;  %v367_v6 = vsel %vm343_vm0, %v314_v36, 0.0  ;;  %v430_v48 = vsel %vm343_vm0, %v407_v33, 0.0  ;;  %v436_v60 = vsel %vm343_vm0, %v410_v55, 0.0 }
  0xc4   :  { %v284_v37 = vpop.f32.mrf.mxu2  ;;  %v368_v17 = vadd.f32 %v367_v6, %v366_v9 }
  0xc5   :  { %v333_v38 = vpop.f32.mrf.mxu3  ;;  %v285_v40 = vadd.f32 %v819_v0, %v284_v37  ;;  %v422_v10 = vsel %vm343_vm0, %v403_v1, 0.0 }
  0xc6   :  { %v266_v39 = vpop.f32.mrf.mxu0  ;;  %v423_v24 = vadd.f32 %v422_v10, %v421_v16 }
  0xc7   :  { %v315_v41 = vpop.f32.mrf.mxu1  ;;  %v267_v42 = vadd.f32 %v819_v0, %v266_v39  ;;  %v880_v43 = vadd.f32 %v333_v38, %v285_v40  ;;  %v375_v39 = vsel %vm343_vm0, %v828_v11, 0.0  ;;  %v408_v40 = vmul.f32 %v841_v19, %v841_v19 }
  0xc9   :  { %v316_v44 = vadd.f32 %v315_v41, %v267_v42  ;;  %356 = vst.msk [vmem:[%s978_s3 + $0x60] sm:$0xff] %vm343_vm0, %v880_v43  ;;  %v383_v62 = vsel %vm343_vm0, %v880_v43, 0.0 }
  0xcb   :  { %349 = vst.msk [vmem:[%s978_s3 + $0x28] sm:$0xff] %vm343_vm0, %v316_v44  ;;  %v404_v7 = vmul.f32 %v316_v44, %v316_v44  ;;  %v369_v12 = vsel %vm343_vm0, %v316_v44, 0.0 }
  0xcc   :  { %v286_v49 = vpop.f32.mrf.mxu2  ;;  %v370_v25 = vadd.f32 %v369_v12, %v368_v17 }
  0xcd   :  { %v335_v50 = vpop.f32.mrf.mxu3  ;;  %v287_v53 = vadd.f32 %v819_v0, %v286_v49  ;;  %v424_v21 = vsel %vm343_vm0, %v404_v7, 0.0  ;;  %v377_v49 = vsel %vm343_vm0, %v841_v19, 0.0 }
  0xce   :  { %v269_v52 = vpop.f32.mrf.mxu0  ;;  %v425_v31 = vadd.f32 %v424_v21, %v423_v24 }
  0xcf   :  { %v318_v54 = vpop.f32.mrf.mxu1  ;;  %v270_v58 = vadd.f32 %v819_v0, %v269_v52  ;;  %v898_v61 = vadd.f32 %v335_v50, %v287_v53  ;;  %v409_v50 = vmul.f32 %v854_v27, %v854_v27  ;;  %v432_v53 = vsel %vm343_vm0, %v408_v40, 0.0 }
  0xd1   :  { %v319_v2 = vadd.f32 %v318_v54, %v270_v58  ;;  %357 = vst.msk [vmem:[%s978_s3 + $0x68] sm:$0xff] %vm343_vm0, %v898_v61  ;;  %v379_v54 = vsel %vm343_vm0, %v854_v27, 0.0  ;;  %v434_v19 = vsel %vm343_vm0, %v409_v50, 0.0  ;;  %v411_v58 = vmul.f32 %v880_v43, %v880_v43 }
  0xd2   :  { %v412_v63 = vmul.f32 %v898_v61, %v898_v61  ;;  %v385_v35 = vsel %vm343_vm0, %v898_v61, 0.0 }
  0xd3   :  { %350 = vst.msk [vmem:[%s978_s3 + $0x30] sm:$0xff] %vm343_vm0, %v319_v2  ;;  %v405_v13 = vmul.f32 %v319_v2, %v319_v2  ;;  %v371_v22 = vsel %vm343_vm0, %v319_v2, 0.0  ;;  %v438_v3 = vsel %vm343_vm0, %v411_v58, 0.0 }
  0xd4   :  { %v289_v14 = vpop.f32.mrf.mxu2  ;;  %v372_v32 = vadd.f32 %v371_v22, %v370_v25  ;;  %v440_v7 = vsel %vm343_vm0, %v412_v63, 0.0 }
  0xd5   :  { %v338_v15 = vpop.f32.mrf.mxu3  ;;  %v290_v20 = vadd.f32 %v819_v0, %v289_v14  ;;  %v426_v29 = vsel %vm343_vm0, %v405_v13, 0.0 }
  0xd6   :  { %v271_v18 = vpop.f32.mrf.mxu0  ;;  %v427_v37 = vadd.f32 %v426_v29, %v425_v31 }
  0xd7   :  { %v272_v23 = vadd.f32 %v819_v0, %v271_v18  ;;  %v320_v26 = vpop.f32.mrf.mxu1  ;;  %v339_v28 = vadd.f32 %v338_v15, %v290_v20 }
  0xd9   :  { %v321_v30 = vadd.f32 %v320_v26, %v272_v23  ;;  %358 = vst.msk [vmem:[%s978_s3 + $0x70] sm:$0xff] %vm343_vm0, %v339_v28  ;;  %v413_v4 = vmul.f32 %v339_v28, %v339_v28  ;;  %v387_v8 = vsel %vm343_vm0, %v339_v28, 0.0 }
  0xdb   :  { %351 = vst.msk [vmem:[%s978_s3 + $0x38] sm:$0xff] %vm343_vm0, %v321_v30  ;;  %v373_v34 = vsel %vm343_vm0, %v321_v30, 0.0  ;;  %v406_v36 = vmul.f32 %v321_v30, %v321_v30  ;;  %v442_v12 = vsel %vm343_vm0, %v413_v4, 0.0 }
  0xdc   :  { %v374_v38 = vadd.f32 %v373_v34, %v372_v32  ;;  %v291_v42 = vpop.f32.mrf.mxu2 }
  0xdd   :  { %v428_v41 = vsel %vm343_vm0, %v406_v36, 0.0  ;;  %v340_v44 = vpop.f32.mrf.mxu3  ;;  %v292_v47 = vadd.f32 %v819_v0, %v291_v42 }
  0xde   :  { %v376_v45 = vadd.f32 %v375_v39, %v374_v38  ;;  %v429_v46 = vadd.f32 %v428_v41, %v427_v37 }
  0xdf   :  { %v341_v52 = vadd.f32 %v340_v44, %v292_v47 }
  0xe0   :  { %v378_v11 = vadd.f32 %v377_v49, %v376_v45  ;;  %v431_v51 = vadd.f32 %v430_v48, %v429_v46 }
  0xe1   :  { %359 = vst.msk [vmem:[%s978_s3 + $0x78] sm:$0xff] %vm343_vm0, %v341_v52  ;;  %v414_v9 = vmul.f32 %v341_v52, %v341_v52  ;;  %v389_v13 = vsel %vm343_vm0, %v341_v52, 0.0 }
  0xe2   :  { %v380_v0 = vadd.f32 %v379_v54, %v378_v11  ;;  %v433_v56 = vadd.f32 %v432_v53, %v431_v51 }
  0xe3   :  { %v444_v16 = vsel %vm343_vm0, %v414_v9, 0.0 }
  0xe4   :  { %v435_v59 = vadd.f32 %v434_v19, %v433_v56  ;;  %v382_v27 = vadd.f32 %v381_v57, %v380_v0 }
  0xe6   :  { %v384_v1 = vadd.f32 %v383_v62, %v382_v27  ;;  %v437_v2 = vadd.f32 %v436_v60, %v435_v59 }
  0xe8   :  { %v386_v5 = vadd.f32 %v385_v35, %v384_v1  ;;  %v439_v6 = vadd.f32 %v438_v3, %v437_v2 }
  0xea   :  { %v388_v10 = vadd.f32 %v387_v8, %v386_v5  ;;  %v441_v43 = vadd.f32 %v440_v7, %v439_v6 }
  0xec   :  { %v443_v14 = vadd.f32 %v442_v12, %v441_v43  ;;  %v390_v15 = vadd.f32 %v389_v13, %v388_v10 }
  0xee   :  { %v391_v17 = vrot.slane %v390_v15, 4  ;;  %v445_v61 = vadd.f32 %v444_v16, %v443_v14 }
  0xf0   :  { %v392_v18 = vadd.f32 %v391_v17, %v390_v15  ;;  %v446_v20 = vrot.slane %v445_v61, 4 }
  0xf2   :  { %v393_v21 = vrot.slane %v392_v18, 2  ;;  %v447_v22 = vadd.f32 %v446_v20, %v445_v61 }
  0xf4   :  { %v394_v23 = vadd.f32 %v393_v21, %v392_v18  ;;  %v448_v24 = vrot.slane %v447_v22, 2 }
  0xf6   :  { %v395_v25 = vrot.slane %v394_v23, 1  ;;  %v449_v26 = vadd.f32 %v448_v24, %v447_v22 }
  0xf8   :  { %v396_v28 = vadd.f32 %v395_v25, %v394_v23  ;;  %v450_v29 = vrot.slane %v449_v26, 1 }
  0xfa   :  { %398 = vst.msk [vmem:[%s979_s4] sm:$0x1] %vm397_vm1, %v396_v28  ;;  %v451_v30 = vadd.f32 %v450_v29, %v449_v26 }
  0xfc   :  { %452 = vst.msk [vmem:[%s980_s5] sm:$0x1] %vm397_vm1, %v451_v30 }

// kernel: firstcov_forward.10
= control target key start
LH: loop header
LB: loop body
LE: loop exit
PB: predicated region body
PF: predicated region fallthrough
CT: control target
= control target key end

     0   :  { %s683_s18 = smov 0   ;;  %s685_s19 = smov 0   ;;  %s793_s0 = inlined_call_operand.vmem [shape: f32[2,64,64], index: 0, kind: input, shape index: {}]   ;;  %s794_s1 = inlined_call_operand.vmem [shape: f32[2,1,64], index: 1, kind: input, shape index: {}]   ;;  %s795_s2 = inlined_call_operand.vmem [shape: f32[1,1,64], index: 2, kind: input, shape index: {}]   ;;  %s796_s3 = inlined_call_operand.vmem [shape: f32[1,1,64], index: 3, kind: input, shape index: {}]   ;;  %s797_s4 = inlined_call_operand.vmem [shape: f32[2,64,64], index: 4, kind: output, shape index: {0}]   ;;  %s798_s5 = inlined_call_operand.vmem [shape: f32[2,64,2], index: 5, kind: output, shape index: {1}]  }
   0x1   :  { %s687_s20 = smov 0  }
   0x2 LB: > { %s28_s21 = sadd.s32 1, %s646_s19  ;;  %p586_p0 = scmp.ge.s32.totalorder %s650_s20, 1  ;;  %s650_s20 = sphi %s687_s20, %s16_s20   ;;  %s646_s19 = sphi %s685_s19, %s800_s19   ;;  %s642_s18 = sphi %s683_s18, %s799_s18  }
   0x3   : > { %p30_p1 = scmp.ge.s32.totalorder %s28_s21, 2  ;;  %p221_p2 = scmp.lt.s32.totalorder %s650_s20, 3 }
   0x5   : > { %s802_s21 = smov (%p30_p1, %s28_s21), 0  ;;  %p222_p3 = pnand %p586_p0, %p221_p2 }
   0x6   : > { %p270_p4 = scmp.lt.s32.totalorder (!%p222_p3), %s642_s18, 1 }
   0x7   : > { %225 = sbr.rel (%p222_p3) target bundleno = 182 (0xb6), region = 36 }
   0xc   : > { %s804_s18 = smov (!%p270_p4, %s642_s18), 1  ;;  %v624_v0 = vld [vmem:[%s795_s2] ss:$0 sm:$0xff]  ;;  %vm346_vm0 = vcmask 523264   ;;  %v652_v51 = vmov 64.0   ;;  %vm418_vm2 = vcmask 7168  }
   0xd   : > { %s701_s22 = sshll.u32 %s804_s18, 6  ;;  %s281_s25 = scalar_lea.vmem %s794_s1, %s804_s18  ;;  %v625_v2 = vld [vmem:[%s796_s3] ss:$0 sm:$0xff]  ;;  %626 = vrcp.f32 %v652_v51  ;;  %vm427_vm3 = vcmask 15360  }
   0xe   : > { %s277_s30 = scalar_lea.vmem %s793_s0, %s701_s22  ;;  %v623_v1 = vld [vmem:[%s281_s25] ss:$0 sm:$0xff]  ;;  %s720_s10 = scalar_lea.vmem %s797_s4, %s701_s22 }
   0xf   : > { %v306_v3 = vld [vmem:[%s277_s30 + $0x20] sm:$0xff]  ;;  %v304_v4 = vld [vmem:[%s277_s30 + $0x10] sm:$0xff]  ;;  %v307_v9 = vld [vmem:[%s277_s30 + $0x28] sm:$0xff]  ;;  %s758_s13 = scalar_lea.vmem %s798_s5, %s701_s22 }
  0x10   : > { %v302_v5 = vld [vmem:[%s277_s30] sm:$0xff]  ;;  %v318_v6 = vmul.f32 %v623_v1, %v306_v3  ;;  %v316_v7 = vmul.f32 %v623_v1, %v304_v4  ;;  %v305_v10 = vld [vmem:[%s277_s30 + $0x18] sm:$0xff]  ;;  %v303_v11 = vld [vmem:[%s277_s30 + $0x8] sm:$0xff]  ;;  %v319_v12 = vmul.f32 %v623_v1, %v307_v9 }
  0x11   : > { %v314_v8 = vmul.f32 %v623_v1, %v302_v5  ;;  %v317_v13 = vmul.f32 %v623_v1, %v305_v10  ;;  %v315_v14 = vmul.f32 %v623_v1, %v303_v11  ;;  %v309_v15 = vld [vmem:[%s277_s30 + $0x38] sm:$0xff]  ;;  %v308_v16 = vld [vmem:[%s277_s30 + $0x30] sm:$0xff] }
  0x12   : > { %v330_v17 = vmul.f32 %v624_v0, %v318_v6  ;;  %v328_v18 = vmul.f32 %v624_v0, %v316_v7  ;;  %v321_v20 = vmul.f32 %v623_v1, %v309_v15  ;;  %v331_v21 = vmul.f32 %v624_v0, %v319_v12 }
  0x13   : > { %v326_v19 = vmul.f32 %v624_v0, %v314_v8  ;;  %v320_v22 = vmul.f32 %v623_v1, %v308_v16  ;;  %v329_v26 = vmul.f32 %v624_v0, %v317_v13  ;;  %v327_v27 = vmul.f32 %v624_v0, %v315_v14  ;;  %v627_v52 = vpop.eup %626 }
  0x14   : > { %v342_v23 = vadd.f32 %v625_v2, %v330_v17  ;;  %v340_v24 = vadd.f32 %v625_v2, %v328_v18  ;;  %v333_v31 = vmul.f32 %v624_v0, %v321_v20  ;;  %v343_v32 = vadd.f32 %v625_v2, %v331_v21 }
  0x15   : > { %v338_v25 = vadd.f32 %v625_v2, %v326_v19  ;;  %v332_v33 = vmul.f32 %v624_v0, %v320_v22  ;;  %v341_v34 = vadd.f32 %v625_v2, %v329_v26  ;;  %v339_v35 = vadd.f32 %v625_v2, %v327_v27 }
  0x16   : > { %v367_v28 = vsel %vm346_vm0, %v342_v23, 0.0  ;;  %351 = vst.msk [vmem:[%s720_s10 + $0x20] sm:$0xff] %vm346_vm0, %v342_v23  ;;  %v361_v29 = vsel %vm346_vm0, %v340_v24, 0.0  ;;  %v345_v36 = vadd.f32 %v625_v2, %v333_v31  ;;  %v370_v38 = vsel %vm346_vm0, %v343_v32, 0.0 }
  0x17   : > { %v355_v30 = vsel %vm346_vm0, %v338_v25, 0.0  ;;  %368 = vadd.xlane.f32.xlu2 %v367_v28  ;;  %362 = vadd.xlane.f32.xlu1 %v361_v29  ;;  %349 = vst.msk [vmem:[%s720_s10 + $0x10] sm:$0xff] %vm346_vm0, %v340_v24  ;;  %v344_v37 = vadd.f32 %v625_v2, %v332_v33  ;;  %v364_v39 = vsel %vm346_vm0, %v341_v34, 0.0  ;;  %v358_v40 = vsel %vm346_vm0, %v339_v35, 0.0 }
  0x18   : > { %356 = vadd.xlane.f32.xlu0 %v355_v30  ;;  %347 = vst.msk [vmem:[%s720_s10] sm:$0xff] %vm346_vm0, %v338_v25  ;;  %v376_v41 = vsel %vm346_vm0, %v345_v36, 0.0  ;;  %v394_v42 = vsel %vm346_vm0, %v338_v25, -inf  ;;  %v400_v44 = vsel %vm346_vm0, %v340_v24, -inf  ;;  %v403_v45 = vsel %vm346_vm0, %v341_v34, -inf }
  0x19   : > { %352 = vst.msk [vmem:[%s720_s10 + $0x28] sm:$0xff] %vm346_vm0, %v343_v32  ;;  %v373_v43 = vsel %vm346_vm0, %v344_v37, 0.0  ;;  %v397_v46 = vsel %vm346_vm0, %v339_v35, -inf  ;;  %v409_v47 = vsel %vm346_vm0, %v343_v32, -inf  ;;  %v412_v48 = vsel %vm346_vm0, %v344_v37, -inf }
  0x1a   : > { %350 = vst.msk [vmem:[%s720_s10 + $0x18] sm:$0xff] %vm346_vm0, %v341_v34  ;;  %v406_v49 = vsel %vm346_vm0, %v342_v23, -inf  ;;  %v415_v50 = vsel %vm346_vm0, %v345_v36, -inf  ;;  %v380_v53 = vmul.f32 64.0, %v627_v52  ;;  %vm384_vm1 = vweird.f32 %v627_v52 }
  0x1b   : > { %348 = vst.msk [vmem:[%s720_s10 + $0x8] sm:$0xff] %vm346_vm0, %v339_v35 }
  0x1c   : > { %354 = vst.msk [vmem:[%s720_s10 + $0x38] sm:$0xff] %vm346_vm0, %v345_v36  ;;  %v381_v54 = vsub.f32 1.0, %v380_v53 }
  0x1d   : > { %353 = vst.msk [vmem:[%s720_s10 + $0x30] sm:$0xff] %vm346_vm0, %v344_v37 }
  0x1e   : > { %v382_v58 = vmul.f32 %v627_v52, %v381_v54 }
  0x1f   : > { %371 = vadd.xlane.f32.xlu2 %v370_v38  ;;  %365 = vadd.xlane.f32.xlu1 %v364_v39 }
  0x20   : > { %359 = vadd.xlane.f32.xlu0 %v358_v40  ;;  %v383_v59 = vadd.f32 %v627_v52, %v382_v58 }
  0x22   : > { %v385_v63 = vsel %vm384_vm1, %v627_v52, %v383_v59 }
  0x27   : > { %377 = vadd.xlane.f32.xlu1 %v376_v41  ;;  %395 = vmax.xlane.f32.xlu2 %v394_v42 }
  0x28   : > { %374 = vadd.xlane.f32.xlu0 %v373_v43 }
  0x2f   : > { %401 = vmax.xlane.f32.xlu1 %v400_v44  ;;  %404 = vmax.xlane.f32.xlu2 %v403_v45 }
  0x30   : > { %398 = vmax.xlane.f32.xlu0 %v397_v46 }
  0x37   : > { %410 = vmax.xlane.f32.xlu1 %v409_v47  ;;  %413 = vmax.xlane.f32.xlu2 %v412_v48 }
  0x38   : > { %407 = vmax.xlane.f32.xlu0 %v406_v49 }
  0x40   : > { %416 = vmax.xlane.f32.xlu0 %v415_v50 }
  0x8a   : > { %v369_v55 = vpop.xlane.xlu2 %368  ;;  %v363_v56 = vpop.xlane.xlu1 %362 }
  0x8b   : > { %v357_v57 = vpop.xlane.xlu0 %356  ;;  %v388_v5 = vmul.f32 %v385_v63, %v363_v56  ;;  %v390_v16 = vmul.f32 %v385_v63, %v369_v55 }
  0x8c   : > { %v386_v0 = vmul.f32 %v385_v63, %v357_v57 }
  0x92   : > { %v372_v60 = vpop.xlane.xlu2 %371  ;;  %v366_v61 = vpop.xlane.xlu1 %365 }
  0x93   : > { %v360_v62 = vpop.xlane.xlu0 %359  ;;  %v389_v6 = vmul.f32 %v385_v63, %v366_v61  ;;  %v391_v14 = vmul.f32 %v385_v63, %v372_v60 }
  0x94   : > { %v387_v7 = vmul.f32 %v385_v63, %v360_v62 }
  0x9a   : > { %v378_v1 = vpop.xlane.xlu1 %377  ;;  %v396_v2 = vpop.xlane.xlu2 %395 }
  0x9b   : > { %v419_v3 = vsel %vm418_vm2, %v386_v0, %v396_v2  ;;  %v375_v4 = vpop.xlane.xlu0 %374  ;;  %v393_v23 = vmul.f32 %v385_v63, %v378_v1 }
  0x9c   : > { %428 = vst.msk [vmem:[%s758_s13] sm:$0xff] %vm427_vm3, %v419_v3  ;;  %v392_v15 = vmul.f32 %v385_v63, %v375_v4 }
  0xa2   : > { %v402_v8 = vpop.xlane.xlu1 %401  ;;  %v405_v9 = vpop.xlane.xlu2 %404 }
  0xa3   : > { %v421_v10 = vsel %vm418_vm2, %v388_v5, %v402_v8  ;;  %v422_v11 = vsel %vm418_vm2, %v389_v6, %v405_v9  ;;  %v399_v12 = vpop.xlane.xlu0 %398 }
  0xa4   : > { %430 = vst.msk [vmem:[%s758_s13 + $0x10] sm:$0xff] %vm427_vm3, %v421_v10  ;;  %v420_v13 = vsel %vm418_vm2, %v387_v7, %v399_v12 }
  0xa5   : > { %431 = vst.msk [vmem:[%s758_s13 + $0x18] sm:$0xff] %vm427_vm3, %v422_v11 }
  0xa6   : > { %429 = vst.msk [vmem:[%s758_s13 + $0x8] sm:$0xff] %vm427_vm3, %v420_v13 }
  0xaa   : > { %v411_v17 = vpop.xlane.xlu1 %410  ;;  %v414_v18 = vpop.xlane.xlu2 %413 }
  0xab   : > { %v424_v19 = vsel %vm418_vm2, %v391_v14, %v411_v17  ;;  %v425_v20 = vsel %vm418_vm2, %v392_v15, %v414_v18  ;;  %v408_v21 = vpop.xlane.xlu0 %407 }
  0xac   : > { %433 = vst.msk [vmem:[%s758_s13 + $0x28] sm:$0xff] %vm427_vm3, %v424_v19  ;;  %v423_v22 = vsel %vm418_vm2, %v390_v16, %v408_v21 }
  0xad   : > { %434 = vst.msk [vmem:[%s758_s13 + $0x30] sm:$0xff] %vm427_vm3, %v425_v20 }
  0xae   : > { %432 = vst.msk [vmem:[%s758_s13 + $0x20] sm:$0xff] %vm427_vm3, %v423_v22 }
  0xb3   : > { %v417_v24 = vpop.xlane.xlu0 %416 }
  0xb4   : > { %v426_v25 = vsel %vm418_vm2, %v393_v23, %v417_v24 }
  0xb5   : > { %435 = vst.msk [vmem:[%s758_s13 + $0x38] sm:$0xff] %vm427_vm3, %v426_v25 }
  0xb6 PF: > { %s16_s20 = sadd.s32 1, %s650_s20   ;;  %s799_s18 = smov %s646_s19 }
  0xb7   : > { %p13_p5 = scmp.ge.s32.totalorder %s16_s20, 4   ;;  %s800_s19 = smov %s802_s21 }
  0xb9   :  { %15 = sbr.rel (!%p13_p5) target bundleno = 2 (0x2), region = 81 }

// kernel: firstcov_forward.12
= control target key start
LH: loop header
LB: loop body
LE: loop exit
PB: predicated region body
PF: predicated region fallthrough
CT: control target
= control target key end

     0   :  { %v247_v0 = vmov 0   ;;  %vm141_vm0 = vcmask 523264   ;;  %vm179_vm1 = vcmask 516096   ;;  %s402_s1 = inlined_call_operand.vmem [shape: f32[128,1], index: 1, kind: input, shape index: {}]   ;;  %s403_s0 = inlined_call_operand.vmem [shape: f32[128,64], index: 0, kind: input, shape index: {}]   ;;  %s404_s2 = inlined_call_operand.vmem [shape: f32[1,1,64], index: 2, kind: output, shape index: {0}]   ;;  %s405_s3 = inlined_call_operand.vmem [shape: f32[1,1,64], index: 3, kind: output, shape index: {1}]  }
   0x1   :  { %246 = vset.pattern.permute.xlu2 %v247_v0  ;;  %245 = vset.pattern.permute.xlu1 %v247_v0  ;;  %v33_v1 = vld [vmem:[%s402_s1 + $0x20] sm:$0xff]  ;;  %v31_v2 = vld [vmem:[%s402_s1 + $0x10] sm:$0xff]  ;;  %v34_v4 = vld [vmem:[%s402_s1 + $0x28] sm:$0xff] }
   0x2   :  { %v29_v3 = vld [vmem:[%s402_s1] sm:$0xff]  ;;  %244 = vset.pattern.permute.xlu0 %v247_v0  ;;  %67 = vperm.xlu2 %246, %v33_v1   ;;  %v32_v5 = vld [vmem:[%s402_s1 + $0x18] sm:$0xff]  ;;  %v30_v6 = vld [vmem:[%s402_s1 + $0x8] sm:$0xff] }
   0x3   :  { %57 = vperm.xlu1 %245, %v31_v2   ;;  %47 = vperm.xlu0 %244, %v29_v3   ;;  %v37_v7 = vld [vmem:[%s402_s1 + $0x40] sm:$0xff]  ;;  %v36_v8 = vld [vmem:[%s402_s1 + $0x38] sm:$0xff]  ;;  %v35_v9 = vld [vmem:[%s402_s1 + $0x30] sm:$0xff] }
   0x4   :  { %v40_v10 = vld [vmem:[%s402_s1 + $0x58] sm:$0xff]  ;;  %v39_v11 = vld [vmem:[%s402_s1 + $0x50] sm:$0xff]  ;;  %v38_v12 = vld [vmem:[%s402_s1 + $0x48] sm:$0xff] }
   0x5   :  { %v43_v13 = vld [vmem:[%s402_s1 + $0x70] sm:$0xff]  ;;  %v42_v14 = vld [vmem:[%s402_s1 + $0x68] sm:$0xff]  ;;  %v41_v15 = vld [vmem:[%s402_s1 + $0x60] sm:$0xff] }
   0x6   :  { %v44_v16 = vld [vmem:[%s402_s1 + $0x78] sm:$0xff]  ;;  %v13_v21 = vld [vmem:[%s403_s0] sm:$0xff]  ;;  %v15_v22 = vld [vmem:[%s403_s0 + $0x10] sm:$0xff] }
   0x7   :  { %v16_v24 = vld [vmem:[%s403_s0 + $0x18] sm:$0xff]  ;;  %v14_v25 = vld [vmem:[%s403_s0 + $0x8] sm:$0xff]  ;;  %v17_v26 = vld [vmem:[%s403_s0 + $0x20] sm:$0xff] }
   0x8   :  { %v18_v30 = vld [vmem:[%s403_s0 + $0x28] sm:$0xff]  ;;  %v20_v48 = vld [vmem:[%s403_s0 + $0x38] sm:$0xff]  ;;  %v19_v49 = vld [vmem:[%s403_s0 + $0x30] sm:$0xff] }
   0x9   :  { %v21_v54 = vld [vmem:[%s403_s0 + $0x40] sm:$0xff] }
   0xa   :  { %72 = vperm.xlu2 %246, %v34_v4  }
   0xb   :  { %62 = vperm.xlu1 %245, %v32_v5   ;;  %52 = vperm.xlu0 %244, %v30_v6  }
  0x12   :  { %87 = vperm.xlu2 %246, %v37_v7  }
  0x13   :  { %82 = vperm.xlu1 %245, %v36_v8   ;;  %77 = vperm.xlu0 %244, %v35_v9  }
  0x1a   :  { %102 = vperm.xlu2 %246, %v40_v10  }
  0x1b   :  { %97 = vperm.xlu1 %245, %v39_v11   ;;  %92 = vperm.xlu0 %244, %v38_v12  }
  0x22   :  { %117 = vperm.xlu2 %246, %v43_v13   ;;  %v23_v13 = vld [vmem:[%s403_s0 + $0x50] sm:$0xff] }
  0x23   :  { %112 = vperm.xlu1 %245, %v42_v14   ;;  %107 = vperm.xlu0 %244, %v41_v15   ;;  %v22_v14 = vld [vmem:[%s403_s0 + $0x48] sm:$0xff] }
  0x2b   :  { %122 = vperm.xlu0 %244, %v44_v16   ;;  %v24_v16 = vld [vmem:[%s403_s0 + $0x58] sm:$0xff] }
  0x5c   :  { %v68_v17 = vpop.permute.xlu2 %67 }
  0x5d   :  { %v129_v34 = vmul.f32 %v68_v17, %v17_v26 }
  0x5f   :  { %v185_v50 = vmul.f32 %v129_v34, %v129_v34  ;;  %v149_v53 = vsel %vm141_vm0, %v129_v34, 0.0 }
  0x61   :  { %v204_v1 = vsel %vm141_vm0, %v185_v50, 0.0 }
  0x64   :  { %v73_v20 = vpop.permute.xlu2 %72 }
  0x65   :  { %v130_v40 = vmul.f32 %v73_v20, %v18_v30 }
  0x67   :  { %v186_v59 = vmul.f32 %v130_v40, %v130_v40  ;;  %v151_v2 = vsel %vm141_vm0, %v130_v40, 0.0 }
  0x69   :  { %v206_v7 = vsel %vm141_vm0, %v186_v59, 0.0 }
  0x6c   :  { %v88_v35 = vpop.permute.xlu2 %87 }
  0x6d   :  { %v133_v3 = vmul.f32 %v88_v35, %v21_v54 }
  0x6f   :  { %v189_v15 = vmul.f32 %v133_v3, %v133_v3 }
  0x71   :  { %v212_v30 = vsel %vm141_vm0, %v189_v15, 0.0 }
  0x74   :  { %v103_v8 = vpop.permute.xlu2 %102 }
  0x75   :  { %v58_v18 = vpop.permute.xlu1 %57  ;;  %v48_v19 = vpop.permute.xlu0 %47 }
  0x76   :  { %v125_v23 = vmul.f32 %v48_v19, %v13_v21  ;;  %v127_v27 = vmul.f32 %v58_v18, %v15_v22 }
  0x78   :  { %v181_v31 = vmul.f32 %v125_v23, %v125_v23  ;;  %v183_v36 = vmul.f32 %v127_v27, %v127_v27  ;;  %v142_v37 = vsel %vm141_vm0, %v125_v23, 0.0  ;;  %v145_v42 = vsel %vm141_vm0, %v127_v27, 0.0 }
  0x79   :  { %v157_v23 = vsel %vm141_vm0, %v133_v3, 0.0  ;;  %v136_v27 = vmul.f32 %v103_v8, %v24_v16 }
  0x7a   :  { %v197_v43 = vsel %vm141_vm0, %v181_v31, 0.0  ;;  %v200_v51 = vsel %vm141_vm0, %v183_v36, 0.0 }
  0x7d   :  { %v63_v28 = vpop.permute.xlu1 %62  ;;  %v53_v29 = vpop.permute.xlu0 %52 }
  0x7e   :  { %v128_v32 = vmul.f32 %v63_v28, %v16_v24  ;;  %v126_v33 = vmul.f32 %v53_v29, %v14_v25 }
  0x80   :  { %v143_v38 = vsel %vm141_vm0, %v126_v33, 0.0  ;;  %v182_v39 = vmul.f32 %v126_v33, %v126_v33  ;;  %v184_v44 = vmul.f32 %v128_v32, %v128_v32  ;;  %v147_v52 = vsel %vm141_vm0, %v128_v32, 0.0 }
  0x81   :  { %v144_v41 = vadd.f32 %v143_v38, %v142_v37  ;;  %v192_v38 = vmul.f32 %v136_v27, %v136_v27 }
  0x82   :  { %v198_v45 = vsel %vm141_vm0, %v182_v39, 0.0  ;;  %v202_v60 = vsel %vm141_vm0, %v184_v44, 0.0 }
  0x83   :  { %v146_v46 = vadd.f32 %v145_v42, %v144_v41  ;;  %v199_v47 = vadd.f32 %v198_v45, %v197_v43  ;;  %v26_v41 = vld [vmem:[%s403_s0 + $0x68] sm:$0xff]  ;;  %v25_v42 = vld [vmem:[%s403_s0 + $0x60] sm:$0xff]  ;;  %v118_v43 = vpop.permute.xlu2 %117  ;;  %v27_v45 = vld [vmem:[%s403_s0 + $0x70] sm:$0xff] }
  0x84   :  { %v139_v54 = vmul.f32 %v118_v43, %v27_v45 }
  0x85   :  { %v148_v55 = vadd.f32 %v147_v52, %v146_v46  ;;  %v201_v56 = vadd.f32 %v200_v51, %v199_v47  ;;  %v83_v57 = vpop.permute.xlu1 %82  ;;  %v78_v58 = vpop.permute.xlu0 %77  ;;  %v218_v52 = vsel %vm141_vm0, %v192_v38, 0.0 }
  0x86   :  { %v132_v61 = vmul.f32 %v83_v57, %v20_v48  ;;  %v131_v62 = vmul.f32 %v78_v58, %v19_v49  ;;  %v163_v49 = vsel %vm141_vm0, %v136_v27, 0.0 }
  0x87   :  { %v203_v63 = vadd.f32 %v202_v60, %v201_v56  ;;  %v150_v0 = vadd.f32 %v149_v53, %v148_v55 }
  0x88   :  { %v187_v4 = vmul.f32 %v131_v62, %v131_v62  ;;  %v188_v9 = vmul.f32 %v132_v61, %v132_v61  ;;  %v153_v10 = vsel %vm141_vm0, %v131_v62, 0.0  ;;  %v155_v17 = vsel %vm141_vm0, %v132_v61, 0.0 }
  0x89   :  { %v152_v5 = vadd.f32 %v151_v2, %v150_v0  ;;  %v205_v6 = vadd.f32 %v204_v1, %v203_v63  ;;  %v28_v0 = vld [vmem:[%s403_s0 + $0x78] sm:$0xff]  ;;  %v195_v1 = vmul.f32 %v139_v54, %v139_v54 }
  0x8a   :  { %v208_v18 = vsel %vm141_vm0, %v187_v4, 0.0  ;;  %v210_v24 = vsel %vm141_vm0, %v188_v9, 0.0 }
  0x8b   :  { %v154_v11 = vadd.f32 %v153_v10, %v152_v5  ;;  %v207_v12 = vadd.f32 %v206_v7, %v205_v6  ;;  %v169_v5 = vsel %vm141_vm0, %v139_v54, 0.0  ;;  %v224_v8 = vsel %vm141_vm0, %v195_v1, 0.0 }
  0x8d   :  { %v156_v19 = vadd.f32 %v155_v17, %v154_v11  ;;  %v209_v20 = vadd.f32 %v208_v18, %v207_v12  ;;  %v98_v21 = vpop.permute.xlu1 %97  ;;  %v93_v22 = vpop.permute.xlu0 %92 }
  0x8e   :  { %v135_v25 = vmul.f32 %v98_v21, %v23_v13  ;;  %v134_v26 = vmul.f32 %v93_v22, %v22_v14 }
  0x8f   :  { %v211_v28 = vadd.f32 %v210_v24, %v209_v20  ;;  %v158_v29 = vadd.f32 %v157_v23, %v156_v19 }
  0x90   :  { %v191_v31 = vmul.f32 %v135_v25, %v135_v25  ;;  %v159_v32 = vsel %vm141_vm0, %v134_v26, 0.0  ;;  %v190_v33 = vmul.f32 %v134_v26, %v134_v26  ;;  %v161_v36 = vsel %vm141_vm0, %v135_v25, 0.0 }
  0x91   :  { %v160_v34 = vadd.f32 %v159_v32, %v158_v29  ;;  %v213_v35 = vadd.f32 %v212_v30, %v211_v28 }
  0x92   :  { %v214_v37 = vsel %vm141_vm0, %v190_v33, 0.0  ;;  %v216_v44 = vsel %vm141_vm0, %v191_v31, 0.0 }
  0x93   :  { %v162_v39 = vadd.f32 %v161_v36, %v160_v34  ;;  %v215_v40 = vadd.f32 %v214_v37, %v213_v35 }
  0x95   :  { %v217_v46 = vadd.f32 %v216_v44, %v215_v40  ;;  %v113_v47 = vpop.permute.xlu1 %112  ;;  %v108_v48 = vpop.permute.xlu0 %107  ;;  %v164_v53 = vadd.f32 %v163_v49, %v162_v39 }
  0x96   :  { %v138_v50 = vmul.f32 %v113_v47, %v26_v41  ;;  %v137_v51 = vmul.f32 %v108_v48, %v25_v42 }
  0x97   :  { %v219_v59 = vadd.f32 %v218_v52, %v217_v46 }
  0x98   :  { %v194_v55 = vmul.f32 %v138_v50, %v138_v50  ;;  %v165_v56 = vsel %vm141_vm0, %v137_v51, 0.0  ;;  %v193_v57 = vmul.f32 %v137_v51, %v137_v51  ;;  %v167_v60 = vsel %vm141_vm0, %v138_v50, 0.0 }
  0x99   :  { %v166_v58 = vadd.f32 %v165_v56, %v164_v53 }
  0x9a   :  { %v220_v61 = vsel %vm141_vm0, %v193_v57, 0.0  ;;  %v222_v2 = vsel %vm141_vm0, %v194_v55, 0.0 }
  0x9b   :  { %v168_v62 = vadd.f32 %v167_v60, %v166_v58  ;;  %v221_v63 = vadd.f32 %v220_v61, %v219_v59 }
  0x9d   :  { %v223_v3 = vadd.f32 %v222_v2, %v221_v63  ;;  %v123_v4 = vpop.permute.xlu0 %122  ;;  %v170_v7 = vadd.f32 %v169_v5, %v168_v62 }
  0x9e   :  { %v140_v6 = vmul.f32 %v123_v4, %v28_v0 }
  0x9f   :  { %v225_v12 = vadd.f32 %v224_v8, %v223_v3 }
  0xa0   :  { %v171_v9 = vsel %vm141_vm0, %v140_v6, 0.0  ;;  %v196_v10 = vmul.f32 %v140_v6, %v140_v6 }
  0xa1   :  { %v172_v11 = vadd.f32 %v171_v9, %v170_v7 }
  0xa2   :  { %v226_v13 = vsel %vm141_vm0, %v196_v10, 0.0 }
  0xa3   :  { %v173_v14 = vrot.slane %v172_v11, 4  ;;  %v227_v15 = vadd.f32 %v226_v13, %v225_v12 }
  0xa5   :  { %v174_v16 = vadd.f32 %v173_v14, %v172_v11  ;;  %v228_v17 = vrot.slane %v227_v15, 4 }
  0xa7   :  { %v175_v18 = vrot.slane %v174_v16, 2  ;;  %v229_v19 = vadd.f32 %v228_v17, %v227_v15 }
  0xa9   :  { %v176_v20 = vadd.f32 %v175_v18, %v174_v16  ;;  %v230_v21 = vrot.slane %v229_v19, 2 }
  0xab   :  { %v177_v22 = vrot.slane %v176_v20, 1  ;;  %v231_v23 = vadd.f32 %v230_v21, %v229_v19 }
  0xad   :  { %v178_v24 = vadd.f32 %v177_v22, %v176_v20  ;;  %v232_v25 = vrot.slane %v231_v23, 1 }
  0xaf   :  { %180 = vst.msk [vmem:[%s404_s2] sm:$0x1] %vm179_vm1, %v178_v24  ;;  %v233_v26 = vadd.f32 %v232_v25, %v231_v23 }
  0xb1   :  { %234 = vst.msk [vmem:[%s405_s3] sm:$0x1] %vm179_vm1, %v233_v26 }

// kernel: firstcov_forward.13
= control target key start
LH: loop header
LB: loop body
LE: loop exit
PB: predicated region body
PF: predicated region fallthrough
CT: control target
= control target key end

     0   :  { %9 = vsyncpa [#allocation4], 0  ;;  %s751_s0 = inlined_call_operand.vmem [shape: f32[2,8,8,64], index: 0, kind: input, shape index: {}]   ;;  %s752_s1 = inlined_call_operand.vmem [shape: f32[2,8,8,1], index: 1, kind: input, shape index: {}]   ;;  %s753_s2 = inlined_call_operand.vmem [shape: f32[1,1,1,64], index: 2, kind: input, shape index: {}]   ;;  %s754_s3 = inlined_call_operand.vmem [shape: f32[1,1,1,64], index: 3, kind: input, shape index: {}]   ;;  %s755_s4 = inlined_call_operand.hbm [shape: f32[2,4,4,64], index: 4, kind: output, shape index: {}]  }
   0x1   :  { %11 = vsyncpa [#allocation4 + $0x1], 0  ;;  %s623_s15 = smov 0   ;;  %s625_s16 = smov 0  }
   0x2   :  { %s627_s17 = smov 0   ;;  %s629_s18 = smov 0  }
   0x3 LB: > { %s644_s19 = sadd.s32 4294967295, %s593_s18   ;;  %s467_s20 = sadd.s32 4294967294, %s593_s18   ;;  %s593_s18 = sphi %s629_s18, %s761_s18   ;;  %s589_s17 = sphi %s627_s17, %s760_s17   ;;  %s585_s16 = sphi %s625_s16, %s759_s16   ;;  %s581_s15 = sphi %s623_s15, %s758_s15  }
   0x4   : > { %s648_s21 = sadd.s32 1, %s593_s18   ;;  %s118_s22 = sadd.s32 1, %s589_s17 }
   0x5   : > { %s115_s23 = ssub.s32 %s593_s18, %s648_s21  ;;  %p128_p0 = scmp.ne.s32.totalorder %s589_s17, %s585_s16 }
   0x6   : > { %p116_p1 = scmp.eq.s32.totalorder %s115_s23, 0  ;;  %p129_p2 = scmp.eq.s32.totalorder %s644_s19, 1 }
   0x7   : > { %p134_p3 = scmp.ne.s32.totalorder %s585_s16, %s581_s15  ;;  %p135_p4 = scmp.eq.s32.totalorder %s467_s20, 1 }
   0x8   : > { %s659_s24 = scalar_select %p116_p1, %s589_s17, %s118_s22  }
   0x9   : > { %p661_p5 = por %p129_p2, %p128_p0  ;;  %p665_p6 = por %p135_p4, %p134_p3 }
   0xa   : > { %p470_p7 = scmp.ge.s32.totalorder %s593_s18, 1  ;;  %p175_p8 = scmp.lt.s32.totalorder %s593_s18, 3 }
   0xc   : > { %p176_p9 = pnand %p470_p7, %p175_p8 }
   0xd   : > { %p206_p10 = scmp.lt.s32.totalorder (!%p176_p9), %s644_s19, 1  ;;  %s203_s13 = sand.u32 (!%p176_p9), 1, %s585_s16  }
   0xe   : > { %179 = sbr.rel (%p176_p9) target bundleno = 191 (0xbf), region = 36  ;;  %s471_s14 = sshll.u32 (!%p176_p9), %s203_s13, 4 }
   0xf   : > { %s483_s20 = sshll.u32 (!%p176_p9), %s644_s19, 4  ;;  %s378_s30 = scalar_lea.sflag (!%p176_p9), [#allocation4], %s203_s13 }
  0x10   : > { %s551_s9 = scalar_lea.hbm (!%p176_p9), %s755_s4, 32 }
  0x13   : > { %v595_v0 = vmov 0   ;;  %s207_s27 = scalar_select %p206_p10, %s644_s19, 1  ;;  %v529_v15 = vld [vmem:[%s753_s2] ss:$0 sm:$0xff]  ;;  %vm305_vm0 = vcmask 523264   ;;  %vm335_vm1 = vcmask 1040384  }
  0x14   : > { %527 = vset.pattern.permute.xlu1 %v595_v0  ;;  %526 = vset.pattern.permute.xlu0 %v595_v0  ;;  %v530_v26 = vld [vmem:[%s754_s3] ss:$0 sm:$0xff]  ;;  %vm348_vm2 = vcmask 1046528   ;;  %vm372_vm3 = vcmask 519168  }
  0x15   : > { %528 = vset.pattern.permute.xlu2 %v595_v0  ;;  %s481_s28 = sshll.u32 %s207_s27, 6  ;;  %s389_s27 = scalar_lea.hbm %s755_s4, %s483_s20 }
  0x16   : > { %s215_s5 = scalar_lea.vmem %s752_s1, %s481_s28  ;;  %s679_s8 = scalar_lea.vmem %s751_s0, %s481_s28 }
  0x17   : > { %v227_v1 = vld [vmem:[%s215_s5 + $0x18] sm:$0xff]  ;;  %v225_v2 = vld [vmem:[%s215_s5 + $0x8] sm:$0xff]  ;;  %v228_v4 = vld [vmem:[%s215_s5 + $0x20] sm:$0xff]  ;;  %s205_s28 = scalar_lea.vmem [#allocation3], %s471_s14  ;;  %s392_s29 = sshll.u32 %s389_s27, 4  ;;  %s393_s29 = int_to_ptr.hbm [resolvable:$true] %s392_s29 }
  0x18   : > { %249 = vperm.xlu1 %527, %v227_v1   ;;  %239 = vperm.xlu0 %526, %v225_v2   ;;  %v229_v3 = vld [vmem:[%s215_s5 + $0x28] sm:$0xff]  ;;  %v226_v5 = vld [vmem:[%s215_s5 + $0x10] sm:$0xff]  ;;  %v231_v7 = vld [vmem:[%s215_s5 + $0x38] sm:$0xff]  ;;  %s390_s19 = sshll.u32 %s205_s28, 4  ;;  %s391_s19 = int_to_ptr.vmem [resolvable:$true] %s390_s19 }
  0x19   : > { %259 = vperm.xlu2 %528, %v229_v3   ;;  %v230_v6 = vld [vmem:[%s215_s5 + $0x30] sm:$0xff]  ;;  %v224_v8 = vld [vmem:[%s215_s5] sm:$0xff]  ;;  %v219_v12 = vld [vmem:[%s679_s8 + $0x18] sm:$0xff]  ;;  %s545_s5 = sshra.s32 %s393_s29, 4  ;;  %s546_s5 = int_to_ptr.hbm [resolvable:$true] %s545_s5 }
  0x1a   : > { %v217_v13 = vld [vmem:[%s679_s8 + $0x8] sm:$0xff]  ;;  %v222_v19 = vld [vmem:[%s679_s8 + $0x30] sm:$0xff]  ;;  %v220_v20 = vld [vmem:[%s679_s8 + $0x20] sm:$0xff]  ;;  %s547_s6 = scalar_lea.hbm %s546_s5, 16  ;;  %p552_p0 = scmp.lt.s32.totalorder %s546_s5, %s755_s4 }
  0x1b   : > { %v221_v14 = vld [vmem:[%s679_s8 + $0x28] sm:$0xff]  ;;  %v218_v21 = vld [vmem:[%s679_s8 + $0x10] sm:$0xff]  ;;  %v223_v39 = vld [vmem:[%s679_s8 + $0x38] sm:$0xff]  ;;  %p548_p11 = scmp.ne.s32.totalorder %s546_s5, %s547_s6  ;;  %p553_p1 = scmp.lt.s32.totalorder %s551_s9, %s547_s6 }
  0x1c   : > { %v216_v40 = vld [vmem:[%s679_s8] sm:$0xff] }
  0x1d   : > { %p549_p12 = pnand %p548_p11, %p661_p5  ;;  %p554_p2 = por %p553_p1, %p552_p0 }
  0x1f   : > { %p550_p13 = pneg %p549_p12 }
  0x20   : > { %254 = vperm.xlu1 %527, %v228_v4   ;;  %244 = vperm.xlu0 %526, %v226_v5  }
  0x21   : > { %264 = vperm.xlu2 %528, %v230_v6   ;;  %p555_p3 = pnand %p554_p2, %p550_p13 }
  0x28   : > { %269 = vperm.xlu1 %527, %v231_v7   ;;  %234 = vperm.xlu0 %526, %v224_v8  }
  0x73   : > { %v260_v9 = vpop.permute.xlu2 %259 }
  0x74   : > { %v277_v22 = vmul.f32 %v260_v9, %v221_v14 }
  0x76   : > { %v289_v31 = vmul.f32 %v529_v15, %v277_v22 }
  0x78   : > { %v301_v41 = vadd.f32 %v530_v26, %v289_v31 }
  0x7b   : > { %v265_v18 = vpop.permute.xlu2 %264 }
  0x7c   : > { %v278_v23 = vmul.f32 %v265_v18, %v222_v19 }
  0x7e   : > { %v290_v34 = vmul.f32 %v529_v15, %v278_v23 }
  0x80   : > { %v302_v44 = vadd.f32 %v530_v26, %v290_v34 }
  0x82   : > { %v315_v53 = vmax.f32 %v301_v41, %v302_v44 }
  0x8a   : > { %v250_v10 = vpop.permute.xlu1 %249  ;;  %v240_v11 = vpop.permute.xlu0 %239 }
  0x8b   : > { %v275_v16 = vmul.f32 %v250_v10, %v219_v12  ;;  %v273_v17 = vmul.f32 %v240_v11, %v217_v13 }
  0x8d   : > { %v287_v27 = vmul.f32 %v529_v15, %v275_v16  ;;  %v285_v28 = vmul.f32 %v529_v15, %v273_v17 }
  0x8f   : > { %v299_v35 = vadd.f32 %v530_v26, %v287_v27  ;;  %v297_v36 = vadd.f32 %v530_v26, %v285_v28 }
  0x92   : > { %v255_v24 = vpop.permute.xlu1 %254  ;;  %v245_v25 = vpop.permute.xlu0 %244 }
  0x93   : > { %v276_v29 = vmul.f32 %v255_v24, %v220_v20  ;;  %v274_v30 = vmul.f32 %v245_v25, %v218_v21 }
  0x95   : > { %v288_v32 = vmul.f32 %v529_v15, %v276_v29  ;;  %v286_v33 = vmul.f32 %v529_v15, %v274_v30 }
  0x97   : > { %v300_v37 = vadd.f32 %v530_v26, %v288_v32  ;;  %v298_v38 = vadd.f32 %v530_v26, %v286_v33 }
  0x99   : > { %v311_v42 = vmax.f32 %v299_v35, %v300_v37  ;;  %v307_v43 = vmax.f32 %v297_v36, %v298_v38 }
  0x9a   : > { %v270_v45 = vpop.permute.xlu1 %269  ;;  %v235_v46 = vpop.permute.xlu0 %234 }
  0x9b   : > { %v312_v47 = vmax.f32 %v311_v42, %v301_v41  ;;  %v308_v48 = vmax.f32 %v307_v43, %v299_v35  ;;  %v279_v49 = vmul.f32 %v270_v45, %v223_v39  ;;  %v272_v50 = vmul.f32 %v235_v46, %v216_v40 }
  0x9d   : > { %314 = vst.msk [vmem:[#allocation2 + $0x10] sm:$0xff] %vm305_vm0, %v312_v47  ;;  %v291_v51 = vmul.f32 %v529_v15, %v279_v49  ;;  %v284_v52 = vmul.f32 %v529_v15, %v272_v50 }
  0x9e   : > { %310 = vst.msk [vmem:[#allocation2 + $0x8] sm:$0xff] %vm305_vm0, %v308_v48 }
  0x9f   : > { %v303_v54 = vadd.f32 %v530_v26, %v291_v51  ;;  %v296_v55 = vadd.f32 %v530_v26, %v284_v52 }
  0xa1   : > { %v316_v56 = vmax.f32 %v315_v53, %v303_v54  ;;  %v304_v57 = vmax.f32 %v296_v55, %v297_v36 }
  0xa3   : > { %318 = vst.msk [vmem:[#allocation2 + $0x18] sm:$0xff] %vm305_vm0, %v316_v56 }
  0xa4   : > { %v321_v58 = vld [vmem:[#allocation2 + $0x10] sm:$0xff]  ;;  %306 = vst.msk [vmem:[#allocation2] sm:$0xff] %vm305_vm0, %v304_v57 }
  0xa5   : > { %v329_v59 = vrot.slane %v321_v58, 7  ;;  %v342_v60 = vrot.slane %v321_v58, 1  ;;  %v320_v61 = vld [vmem:[#allocation2 + $0x8] sm:$0xff] }
  0xa6   : > { %v328_v62 = vrot.slane %v320_v61, 7  ;;  %v341_v63 = vrot.slane %v320_v61, 1 }
  0xa7   : > { %v338_v0 = vsel %vm335_vm1, -inf, %v329_v59  ;;  %v351_v3 = vsel %vm348_vm2, %v342_v60, -inf }
  0xa8   : > { %v355_v1 = vmax.f32 %v321_v58, %v338_v0  ;;  %v337_v2 = vsel %vm335_vm1, -inf, %v328_v62  ;;  %v350_v6 = vsel %vm348_vm2, %v341_v63, -inf }
  0xa9   : > { %v354_v4 = vmax.f32 %v320_v61, %v337_v2 }
  0xaa   : > { %v359_v5 = vmax.f32 %v355_v1, %v351_v3  ;;  %v322_v7 = vld [vmem:[#allocation2 + $0x18] sm:$0xff] }
  0xab   : > { %v358_v8 = vmax.f32 %v354_v4, %v350_v6  ;;  %v330_v9 = vrot.slane %v322_v7, 7  ;;  %v343_v10 = vrot.slane %v322_v7, 1  ;;  %v319_v11 = vld [vmem:[#allocation2] sm:$0xff] }
  0xac   : > { %363 = vst.msk [vmem:[#allocation2 + $0x10] sm:$0xff] %vm305_vm0, %v359_v5  ;;  %v327_v12 = vrot.slane %v319_v11, 7  ;;  %v340_v13 = vrot.slane %v319_v11, 1 }
  0xad   : > { %362 = vst.msk [vmem:[#allocation2 + $0x8] sm:$0xff] %vm305_vm0, %v358_v8  ;;  %v339_v14 = vsel %vm335_vm1, -inf, %v330_v9  ;;  %v352_v17 = vsel %vm348_vm2, %v343_v10, -inf }
  0xae   : > { %v356_v15 = vmax.f32 %v322_v7, %v339_v14  ;;  %v336_v16 = vsel %vm335_vm1, -inf, %v327_v12  ;;  %v349_v20 = vsel %vm348_vm2, %v340_v13, -inf }
  0xaf   : > { %v353_v18 = vmax.f32 %v319_v11, %v336_v16 }
  0xb0   : > { %v360_v19 = vmax.f32 %v356_v15, %v352_v17 }
  0xb1   : > { %v357_v21 = vmax.f32 %v353_v18, %v349_v20 }
  0xb2   : > { %364 = vst.msk [vmem:[#allocation2 + $0x18] sm:$0xff] %vm305_vm0, %v360_v19 }
  0xb3   : > { %361 = vst.msk [vmem:[#allocation2] sm:$0xff] %vm305_vm0, %v357_v21  ;;  %v369_v22 = vld [vmem:[#allocation2 + $0x10] ss:$2 sm:$0xf] }
  0xb4   : > { %v367_v23 = vld [vmem:[#allocation2 + $0x8] ss:$2 sm:$0xf]  ;;  %375 = vst.msk [vmem:[%s205_s28 + $0x8] sm:$0xf] %vm372_vm3, %v369_v22 }
  0xb5   : > { %374 = vst.msk [vmem:[%s205_s28 + $0x4] sm:$0xf] %vm372_vm3, %v367_v23 }
  0xb9   : > { %v371_v24 = vld [vmem:[#allocation2 + $0x18] ss:$2 sm:$0xf] }
  0xba   : > { %v365_v25 = vld [vmem:[#allocation2] ss:$2 sm:$0xf]  ;;  %376 = vst.msk [vmem:[%s205_s28 + $0xc] sm:$0xf] %vm372_vm3, %v371_v24 }
  0xbb   : > { %373 = vst.msk [vmem:[%s205_s28] sm:$0xf] %vm372_vm3, %v365_v25 }
  0xbc   : > { %558 = shalt.err (!%p555_p3)
}
  0xbd   : > { %s596_s12 = smov 64   ;;  %s597_s13 = smov 4  }
  0xbe   : > { %484 = dma.vmem_to_hbm [thread:$0]  (%p661_p5), %s391_s19, 256, %s393_s29, %s378_s30, %s596_s12, %s596_s12, %s597_s13  }
  0xbf PF: > { %p490_p4 = scmp.ge.s32.totalorder %s593_s18, 2  ;;  %s407_s14 = sand.u32 1, %s581_s15  }
  0xc0   : > { %s408_s20 = scalar_lea.sflag [#allocation4], %s407_s14 }
  0xc1   : > { %p487_p7 = pnand %p490_p4, %p665_p6 }
  0xc3   : > { %p488_p8 = pneg %p487_p7 }
  0xc5   : > { %576 = dma.done.wait (%p488_p8), %s408_s20, 256  }
  0xc6   : > { %578 = vsyncadd (%p488_p8), %s408_s20, 4294967040  ;;  %p14_p9 = scmp.ge.s32.totalorder %s648_s21, 4   ;;  %s758_s15 = smov %s585_s16 }
  0xc7   : > { %s759_s16 = smov %s589_s17  ;;  %s760_s17 = smov %s659_s24 }
  0xc8   : > { %s761_s18 = smov %s648_s21  ;;  %16 = sbr.rel (!%p14_p9) target bundleno = 3 (0x3), region = 80 }
  0xcd   :  { %414 = vsyncpa [#allocation4], 1 }
  0xce   :  { %416 = vsyncpa [#allocation4 + $0x1], 1 }

// kernel: firstcov_forward.11
= control target key start
LH: loop header
LB: loop body
LE: loop exit
PB: predicated region body
PF: predicated region fallthrough
CT: control target
= control target key end

     0   :  { %7 = vsyncpa [#allocation3], 0  ;;  %s1012_s9 = smov 0   ;;  %s1136_s0 = inlined_call_operand.vmem [shape: f32[2,2,7,14,8], index: 0, kind: input, shape index: {}]   ;;  %s1137_s1 = inlined_call_operand.vmem [shape: f32[98], index: 1, kind: input, shape index: {}]   ;;  %s1138_s2 = inlined_call_operand.vmem [shape: f32[2,8,8], index: 2, kind: output, shape index: {}]  }
   0x1 LB: > { %s745_s10 = sadd.s32 4294967295, %s994_s9   ;;  %p747_p0 = scmp.ge.s32.totalorder %s994_s9, 1  ;;  %s994_s9 = sphi %s1012_s9, %s13_s9  }
   0x2   : > { %p91_p1 = scmp.lt.s32.totalorder %s994_s9, 3  ;;  %s103_s13 = sshll.u32 %s1137_s1, 4  ;;  %s104_s13 = int_to_ptr.vmem [resolvable:$true] %s103_s13 }
   0x3   : > { %p954_p3 = scmp.eq.s32.totalorder %s745_s10, 0  ;;  %s996_s14 = smov [#allocation2]  }
   0x4   : > { %p92_p2 = pnand %p747_p0, %p91_p1 }
   0x6   : > { %p950_p4 = pneg %p92_p2  ;;  %124 = sbr.rel (%p92_p2) target bundleno = 247 (0xf7), region = 28 }
   0x8   : > { %p951_p5 = pnand %p954_p3, %p950_p4 }
   0xa   : > { %953 = dma.vmem_to_smem (!%p951_p5), %s104_s13, 16, %s996_s14, [#allocation3]  }
   0xb   : > { %989 = dma.done.wait (%p954_p3), [#allocation3], 16  }
   0xc   : > { %991 = vsyncadd (%p954_p3), [#allocation3], 4294967280 }
   0xd   : > { %131 = sfence }
   0xe   : > { %p147_p6 = scmp.lt.s32.totalorder %s745_s10, 1  ;;  %s157_s15 = sld [smem:[#allocation2]]  ;;  %vm678_vm4 = vcmask 64512  }
   0xf   : > { %s755_s16 = sld [smem:[#allocation2 + $0x1]] }
  0x10   : > { %s1140_s10 = smov (!%p147_p6, %s745_s10), 1  ;;  %s757_s17 = sld [smem:[#allocation2 + $0x2]] }
  0x11   : > { %s945_s18 = smul.u32 224, %s1140_s10  ;;  %s759_s19 = sld [smem:[#allocation2 + $0x3]] }
  0x12   : > { %s761_s23 = sld [smem:[#allocation2 + $0x4]] }
  0x13   : > { %s1029_s22 = scalar_lea.vmem %s1136_s0, %s945_s18  ;;  %s763_s24 = sld [smem:[#allocation2 + $0x5]] }
  0x14   : > { %v158_v0 = vstv %s157_s15  ;;  %v156_v1 = vld [vmem:[%s1029_s22] sm:$0xff]  ;;  %v754_v2 = vld [vmem:[%s1029_s22 + $0x10] sm:$0xff]  ;;  %s765_s25 = sld [smem:[#allocation2 + $0x6]] }
  0x15   : > { %v164_v3 = vstv %s755_s16  ;;  %v756_v4 = vld [vmem:[%s1029_s22 + $0x20] sm:$0xff]  ;;  %v159_v5 = vmul.f32 %v158_v0, %v156_v1  ;;  %v758_v8 = vld [vmem:[%s1029_s22 + $0x30] sm:$0xff]  ;;  %s766_s26 = sld [smem:[#allocation2 + $0x7]] }
  0x16   : > { %v165_v6 = vmul.f32 %v754_v2, %v164_v3  ;;  %v170_v7 = vstv %s757_s17  ;;  %v760_v11 = vld [vmem:[%s1029_s22 + $0x40] sm:$0xff]  ;;  %s768_s27 = sld [smem:[#allocation2 + $0x8]]  ;;  %v762_v13 = vld [vmem:[%s1029_s22 + $0x50] sm:$0xff] }
  0x17   : > { %v171_v10 = vmul.f32 %v756_v4, %v170_v7  ;;  %v176_v12 = vstv %s759_s19  ;;  %s770_s28 = sld [smem:[#allocation2 + $0x9]]  ;;  %v764_v19 = vld [vmem:[%s1029_s22 + $0x60] sm:$0xff]  ;;  %v767_v27 = vld [vmem:[%s1029_s22 + $0x11] sm:$0xff] }
  0x18   : > { %v166_v9 = vadd.f32 %v165_v6, %v159_v5  ;;  %v177_v15 = vmul.f32 %v758_v8, %v176_v12  ;;  %v182_v16 = vstv %s761_s23  ;;  %s772_s29 = sld [smem:[#allocation2 + $0xa]]  ;;  %v197_v23 = vld [vmem:[%s1029_s22 + $0x1] sm:$0xff]  ;;  %v771_v35 = vld [vmem:[%s1029_s22 + $0x31] sm:$0xff] }
  0x19   : > { %v183_v17 = vmul.f32 %v760_v11, %v182_v16  ;;  %v188_v18 = vstv %s763_s24  ;;  %s774_s30 = sld [smem:[#allocation2 + $0xb]]  ;;  %v769_v31 = vld [vmem:[%s1029_s22 + $0x21] sm:$0xff]  ;;  %v775_v43 = vld [vmem:[%s1029_s22 + $0x51] sm:$0xff] }
  0x1a   : > { %v172_v14 = vadd.f32 %v171_v10, %v166_v9  ;;  %v189_v21 = vmul.f32 %v762_v13, %v188_v18  ;;  %v194_v22 = vstv %s765_s25  ;;  %s776_s3 = sld [smem:[#allocation2 + $0xc]]  ;;  %v773_v39 = vld [vmem:[%s1029_s22 + $0x41] sm:$0xff]  ;;  %v780_v55 = vld [vmem:[%s1029_s22 + $0x12] sm:$0xff] }
  0x1b   : > { %v199_v24 = vstv %s766_s26  ;;  %v195_v26 = vmul.f32 %v764_v19, %v194_v22  ;;  %s778_s4 = sld [smem:[#allocation2 + $0xd]]  ;;  %v777_v47 = vld [vmem:[%s1029_s22 + $0x61] sm:$0xff]  ;;  %v784_v63 = vld [vmem:[%s1029_s22 + $0x32] sm:$0xff] }
  0x1c   : > { %v178_v20 = vadd.f32 %v177_v15, %v172_v14  ;;  %v204_v28 = vstv %s768_s27  ;;  %v200_v30 = vmul.f32 %v199_v24, %v197_v23  ;;  %s779_s5 = sld [smem:[#allocation2 + $0xe]]  ;;  %v232_v51 = vld [vmem:[%s1029_s22 + $0x2] sm:$0xff]  ;;  %v788_v7 = vld [vmem:[%s1029_s22 + $0x52] sm:$0xff] }
  0x1d   : > { %v209_v32 = vstv %s770_s28  ;;  %v205_v34 = vmul.f32 %v767_v27, %v204_v28  ;;  %s781_s6 = sld [smem:[#allocation2 + $0xf]]  ;;  %v782_v59 = vld [vmem:[%s1029_s22 + $0x22] sm:$0xff]  ;;  %v793_v19 = vld [vmem:[%s1029_s22 + $0x13] sm:$0xff] }
  0x1e   : > { %v184_v25 = vadd.f32 %v183_v17, %v178_v20  ;;  %v214_v36 = vstv %s772_s29  ;;  %v210_v38 = vmul.f32 %v769_v31, %v209_v32  ;;  %s783_s7 = sld [smem:[#allocation2 + $0x10]]  ;;  %v786_v3 = vld [vmem:[%s1029_s22 + $0x42] sm:$0xff]  ;;  %v797_v27 = vld [vmem:[%s1029_s22 + $0x33] sm:$0xff] }
  0x1f   : > { %v219_v40 = vstv %s774_s30  ;;  %v215_v42 = vmul.f32 %v771_v35, %v214_v36  ;;  %s785_s8 = sld [smem:[#allocation2 + $0x11]]  ;;  %v790_v11 = vld [vmem:[%s1029_s22 + $0x62] sm:$0xff]  ;;  %v801_v35 = vld [vmem:[%s1029_s22 + $0x53] sm:$0xff] }
  0x20   : > { %v190_v29 = vadd.f32 %v189_v21, %v184_v25  ;;  %v224_v44 = vstv %s776_s3  ;;  %v220_v46 = vmul.f32 %v773_v39, %v219_v40  ;;  %s787_s11 = sld [smem:[#allocation2 + $0x12]]  ;;  %v267_v15 = vld [vmem:[%s1029_s22 + $0x3] sm:$0xff] }
  0x21   : > { %v229_v48 = vstv %s778_s4  ;;  %v225_v50 = vmul.f32 %v775_v43, %v224_v44  ;;  %s789_s12 = sld [smem:[#allocation2 + $0x13]]  ;;  %v795_v23 = vld [vmem:[%s1029_s22 + $0x23] sm:$0xff] }
  0x22   : > { %v196_v33 = vadd.f32 %v195_v26, %v190_v29  ;;  %v234_v52 = vstv %s779_s5  ;;  %v230_v54 = vmul.f32 %v777_v47, %v229_v48  ;;  %s791_s13 = sld [smem:[#allocation2 + $0x14]]  ;;  %v799_v31 = vld [vmem:[%s1029_s22 + $0x43] sm:$0xff]  ;;  %v806_v47 = vld [vmem:[%s1029_s22 + $0x14] sm:$0xff] }
  0x23   : > { %v239_v56 = vstv %s781_s6  ;;  %v235_v58 = vmul.f32 %v234_v52, %v232_v51  ;;  %s792_s14 = sld [smem:[#allocation2 + $0x15]]  ;;  %v803_v39 = vld [vmem:[%s1029_s22 + $0x63] sm:$0xff] }
  0x24   : > { %v201_v37 = vadd.f32 %v200_v30, %v196_v33  ;;  %v244_v60 = vstv %s783_s7  ;;  %v240_v62 = vmul.f32 %v780_v55, %v239_v56  ;;  %s794_s15 = sld [smem:[#allocation2 + $0x16]]  ;;  %v302_v43 = vld [vmem:[%s1029_s22 + $0x4] sm:$0xff]  ;;  %v810_v55 = vld [vmem:[%s1029_s22 + $0x34] sm:$0xff] }
  0x25   : > { %v249_v0 = vstv %s785_s8  ;;  %v245_v2 = vmul.f32 %v782_v59, %v244_v60  ;;  %s796_s16 = sld [smem:[#allocation2 + $0x17]]  ;;  %v808_v51 = vld [vmem:[%s1029_s22 + $0x24] sm:$0xff] }
  0x26   : > { %v206_v41 = vadd.f32 %v205_v34, %v201_v37  ;;  %v254_v4 = vstv %s787_s11  ;;  %v250_v6 = vmul.f32 %v784_v63, %v249_v0  ;;  %s798_s17 = sld [smem:[#allocation2 + $0x18]]  ;;  %v812_v59 = vld [vmem:[%s1029_s22 + $0x44] sm:$0xff]  ;;  %v814_v63 = vld [vmem:[%s1029_s22 + $0x54] sm:$0xff] }
  0x27   : > { %v259_v8 = vstv %s789_s12  ;;  %v255_v10 = vmul.f32 %v786_v3, %v254_v4  ;;  %s800_s18 = sld [smem:[#allocation2 + $0x19]]  ;;  %v816_v3 = vld [vmem:[%s1029_s22 + $0x64] sm:$0xff] }
  0x28   : > { %v211_v45 = vadd.f32 %v210_v38, %v206_v41  ;;  %v264_v12 = vstv %s791_s13  ;;  %v260_v14 = vmul.f32 %v788_v7, %v259_v8  ;;  %s802_s19 = sld [smem:[#allocation2 + $0x1a]]  ;;  %v337_v7 = vld [vmem:[%s1029_s22 + $0x5] sm:$0xff] }
  0x29   : > { %v269_v16 = vstv %s792_s14  ;;  %v265_v18 = vmul.f32 %v790_v11, %v264_v12  ;;  %s804_s20 = sld [smem:[#allocation2 + $0x1b]]  ;;  %v819_v11 = vld [vmem:[%s1029_s22 + $0x15] sm:$0xff] }
  0x2a   : > { %v216_v49 = vadd.f32 %v215_v42, %v211_v45  ;;  %v274_v20 = vstv %s794_s15  ;;  %v270_v22 = vmul.f32 %v269_v16, %v267_v15  ;;  %s805_s21 = sld [smem:[#allocation2 + $0x1c]]  ;;  %v821_v15 = vld [vmem:[%s1029_s22 + $0x25] sm:$0xff] }
  0x2b   : > { %v279_v24 = vstv %s796_s16  ;;  %v275_v26 = vmul.f32 %v793_v19, %v274_v20  ;;  %s807_s23 = sld [smem:[#allocation2 + $0x1d]]  ;;  %v823_v19 = vld [vmem:[%s1029_s22 + $0x35] sm:$0xff] }
  0x2c   : > { %v221_v53 = vadd.f32 %v220_v46, %v216_v49  ;;  %v284_v28 = vstv %s798_s17  ;;  %v280_v30 = vmul.f32 %v795_v23, %v279_v24  ;;  %s809_s24 = sld [smem:[#allocation2 + $0x1e]]  ;;  %v825_v23 = vld [vmem:[%s1029_s22 + $0x45] sm:$0xff] }
  0x2d   : > { %v289_v32 = vstv %s800_s18  ;;  %v285_v34 = vmul.f32 %v797_v27, %v284_v28  ;;  %s811_s25 = sld [smem:[#allocation2 + $0x1f]]  ;;  %v827_v27 = vld [vmem:[%s1029_s22 + $0x55] sm:$0xff] }
  0x2e   : > { %v226_v57 = vadd.f32 %v225_v50, %v221_v53  ;;  %v294_v36 = vstv %s802_s19  ;;  %v290_v38 = vmul.f32 %v799_v31, %v289_v32  ;;  %s813_s26 = sld [smem:[#allocation2 + $0x20]]  ;;  %v829_v31 = vld [vmem:[%s1029_s22 + $0x65] sm:$0xff] }
  0x2f   : > { %v299_v40 = vstv %s804_s20  ;;  %v295_v42 = vmul.f32 %v801_v35, %v294_v36  ;;  %s815_s27 = sld [smem:[#allocation2 + $0x21]]  ;;  %v372_v35 = vld [vmem:[%s1029_s22 + $0x6] sm:$0xff] }
  0x30   : > { %v231_v61 = vadd.f32 %v230_v54, %v226_v57  ;;  %v304_v44 = vstv %s805_s21  ;;  %v300_v46 = vmul.f32 %v803_v39, %v299_v40  ;;  %s817_s28 = sld [smem:[#allocation2 + $0x22]]  ;;  %v832_v39 = vld [vmem:[%s1029_s22 + $0x16] sm:$0xff] }
  0x31   : > { %v309_v48 = vstv %s807_s23  ;;  %v305_v50 = vmul.f32 %v304_v44, %v302_v43  ;;  %s818_s29 = sld [smem:[#allocation2 + $0x23]]  ;;  %v834_v43 = vld [vmem:[%s1029_s22 + $0x26] sm:$0xff] }
  0x32   : > { %v236_v1 = vadd.f32 %v235_v58, %v231_v61  ;;  %v314_v52 = vstv %s809_s24  ;;  %v310_v54 = vmul.f32 %v806_v47, %v309_v48  ;;  %s820_s30 = sld [smem:[#allocation2 + $0x24]]  ;;  %v836_v47 = vld [vmem:[%s1029_s22 + $0x36] sm:$0xff] }
  0x33   : > { %v319_v56 = vstv %s811_s25  ;;  %v315_v58 = vmul.f32 %v808_v51, %v314_v52  ;;  %s822_s3 = sld [smem:[#allocation2 + $0x25]]  ;;  %v838_v51 = vld [vmem:[%s1029_s22 + $0x46] sm:$0xff] }
  0x34   : > { %v241_v5 = vadd.f32 %v240_v62, %v236_v1  ;;  %v324_v60 = vstv %s813_s26  ;;  %v320_v62 = vmul.f32 %v810_v55, %v319_v56  ;;  %s824_s4 = sld [smem:[#allocation2 + $0x26]]  ;;  %v840_v55 = vld [vmem:[%s1029_s22 + $0x56] sm:$0xff] }
  0x35   : > { %v329_v0 = vstv %s815_s27  ;;  %s826_s5 = sld [smem:[#allocation2 + $0x27]] }
  0x36   : > { %v246_v9 = vadd.f32 %v245_v2, %v241_v5  ;;  %v325_v2 = vmul.f32 %v812_v59, %v324_v60  ;;  %v334_v4 = vstv %s817_s28  ;;  %s828_s6 = sld [smem:[#allocation2 + $0x28]]  ;;  %v842_v59 = vld [vmem:[%s1029_s22 + $0x66] sm:$0xff] }
  0x37   : > { %v339_v8 = vstv %s818_s29  ;;  %s830_s7 = sld [smem:[#allocation2 + $0x29]] }
  0x38   : > { %v251_v13 = vadd.f32 %v250_v6, %v246_v9  ;;  %v330_v6 = vmul.f32 %v814_v63, %v329_v0  ;;  %v344_v12 = vstv %s820_s30  ;;  %s831_s8 = sld [smem:[#allocation2 + $0x2a]]  ;;  %v844_v63 = vld [vmem:[%s1029_s22 + $0x70] sm:$0xff] }
  0x39   : > { %v349_v16 = vstv %s822_s3  ;;  %s833_s11 = sld [smem:[#allocation2 + $0x2b]] }
  0x3a   : > { %v256_v17 = vadd.f32 %v255_v10, %v251_v13  ;;  %v335_v10 = vmul.f32 %v816_v3, %v334_v4  ;;  %v354_v20 = vstv %s824_s4  ;;  %s835_s12 = sld [smem:[#allocation2 + $0x2c]]  ;;  %v846_v3 = vld [vmem:[%s1029_s22 + $0x80] sm:$0xff] }
  0x3b   : > { %v359_v24 = vstv %s826_s5  ;;  %s837_s13 = sld [smem:[#allocation2 + $0x2d]] }
  0x3c   : > { %v261_v21 = vadd.f32 %v260_v14, %v256_v17  ;;  %v340_v14 = vmul.f32 %v339_v8, %v337_v7  ;;  %v364_v28 = vstv %s828_s6  ;;  %s839_s14 = sld [smem:[#allocation2 + $0x2e]]  ;;  %v848_v7 = vld [vmem:[%s1029_s22 + $0x90] sm:$0xff] }
  0x3d   : > { %v369_v32 = vstv %s830_s7  ;;  %s841_s15 = sld [smem:[#allocation2 + $0x2f]] }
  0x3e   : > { %v266_v25 = vadd.f32 %v265_v18, %v261_v21  ;;  %v345_v18 = vmul.f32 %v819_v11, %v344_v12  ;;  %v374_v36 = vstv %s831_s8  ;;  %s843_s16 = sld [smem:[#allocation2 + $0x30]]  ;;  %v850_v11 = vld [vmem:[%s1029_s22 + $0xa0] sm:$0xff] }
  0x3f   : > { %v379_v40 = vstv %s833_s11  ;;  %s845_s17 = sld [smem:[#allocation2 + $0x31]] }
  0x40   : > { %v271_v29 = vadd.f32 %v270_v22, %v266_v25  ;;  %v350_v22 = vmul.f32 %v821_v15, %v349_v16  ;;  %v384_v44 = vstv %s835_s12  ;;  %s847_s18 = sld [smem:[#allocation2 + $0x32]]  ;;  %v852_v15 = vld [vmem:[%s1029_s22 + $0xb0] sm:$0xff] }
  0x41   : > { %v389_v48 = vstv %s837_s13  ;;  %s849_s19 = sld [smem:[#allocation2 + $0x33]] }
  0x42   : > { %v276_v33 = vadd.f32 %v275_v26, %v271_v29  ;;  %v355_v26 = vmul.f32 %v823_v19, %v354_v20  ;;  %v394_v52 = vstv %s839_s14  ;;  %s851_s20 = sld [smem:[#allocation2 + $0x34]]  ;;  %v854_v19 = vld [vmem:[%s1029_s22 + $0xc0] sm:$0xff] }
  0x43   : > { %v399_v56 = vstv %s841_s15  ;;  %s853_s21 = sld [smem:[#allocation2 + $0x35]] }
  0x44   : > { %v281_v37 = vadd.f32 %v280_v30, %v276_v33  ;;  %v360_v30 = vmul.f32 %v825_v23, %v359_v24  ;;  %v404_v60 = vstv %s843_s16  ;;  %s855_s23 = sld [smem:[#allocation2 + $0x36]]  ;;  %v856_v23 = vld [vmem:[%s1029_s22 + $0xd0] sm:$0xff] }
  0x45   : > { %v410_v0 = vstv %s845_s17  ;;  %s857_s24 = sld [smem:[#allocation2 + $0x37]] }
  0x46   : > { %v286_v41 = vadd.f32 %v285_v34, %v281_v37  ;;  %v365_v34 = vmul.f32 %v827_v27, %v364_v28  ;;  %v416_v4 = vstv %s847_s18  ;;  %s859_s25 = sld [smem:[#allocation2 + $0x38]]  ;;  %v858_v27 = vld [vmem:[%s1029_s22 + $0x71] sm:$0xff] }
  0x47   : > { %v422_v8 = vstv %s849_s19  ;;  %s861_s26 = sld [smem:[#allocation2 + $0x39]] }
  0x48   : > { %v291_v45 = vadd.f32 %v290_v38, %v286_v41  ;;  %v370_v38 = vmul.f32 %v829_v31, %v369_v32  ;;  %v428_v12 = vstv %s851_s20  ;;  %s863_s27 = sld [smem:[#allocation2 + $0x3a]]  ;;  %v860_v31 = vld [vmem:[%s1029_s22 + $0x81] sm:$0xff] }
  0x49   : > { %v434_v16 = vstv %s853_s21  ;;  %s865_s28 = sld [smem:[#allocation2 + $0x3b]] }
  0x4a   : > { %v296_v49 = vadd.f32 %v295_v42, %v291_v45  ;;  %v375_v42 = vmul.f32 %v374_v36, %v372_v35  ;;  %v440_v20 = vstv %s855_s23  ;;  %s867_s29 = sld [smem:[#allocation2 + $0x3c]]  ;;  %v862_v35 = vld [vmem:[%s1029_s22 + $0x91] sm:$0xff] }
  0x4b   : > { %v446_v24 = vstv %s857_s24  ;;  %s869_s30 = sld [smem:[#allocation2 + $0x3d]] }
  0x4c   : > { %v301_v53 = vadd.f32 %v300_v46, %v296_v49  ;;  %v380_v46 = vmul.f32 %v832_v39, %v379_v40  ;;  %v451_v28 = vstv %s859_s25  ;;  %s871_s3 = sld [smem:[#allocation2 + $0x3e]]  ;;  %v864_v39 = vld [vmem:[%s1029_s22 + $0xa1] sm:$0xff] }
  0x4d   : > { %v456_v32 = vstv %s861_s26  ;;  %s873_s4 = sld [smem:[#allocation2 + $0x3f]] }
  0x4e   : > { %v306_v57 = vadd.f32 %v305_v50, %v301_v53  ;;  %v385_v50 = vmul.f32 %v834_v43, %v384_v44  ;;  %v461_v36 = vstv %s863_s27  ;;  %v866_v43 = vld [vmem:[%s1029_s22 + $0xb1] sm:$0xff]  ;;  %s875_s5 = sld [smem:[#allocation2 + $0x40]] }
  0x4f   : > { %v466_v40 = vstv %s865_s28  ;;  %s877_s6 = sld [smem:[#allocation2 + $0x41]] }
  0x50   : > { %v311_v61 = vadd.f32 %v310_v54, %v306_v57  ;;  %v390_v54 = vmul.f32 %v836_v47, %v389_v48  ;;  %v471_v44 = vstv %s867_s29  ;;  %v868_v47 = vld [vmem:[%s1029_s22 + $0xc1] sm:$0xff]  ;;  %s879_s7 = sld [smem:[#allocation2 + $0x42]] }
  0x51   : > { %v476_v48 = vstv %s869_s30  ;;  %s881_s8 = sld [smem:[#allocation2 + $0x43]] }
  0x52   : > { %v316_v1 = vadd.f32 %v315_v58, %v311_v61  ;;  %v395_v58 = vmul.f32 %v838_v51, %v394_v52  ;;  %v870_v51 = vld [vmem:[%s1029_s22 + $0xd1] sm:$0xff]  ;;  %v481_v52 = vstv %s871_s3  ;;  %s883_s11 = sld [smem:[#allocation2 + $0x44]] }
  0x53   : > { %s885_s12 = sld [smem:[#allocation2 + $0x45]] }
  0x54   : > { %v321_v5 = vadd.f32 %v320_v62, %v316_v1  ;;  %v400_v62 = vmul.f32 %v840_v55, %v399_v56  ;;  %v872_v55 = vld [vmem:[%s1029_s22 + $0x72] sm:$0xff]  ;;  %v486_v56 = vstv %s873_s4  ;;  %s887_s13 = sld [smem:[#allocation2 + $0x46]] }
  0x55   : > { %s889_s14 = sld [smem:[#allocation2 + $0x47]] }
  0x56   : > { %v326_v9 = vadd.f32 %v325_v2, %v321_v5  ;;  %v405_v2 = vmul.f32 %v842_v59, %v404_v60  ;;  %v874_v59 = vld [vmem:[%s1029_s22 + $0x82] sm:$0xff]  ;;  %v491_v60 = vstv %s875_s5  ;;  %s891_s15 = sld [smem:[#allocation2 + $0x48]] }
  0x57   : > { %s893_s16 = sld [smem:[#allocation2 + $0x49]] }
  0x58   : > { %v331_v13 = vadd.f32 %v330_v6, %v326_v9  ;;  %v411_v6 = vmul.f32 %v844_v63, %v410_v0  ;;  %v876_v63 = vld [vmem:[%s1029_s22 + $0x92] sm:$0xff]  ;;  %v496_v0 = vstv %s877_s6  ;;  %s895_s17 = sld [smem:[#allocation2 + $0x4a]] }
  0x59   : > { %s897_s18 = sld [smem:[#allocation2 + $0x4b]] }
  0x5a   : > { %v336_v17 = vadd.f32 %v335_v10, %v331_v13  ;;  %v417_v10 = vmul.f32 %v846_v3, %v416_v4  ;;  %v878_v3 = vld [vmem:[%s1029_s22 + $0xa2] sm:$0xff]  ;;  %v501_v4 = vstv %s879_s7  ;;  %s899_s19 = sld [smem:[#allocation2 + $0x4c]] }
  0x5b   : > { %s901_s20 = sld [smem:[#allocation2 + $0x4d]] }
  0x5c   : > { %v341_v21 = vadd.f32 %v340_v14, %v336_v17  ;;  %v423_v14 = vmul.f32 %v848_v7, %v422_v8  ;;  %v880_v7 = vld [vmem:[%s1029_s22 + $0xb2] sm:$0xff]  ;;  %v506_v8 = vstv %s881_s8  ;;  %s903_s21 = sld [smem:[#allocation2 + $0x4e]] }
  0x5d   : > { %s905_s23 = sld [smem:[#allocation2 + $0x4f]] }
  0x5e   : > { %v346_v25 = vadd.f32 %v345_v18, %v341_v21  ;;  %v429_v18 = vmul.f32 %v850_v11, %v428_v12  ;;  %v882_v11 = vld [vmem:[%s1029_s22 + $0xc2] sm:$0xff]  ;;  %v511_v12 = vstv %s883_s11  ;;  %s907_s24 = sld [smem:[#allocation2 + $0x50]] }
  0x5f   : > { %s909_s25 = sld [smem:[#allocation2 + $0x51]] }
  0x60   : > { %v351_v29 = vadd.f32 %v350_v22, %v346_v25  ;;  %v435_v22 = vmul.f32 %v852_v15, %v434_v16  ;;  %v884_v15 = vld [vmem:[%s1029_s22 + $0xd2] sm:$0xff]  ;;  %v516_v16 = vstv %s885_s12  ;;  %s911_s26 = sld [smem:[#allocation2 + $0x52]] }
  0x61   : > { %s913_s27 = sld [smem:[#allocation2 + $0x53]] }
  0x62   : > { %v356_v33 = vadd.f32 %v355_v26, %v351_v29  ;;  %v441_v26 = vmul.f32 %v854_v19, %v440_v20  ;;  %v886_v19 = vld [vmem:[%s1029_s22 + $0x73] sm:$0xff]  ;;  %v521_v20 = vstv %s887_s13  ;;  %s915_s28 = sld [smem:[#allocation2 + $0x54]] }
  0x63   : > { %s917_s29 = sld [smem:[#allocation2 + $0x55]] }
  0x64   : > { %v361_v37 = vadd.f32 %v360_v30, %v356_v33  ;;  %v447_v30 = vmul.f32 %v856_v23, %v446_v24  ;;  %v888_v23 = vld [vmem:[%s1029_s22 + $0x83] sm:$0xff]  ;;  %v526_v24 = vstv %s889_s14  ;;  %s919_s30 = sld [smem:[#allocation2 + $0x56]] }
  0x65   : > { %s921_s3 = sld [smem:[#allocation2 + $0x57]] }
  0x66   : > { %v366_v41 = vadd.f32 %v365_v34, %v361_v37  ;;  %v452_v34 = vmul.f32 %v858_v27, %v451_v28  ;;  %v890_v27 = vld [vmem:[%s1029_s22 + $0x93] sm:$0xff]  ;;  %v531_v28 = vstv %s891_s15  ;;  %s923_s4 = sld [smem:[#allocation2 + $0x58]] }
  0x67   : > { %s925_s5 = sld [smem:[#allocation2 + $0x59]] }
  0x68   : > { %v371_v45 = vadd.f32 %v370_v38, %v366_v41  ;;  %v457_v38 = vmul.f32 %v860_v31, %v456_v32  ;;  %v892_v31 = vld [vmem:[%s1029_s22 + $0xa3] sm:$0xff]  ;;  %v536_v32 = vstv %s893_s16  ;;  %s927_s6 = sld [smem:[#allocation2 + $0x5a]] }
  0x69   : > { %s929_s7 = sld [smem:[#allocation2 + $0x5b]] }
  0x6a   : > { %v376_v49 = vadd.f32 %v375_v42, %v371_v45  ;;  %v462_v42 = vmul.f32 %v862_v35, %v461_v36  ;;  %v894_v35 = vld [vmem:[%s1029_s22 + $0xb3] sm:$0xff]  ;;  %v541_v36 = vstv %s895_s17  ;;  %s931_s8 = sld [smem:[#allocation2 + $0x5c]] }
  0x6b   : > { %s933_s11 = sld [smem:[#allocation2 + $0x5d]] }
  0x6c   : > { %v381_v53 = vadd.f32 %v380_v46, %v376_v49  ;;  %v467_v46 = vmul.f32 %v864_v39, %v466_v40  ;;  %v896_v39 = vld [vmem:[%s1029_s22 + $0xc3] sm:$0xff]  ;;  %v546_v40 = vstv %s897_s18  ;;  %s935_s12 = sld [smem:[#allocation2 + $0x5e]] }
  0x6d   : > { %s937_s13 = sld [smem:[#allocation2 + $0x5f]] }
  0x6e   : > { %v386_v57 = vadd.f32 %v385_v50, %v381_v53  ;;  %v472_v50 = vmul.f32 %v866_v43, %v471_v44  ;;  %v898_v43 = vld [vmem:[%s1029_s22 + $0xd3] sm:$0xff]  ;;  %v551_v44 = vstv %s899_s19  ;;  %s939_s14 = sld [smem:[#allocation2 + $0x60]] }
  0x6f   : > { %s941_s15 = sld [smem:[#allocation2 + $0x61]] }
  0x70   : > { %v391_v61 = vadd.f32 %v390_v54, %v386_v57  ;;  %v477_v54 = vmul.f32 %v868_v47, %v476_v48  ;;  %v900_v47 = vld [vmem:[%s1029_s22 + $0x74] sm:$0xff]  ;;  %v556_v48 = vstv %s901_s20 }
  0x72   : > { %v396_v1 = vadd.f32 %v395_v58, %v391_v61  ;;  %v482_v58 = vmul.f32 %v870_v51, %v481_v52  ;;  %v902_v51 = vld [vmem:[%s1029_s22 + $0x84] sm:$0xff]  ;;  %v561_v52 = vstv %s903_s21 }
  0x74   : > { %v401_v5 = vadd.f32 %v400_v62, %v396_v1  ;;  %v487_v62 = vmul.f32 %v872_v55, %v486_v56  ;;  %v904_v55 = vld [vmem:[%s1029_s22 + $0x94] sm:$0xff]  ;;  %v566_v56 = vstv %s905_s23 }
  0x76   : > { %v406_v9 = vadd.f32 %v405_v2, %v401_v5  ;;  %v492_v2 = vmul.f32 %v874_v59, %v491_v60  ;;  %v906_v59 = vld [vmem:[%s1029_s22 + $0xa4] sm:$0xff]  ;;  %v571_v60 = vstv %s907_s24 }
  0x78   : > { %v412_v13 = vadd.f32 %v411_v6, %v406_v9  ;;  %v497_v6 = vmul.f32 %v876_v63, %v496_v0  ;;  %v908_v63 = vld [vmem:[%s1029_s22 + $0xb4] sm:$0xff]  ;;  %v576_v0 = vstv %s909_s25 }
  0x7a   : > { %v418_v17 = vadd.f32 %v417_v10, %v412_v13  ;;  %v502_v10 = vmul.f32 %v878_v3, %v501_v4  ;;  %v910_v3 = vld [vmem:[%s1029_s22 + $0xc4] sm:$0xff]  ;;  %v581_v4 = vstv %s911_s26 }
  0x7c   : > { %v424_v21 = vadd.f32 %v423_v14, %v418_v17  ;;  %v507_v14 = vmul.f32 %v880_v7, %v506_v8  ;;  %v912_v7 = vld [vmem:[%s1029_s22 + $0xd4] sm:$0xff]  ;;  %v586_v8 = vstv %s913_s27 }
  0x7e   : > { %v430_v25 = vadd.f32 %v429_v18, %v424_v21  ;;  %v512_v18 = vmul.f32 %v882_v11, %v511_v12  ;;  %v914_v11 = vld [vmem:[%s1029_s22 + $0x75] sm:$0xff]  ;;  %v591_v12 = vstv %s915_s28 }
  0x80   : > { %v436_v29 = vadd.f32 %v435_v22, %v430_v25  ;;  %v517_v22 = vmul.f32 %v884_v15, %v516_v16  ;;  %v916_v15 = vld [vmem:[%s1029_s22 + $0x85] sm:$0xff]  ;;  %v596_v16 = vstv %s917_s29 }
  0x82   : > { %v442_v33 = vadd.f32 %v441_v26, %v436_v29  ;;  %v522_v26 = vmul.f32 %v886_v19, %v521_v20  ;;  %v918_v19 = vld [vmem:[%s1029_s22 + $0x95] sm:$0xff]  ;;  %v601_v20 = vstv %s919_s30 }
  0x84   : > { %v448_v37 = vadd.f32 %v447_v30, %v442_v33  ;;  %v527_v30 = vmul.f32 %v888_v23, %v526_v24  ;;  %v920_v23 = vld [vmem:[%s1029_s22 + $0xa5] sm:$0xff]  ;;  %v606_v24 = vstv %s921_s3 }
  0x86   : > { %v453_v41 = vadd.f32 %v452_v34, %v448_v37  ;;  %v532_v34 = vmul.f32 %v890_v27, %v531_v28  ;;  %v922_v27 = vld [vmem:[%s1029_s22 + $0xb5] sm:$0xff]  ;;  %v611_v28 = vstv %s923_s4 }
  0x88   : > { %v458_v45 = vadd.f32 %v457_v38, %v453_v41  ;;  %v537_v38 = vmul.f32 %v892_v31, %v536_v32  ;;  %v924_v31 = vld [vmem:[%s1029_s22 + $0xc5] sm:$0xff]  ;;  %v616_v32 = vstv %s925_s5 }
  0x8a   : > { %v463_v49 = vadd.f32 %v462_v42, %v458_v45  ;;  %v542_v42 = vmul.f32 %v894_v35, %v541_v36  ;;  %v926_v35 = vld [vmem:[%s1029_s22 + $0xd5] sm:$0xff]  ;;  %v621_v36 = vstv %s927_s6 }
  0x8c   : > { %v468_v53 = vadd.f32 %v467_v46, %v463_v49  ;;  %v547_v46 = vmul.f32 %v896_v39, %v546_v40  ;;  %v928_v39 = vld [vmem:[%s1029_s22 + $0x76] sm:$0xff]  ;;  %v626_v40 = vstv %s929_s7 }
  0x8e   : > { %v473_v57 = vadd.f32 %v472_v50, %v468_v53  ;;  %v552_v50 = vmul.f32 %v898_v43, %v551_v44  ;;  %v930_v43 = vld [vmem:[%s1029_s22 + $0x86] sm:$0xff]  ;;  %v631_v44 = vstv %s931_s8 }
  0x90   : > { %v478_v61 = vadd.f32 %v477_v54, %v473_v57  ;;  %v557_v54 = vmul.f32 %v900_v47, %v556_v48  ;;  %v932_v47 = vld [vmem:[%s1029_s22 + $0x96] sm:$0xff]  ;;  %v636_v48 = vstv %s933_s11 }
  0x92   : > { %v483_v1 = vadd.f32 %v482_v58, %v478_v61  ;;  %v562_v58 = vmul.f32 %v902_v51, %v561_v52  ;;  %v934_v51 = vld [vmem:[%s1029_s22 + $0xa6] sm:$0xff]  ;;  %v641_v52 = vstv %s935_s12 }
  0x94   : > { %v488_v5 = vadd.f32 %v487_v62, %v483_v1  ;;  %v567_v62 = vmul.f32 %v904_v55, %v566_v56  ;;  %v936_v55 = vld [vmem:[%s1029_s22 + $0xb6] sm:$0xff]  ;;  %v646_v56 = vstv %s937_s13 }
  0x96   : > { %v493_v9 = vadd.f32 %v492_v2, %v488_v5  ;;  %v572_v2 = vmul.f32 %v906_v59, %v571_v60  ;;  %v938_v59 = vld [vmem:[%s1029_s22 + $0xc6] sm:$0xff]  ;;  %v651_v60 = vstv %s939_s14 }
  0x98   : > { %v498_v13 = vadd.f32 %v497_v6, %v493_v9  ;;  %v577_v6 = vmul.f32 %v908_v63, %v576_v0  ;;  %v940_v63 = vld [vmem:[%s1029_s22 + $0xd6] sm:$0xff]  ;;  %v656_v0 = vstv %s941_s15  ;;  %s753_s22 = sshll.u32 %s1140_s10, 3 }
  0x99   : > { %s155_s18 = scalar_lea.vmem %s1138_s2, %s753_s22 }
  0x9a   : > { %v503_v17 = vadd.f32 %v502_v10, %v498_v13  ;;  %v582_v10 = vmul.f32 %v910_v3, %v581_v4  ;;  %v657_v4 = vmul.f32 %v940_v63, %v656_v0 }
  0x9c   : > { %v508_v21 = vadd.f32 %v507_v14, %v503_v17  ;;  %v587_v14 = vmul.f32 %v912_v7, %v586_v8 }
  0x9e   : > { %v513_v25 = vadd.f32 %v512_v18, %v508_v21  ;;  %v592_v18 = vmul.f32 %v914_v11, %v591_v12 }
  0xa0   : > { %v518_v29 = vadd.f32 %v517_v22, %v513_v25  ;;  %v597_v22 = vmul.f32 %v916_v15, %v596_v16 }
  0xa2   : > { %v523_v33 = vadd.f32 %v522_v26, %v518_v29  ;;  %v602_v26 = vmul.f32 %v918_v19, %v601_v20 }
  0xa4   : > { %v528_v37 = vadd.f32 %v527_v30, %v523_v33  ;;  %v607_v30 = vmul.f32 %v920_v23, %v606_v24 }
  0xa6   : > { %v533_v41 = vadd.f32 %v532_v34, %v528_v37  ;;  %v612_v34 = vmul.f32 %v922_v27, %v611_v28 }
  0xa8   : > { %v538_v45 = vadd.f32 %v537_v38, %v533_v41  ;;  %v617_v38 = vmul.f32 %v924_v31, %v616_v32 }
  0xaa   : > { %v543_v49 = vadd.f32 %v542_v42, %v538_v45  ;;  %v622_v42 = vmul.f32 %v926_v35, %v621_v36 }
  0xac   : > { %v548_v53 = vadd.f32 %v547_v46, %v543_v49  ;;  %v627_v46 = vmul.f32 %v928_v39, %v626_v40 }
  0xae   : > { %v553_v57 = vadd.f32 %v552_v50, %v548_v53  ;;  %v632_v50 = vmul.f32 %v930_v43, %v631_v44 }
  0xb0   : > { %v558_v61 = vadd.f32 %v557_v54, %v553_v57  ;;  %v637_v54 = vmul.f32 %v932_v47, %v636_v48 }
  0xb2   : > { %v563_v1 = vadd.f32 %v562_v58, %v558_v61  ;;  %v642_v58 = vmul.f32 %v934_v51, %v641_v52 }
  0xb4   : > { %v568_v5 = vadd.f32 %v567_v62, %v563_v1  ;;  %v647_v62 = vmul.f32 %v936_v55, %v646_v56 }
  0xb6   : > { %v573_v9 = vadd.f32 %v572_v2, %v568_v5  ;;  %v652_v2 = vmul.f32 %v938_v59, %v651_v60 }
  0xb8   : > { %v578_v13 = vadd.f32 %v577_v6, %v573_v9 }
  0xba   : > { %v583_v17 = vadd.f32 %v582_v10, %v578_v13 }
  0xbc   : > { %v588_v21 = vadd.f32 %v587_v14, %v583_v17 }
  0xbe   : > { %v593_v25 = vadd.f32 %v592_v18, %v588_v21 }
  0xc0   : > { %v598_v29 = vadd.f32 %v597_v22, %v593_v25 }
  0xc2   : > { %v603_v33 = vadd.f32 %v602_v26, %v598_v29 }
  0xc4   : > { %v608_v37 = vadd.f32 %v607_v30, %v603_v33 }
  0xc6   : > { %v613_v41 = vadd.f32 %v612_v34, %v608_v37 }
  0xc8   : > { %v618_v45 = vadd.f32 %v617_v38, %v613_v41 }
  0xca   : > { %v623_v49 = vadd.f32 %v622_v42, %v618_v45 }
  0xcc   : > { %v628_v53 = vadd.f32 %v627_v46, %v623_v49 }
  0xce   : > { %v633_v57 = vadd.f32 %v632_v50, %v628_v53 }
  0xd0   : > { %v638_v61 = vadd.f32 %v637_v54, %v633_v57 }
  0xd2   : > { %v643_v1 = vadd.f32 %v642_v58, %v638_v61 }
  0xd4   : > { %v648_v3 = vadd.f32 %v647_v62, %v643_v1 }
  0xd6   : > { %v653_v5 = vadd.f32 %v652_v2, %v648_v3 }
  0xd8   : > { %v658_v6 = vadd.f32 %v657_v4, %v653_v5 }
  0xda   : > { %v942_v7 = vmul.f32 -1.442695, %v658_v6 }
  0xdc   : > { %965 = vpow2.f32 %v942_v7 }
  0xe2   : > { %v966_v8 = vpop.eup %965 }
  0xe3   : > { %v662_v9 = vadd.f32 1.0, %v966_v8 }
  0xe5   : > { %967 = vrcp.f32 %v662_v9  ;;  %v674_v12 = vand.u32 2147483648, %v662_v9  ;;  %vm668_vm0 = vweird.f32 %v662_v9  ;;  %v672_v14 = vand.u32 2147483647, %v662_v9 }
  0xe7   : > { %v675_v16 = vor.u32 1.1754944e-38, %v674_v12  ;;  %vm673_vm3 = vcmp.eq.f32.partialorder %v672_v14, 8.507059e+37 }
  0xeb   : > { %v968_v10 = vpop.eup %967 }
  0xec   : > { %v664_v11 = vmul.f32 %v968_v10, %v662_v9  ;;  %vm669_vm1 = vweird.f32 %v968_v10 }
  0xed   : > { %vm670_vm2 = vmor %vm668_vm0, %vm669_vm1 }
  0xee   : > { %v665_v13 = vsub.f32 1.0, %v664_v11 }
  0xf0   : > { %v666_v15 = vmul.f32 %v968_v10, %v665_v13 }
  0xf2   : > { %v667_v17 = vadd.f32 %v968_v10, %v666_v15 }
  0xf4   : > { %v671_v18 = vsel %vm670_vm2, %v968_v10, %v667_v17 }
  0xf5   : > { %v676_v19 = vsel %vm673_vm3, %v675_v16, %v671_v18 }
  0xf6   : > { %679 = vst.msk [vmem:[%s155_s18] sm:$0xff] %vm678_vm4, %v676_v19 }
  0xf7 PF: > { %s13_s9 = sadd.s32 1, %s994_s9  }
  0xf8   : > { %p10_p7 = scmp.ge.s32.totalorder %s13_s9, 4  }
  0xfa   :  { %12 = sbr.rel (!%p10_p7) target bundleno = 1 (0x1), region = 76 }
  0xff   :  { %699 = vsyncpa [#allocation3], 1 }
 0x100   :  { %701 = vsyncpa [#allocation3 + $0x1], 1 }

</bundles_post_ra>
